<compile_context>
chip_gen: v7x
topology: tpu7x:2x2x1
jax: 0.10.0
libtpu: 0.0.40
codegen_flags: <defaults>
</compile_context>

<pallas_src>
import math
import jax
import jax.numpy as jnp
from jax.experimental import pallas as pl
from jax.experimental.pallas import tpu as pltpu

# ----- module hyper-parameters (view(-1, 32*121) pins CONV_LOUT = 121) -----
N_FILTERS = 32
EMBED_DIM = 128
OUTPUT_DIM = 128
NUM_FEATURE_RNA = 64
NUM_FEATURE_PRO = 33
MAX_LEN = 32                                            # toy size (module default 3000)
LOCAL_LEN = MAX_LEN - int(round(math.log(NUM_FEATURE_RNA, 4))) + 1   # mirrors the module: 30
KSIZE = 8
CONV_LOUT = EMBED_DIM - KSIZE + 1                       # 121, matches view(-1, 32*121)
LOUT_PAD = 128                                          # lane-dense conv output width
FLAT_DIM = N_FILTERS * LOUT_PAD                         # 4096
PF12 = 128                                              # lane width for GCN layers 1-2 (>=66)
PF3 = 256                                               # lane width for GCN layer 3 (>=132)
FC1_DIM = 1024
CK_TOTAL = (MAX_LEN + LOCAL_LEN) * KSIZE + 1            # im2col rows for both streams + ones col
CK_PAD = ((CK_TOTAL + 127) // 128) * 128                # 512 -> 128-aligned contraction


# ---------------------------- the fused kernel ----------------------------

def wgcn_kernel(xcolw_ref, wcat_ref, wfc_ref, fcb_ref,
                x_ref, adj_ref, w12_ref, st12_ref, w3_ref, st3_ref,
                pool_ref, fc1w_ref, fc1b_ref, fc2w_ref, fc2b_ref,
                out_ref, flat_ref):
    branch = pl.program_id(0)

    # ---------- branch 0: RNA path (both Conv1d's + fc_xr + stream mean) ----------
    @pl.when(branch == 0)
    def _rna():
        nb = xcolw_ref.shape[1] // LOUT_PAD                       # batch size
        # One batched im2col matmul for BOTH conv streams of ALL batch items;
        # conv biases enter via the ones row of the im2col slab.
        conv = jnp.dot(wcat_ref[...], xcolw_ref[...],
                       preferred_element_type=jnp.float32)        # [32, B*128]
        # Flatten conv output into fc_xr layout [b, f*128+l] via static sub-tile
        # stores (avoids an in-kernel lane<->sublane reshape); rows >= B stay 0.
        flat_ref[...] = jnp.zeros_like(flat_ref)
        for b in range(nb):
            for f in range(N_FILTERS):
                flat_ref[b:b + 1, f * LOUT_PAD:(f + 1) * LOUT_PAD] = (
                    conv[f:f + 1, b * LOUT_PAD:(b + 1) * LOUT_PAD]
                    .astype(flat_ref.dtype))
        # fc_xr on both streams + torch.stack(...).mean(0): 0.5 folded into wfc.
        rna = jnp.dot(flat_ref[...], wfc_ref[...],
                      preferred_element_type=jnp.float32) + fcb_ref[...]
        out_ref[0] = rna                                          # [ROWS, 128]

    # ---------- branch 1: protein path (3x GCN+BN+ReLU -> pool -> fc1 -> fc2) ----------
    @pl.when(branch == 1)
    def _protein():
        def gcn_bn_relu(h, a, w, st):
            hw = jnp.dot(h, w, preferred_element_type=jnp.float32)
            g = jnp.dot(a, hw.astype(jnp.bfloat16), preferred_element_type=jnp.float32)
            # eval-mode NodeLevelBatchNorm + GCN bias folded into (scale, shift)
            return jnp.maximum(g * st[0:1, :] + st[1:2, :], 0.0).astype(jnp.bfloat16)

        h = x_ref[...]                                            # [N, 128] bf16
        h = gcn_bn_relu(h, adj_ref[0], w12_ref[0], st12_ref[0])   # pro_conv1 (edge_weight)
        h = gcn_bn_relu(h, adj_ref[1], w12_ref[1], st12_ref[1])   # pro_conv2
        h = gcn_bn_relu(h, adj_ref[1], w3_ref[...], st3_ref[...])  # pro_conv3 -> [N, 256]
        pooled = jnp.dot(pool_ref[...], h, preferred_element_type=jnp.float32)   # [ROWS, 256]
        z = jnp.maximum(jnp.dot(pooled.astype(jnp.bfloat16), fc1w_ref[...],
                                preferred_element_type=jnp.float32) + fc1b_ref[...], 0.0)
        xp = jnp.dot(z.astype(jnp.bfloat16), fc2w_ref[...],
                     preferred_element_type=jnp.float32) + fc2b_ref[...]
        out_ref[0] = xp                                           # [ROWS, 128]


# ---------------------------- wrapper ----------------------------

def _full_spec(shape):
    nd = len(shape)
    return pl.BlockSpec(shape, lambda c, _nd=nd: (0,) * _nd)


def wgcn_pallas(xcolw, wcat, wfc, fcb, x_pad, adj, w12, st12, w3, st3,
                pool_mat, fc1w, fc1b, fc2w, fc2b, rows):
    n_nodes = x_pad.shape[0]
    nb = xcolw.shape[1] // LOUT_PAD
    flops = 2 * (N_FILTERS * CK_PAD * nb * LOUT_PAD
                 + rows * FLAT_DIM * OUTPUT_DIM
                 + 2 * (n_nodes * PF12 * PF12 + n_nodes * n_nodes * PF12)
                 + (n_nodes * PF12 * PF3 + n_nodes * n_nodes * PF3)
                 + rows * n_nodes * PF3
                 + rows * PF3 * FC1_DIM + rows * FC1_DIM * OUTPUT_DIM)
    args = (xcolw, wcat, wfc, fcb, x_pad, adj, w12, st12, w3, st3,
            pool_mat, fc1w, fc1b, fc2w, fc2b)
    nbytes = int(sum(a.size * a.dtype.itemsize for a in args)
                 + 2 * rows * OUTPUT_DIM * 4)
    return pl.pallas_call(
        wgcn_kernel,
        out_shape=jax.ShapeDtypeStruct((2, rows, OUTPUT_DIM), jnp.float32),
        grid=(2,),                                                 # branch 0: RNA, 1: protein
        in_specs=[_full_spec(a.shape) for a in args],
        out_specs=pl.BlockSpec((1, rows, OUTPUT_DIM), lambda c: (c, 0, 0)),
        scratch_shapes=[pltpu.VMEM((rows, FLAT_DIM), jnp.bfloat16)],
        compiler_params=pltpu.CompilerParams(dimension_semantics=("parallel",)),
        cost_estimate=pl.CostEstimate(flops=flops, transcendentals=0,
                                      bytes_accessed=nbytes),
    )(*args)


# ---------------------------- host-side glue ----------------------------

def _im2col(x, k):
    """x: [B, C, L] -> [B, C*K, L]; windows running past L are zero-filled."""
    b, c, l = x.shape
    shifted = [jnp.pad(x[:, :, t:], ((0, 0), (0, 0), (0, t))) for t in range(k)]
    return jnp.stack(shifted, axis=2).reshape(b, c * k, l)


def _gcn_norm_dense(src, dst, w, n):
    """Dense symmetric gcn_norm adjacency (self loops weight 1): A[i,j] = norm(j->i)."""
    adj = jnp.zeros((n, n), jnp.float32).at[dst, src].add(w)
    adj = adj + jnp.eye(n, dtype=jnp.float32)
    deg = adj.sum(axis=1)
    dinv = jnp.where(deg > 0, jax.lax.rsqrt(deg), 0.0)
    return adj * dinv[:, None] * dinv[None, :]


def wgcn_forward(params, data):
    # ---------------- RNA branch packing ----------------
    emb_g = params["emb1"][data["global_rna"]]          # [B, MAX_LEN, 128]  (Conv1d NCL: seq=channels)
    emb_l = params["emb2"][data["local_rna"]]           # [B, LOCAL_LEN, 128]
    B = emb_g.shape[0]
    num_graphs = int(data["num_graphs"])
    rows = ((max(B, num_graphs) + 7) // 8) * 8          # sublane-aligned output rows

    xcol = jnp.concatenate(
        [_im2col(emb_g, KSIZE), _im2col(emb_l, KSIZE),
         jnp.ones((B, 1, EMBED_DIM), jnp.float32),                  # conv-bias ones row
         jnp.zeros((B, CK_PAD - CK_TOTAL, EMBED_DIM), jnp.float32)],
        axis=1)                                                     # [B, 512, 128]
    # TODO(synk): at module-default MAX_LEN=3000 build the im2col windows in-kernel
    # (8 accumulating taps over the VMEM-resident embedding) and tile CK on an
    # "arbitrary" grid axis instead of this host-side 8x data expansion.
    xcolw = xcol.transpose(1, 0, 2).reshape(CK_PAD, B * LOUT_PAD).astype(jnp.bfloat16)

    wcat = jnp.concatenate(
        [params["conv_xr1_w"].reshape(N_FILTERS, MAX_LEN * KSIZE),
         params["conv_xr2_w"].reshape(N_FILTERS, LOCAL_LEN * KSIZE),
         (params["conv_xr1_b"] + params["conv_xr2_b"])[:, None],
         jnp.zeros((N_FILTERS, CK_PAD - CK_TOTAL), jnp.float32)],
        axis=1).astype(jnp.bfloat16)                                # [32, 512]

    wr = params["fc_xr_w"].reshape(N_FILTERS, CONV_LOUT, OUTPUT_DIM)
    wr = jnp.pad(wr, ((0, 0), (0, LOUT_PAD - CONV_LOUT), (0, 0)))   # kill dead conv lanes
    wfc_half = (0.5 * wr).reshape(FLAT_DIM, OUTPUT_DIM).astype(jnp.bfloat16)
    fcb = params["fc_xr_b"].reshape(1, OUTPUT_DIM).astype(jnp.float32)

    # ---------------- protein branch packing ----------------
    x = data["x"]
    n_nodes = x.shape[0]
    src, dst = data["edge_index"][0], data["edge_index"][1]
    ew = data["edge_weight"].astype(jnp.float32)
    # TODO(synk): dense normalized adjacency / pooling only viable for tiny graphs; at real
    # node counts switch to edge-sorted segment aggregation with scalar-prefetched offsets.
    a1 = _gcn_norm_dense(src, dst, ew, n_nodes)                 # pro_conv1 uses edge_weight
    a23 = _gcn_norm_dense(src, dst, jnp.ones_like(ew), n_nodes)  # pro_conv2/3: no edge_weight
    adj = jnp.stack([a1, a23]).astype(jnp.bfloat16)             # [2, N, N]

    x_pad = (jnp.zeros((n_nodes, PF12), jnp.float32)
             .at[:, :NUM_FEATURE_PRO].set(x).astype(jnp.bfloat16))

    dims = [(NUM_FEATURE_PRO, NUM_FEATURE_PRO, PF12, PF12),
            (NUM_FEATURE_PRO, 2 * NUM_FEATURE_PRO, PF12, PF12),
            (2 * NUM_FEATURE_PRO, 4 * NUM_FEATURE_PRO, PF12, PF3)]
    w_list, st_list = [], []
    for i, (din, dout, pin, pout) in enumerate(dims, start=1):
        w_list.append(jnp.zeros((pin, pout), jnp.float32)
                      .at[:din, :dout].set(params[f"gcn{i}_w"]).astype(jnp.bfloat16))
        bn = params[f"bn{i}"]
        s = bn["g"] * jax.lax.rsqrt(bn["var"] + 1e-5)                 # eval-mode BN fold
        t = (params[f"gcn{i}_b"] - bn["mu"]) * s + bn["b"]            # folds GCN bias too
        st_list.append(jnp.stack(
            [jnp.zeros((pout,), jnp.float32).at[:dout].set(s),
             jnp.zeros((pout,), jnp.float32).at[:dout].set(t)]))
    w12 = jnp.stack(w_list[:2])                                       # [2, 128, 128] bf16
    st12 = jnp.stack(st_list[:2])                                     # [2, 2, 128]  f32
    w3, st3 = w_list[2], st_list[2]                                   # [128, 256] / [2, 256]

    batch = data["batch"]
    onehot = (batch[None, :] == jnp.arange(num_graphs)[:, None]).astype(jnp.float32)
    pool = onehot / jnp.maximum(onehot.sum(axis=1, keepdims=True), 1.0)   # global mean pool
    pool_mat = (jnp.zeros((rows, n_nodes), jnp.float32)
                .at[:num_graphs, :].set(pool).astype(jnp.bfloat16))

    fc1w = (jnp.zeros((PF3, FC1_DIM), jnp.float32)
            .at[:4 * NUM_FEATURE_PRO, :].set(params["fc1_xp_w"]).astype(jnp.bfloat16))
    fc1b = params["fc1_xp_b"].reshape(1, FC1_DIM)
    fc2w = params["fc2_xp_w"].astype(jnp.bfloat16)
    fc2b = params["fc2_xp_b"].reshape(1, OUTPUT_DIM)

    # Dropout layers are identity in eval mode.
    out = wgcn_pallas(xcolw, wcat, wfc_half, fcb, x_pad, adj, w12, st12, w3, st3,
                      pool_mat, fc1w, fc1b, fc2w, fc2b, rows)
    return out[0, :B], out[1, :num_graphs]


# ---------------------------- parameters ----------------------------

def init_params(key):
    ks = iter(jax.random.split(key, 48))

    def lin(fan_in, fan_out):
        bound = 1.0 / math.sqrt(fan_in)
        w = jax.random.uniform(next(ks), (fan_in, fan_out), jnp.float32, -bound, bound)
        b = jax.random.uniform(next(ks), (fan_out,), jnp.float32, -bound, bound)
        return w, b

    def conv1d(cin, cout, k):
        bound = 1.0 / math.sqrt(cin * k)
        w = jax.random.uniform(next(ks), (cout, cin, k), jnp.float32, -bound, bound)
        b = jax.random.uniform(next(ks), (cout,), jnp.float32, -bound, bound)
        return w, b

    def bn(d):  # fresh running stats (eval mode)
        return dict(g=jnp.ones((d,), jnp.float32), b=jnp.zeros((d,), jnp.float32),
                    mu=jnp.zeros((d,), jnp.float32), var=jnp.ones((d,), jnp.float32))

    p = {}
    p["emb1"] = jax.random.normal(next(ks), (5, EMBED_DIM), jnp.float32)
    p["emb2"] = jax.random.normal(next(ks), (NUM_FEATURE_RNA + 1, EMBED_DIM), jnp.float32)
    p["conv_xr1_w"], p["conv_xr1_b"] = conv1d(MAX_LEN, N_FILTERS, KSIZE)
    p["conv_xr2_w"], p["conv_xr2_b"] = conv1d(LOCAL_LEN, N_FILTERS, KSIZE)
    p["fc_xr_w"], p["fc_xr_b"] = lin(N_FILTERS * CONV_LOUT, OUTPUT_DIM)
    p["gcn1_w"], p["gcn1_b"] = lin(NUM_FEATURE_PRO, NUM_FEATURE_PRO)
    p["gcn2_w"], p["gcn2_b"] = lin(NUM_FEATURE_PRO, 2 * NUM_FEATURE_PRO)
    p["gcn3_w"], p["gcn3_b"] = lin(2 * NUM_FEATURE_PRO, 4 * NUM_FEATURE_PRO)
    p["bn1"], p["bn2"], p["bn3"] = bn(NUM_FEATURE_PRO), bn(2 * NUM_FEATURE_PRO), bn(4 * NUM_FEATURE_PRO)
    p["fc1_xp_w"], p["fc1_xp_b"] = lin(4 * NUM_FEATURE_PRO, FC1_DIM)
    p["fc2_xp_w"], p["fc2_xp_b"] = lin(FC1_DIM, OUTPUT_DIM)
    return p


if __name__ == "__main__":
    key = jax.random.PRNGKey(0)
    pkey, dkey = jax.random.split(key)
    params = init_params(pkey)

    dks = iter(jax.random.split(dkey, 16))
    B = 2                      # RNA batch size
    NODES_PER_GRAPH = 8
    N = 2 * NODES_PER_GRAPH    # total protein nodes (2 graphs x 8 nodes)
    E = 32                     # directed edges

    def make_edges(k1, k2, base):
        src = jax.random.randint(k1, (E // 2,), 0, NODES_PER_GRAPH)
        off = jax.random.randint(k2, (E // 2,), 1, NODES_PER_GRAPH)
        dst = (src + off) % NODES_PER_GRAPH            # no self loops
        return jnp.stack([src + base, dst + base])

    edge_index = jnp.concatenate(
        [make_edges(next(dks), next(dks), 0),
         make_edges(next(dks), next(dks), NODES_PER_GRAPH)], axis=1)

    data = dict(
        global_rna=jax.random.randint(next(dks), (B, MAX_LEN), 0, 5),
        local_rna=jax.random.randint(next(dks), (B, LOCAL_LEN), 0, NUM_FEATURE_RNA + 1),
        x=jax.random.normal(next(dks), (N, NUM_FEATURE_PRO), jnp.float32),
        edge_index=edge_index,
        edge_weight=jax.random.uniform(next(dks), (E,), jnp.float32, 0.1, 1.0),
        batch=jnp.concatenate([jnp.zeros((NODES_PER_GRAPH,), jnp.int32),
                               jnp.ones((NODES_PER_GRAPH,), jnp.int32)]),
        num_graphs=2,
    )

    xc_rna, xp = wgcn_forward(params, data)
    jax.block_until_ready((xc_rna, xp))
    assert xc_rna.shape == (B, OUTPUT_DIM)
    assert xp.shape == (2, OUTPUT_DIM)
    assert bool(jnp.all(jnp.isfinite(xc_rna))) and bool(jnp.all(jnp.isfinite(xp)))
    print("KERNEL_OK")
</pallas_src>

<mosaic_0001>
module attributes {stable_mosaic.version = 11 : i64} {
  func.func @wgcn_kernel(%arg0: i32, %arg1: memref<512x256xbf16, #tpu.memory_space<vmem>>, %arg2: memref<32x512xbf16, #tpu.memory_space<vmem>>, %arg3: memref<4096x128xbf16, #tpu.memory_space<vmem>>, %arg4: memref<1x128xf32, #tpu.memory_space<vmem>>, %arg5: memref<16x128xbf16, #tpu.memory_space<vmem>>, %arg6: memref<2x16x16xbf16, #tpu.memory_space<vmem>>, %arg7: memref<2x128x128xbf16, #tpu.memory_space<vmem>>, %arg8: memref<2x2x128xf32, #tpu.memory_space<vmem>>, %arg9: memref<128x256xbf16, #tpu.memory_space<vmem>>, %arg10: memref<2x256xf32, #tpu.memory_space<vmem>>, %arg11: memref<8x16xbf16, #tpu.memory_space<vmem>>, %arg12: memref<256x1024xbf16, #tpu.memory_space<vmem>>, %arg13: memref<1x1024xf32, #tpu.memory_space<vmem>>, %arg14: memref<1024x128xbf16, #tpu.memory_space<vmem>>, %arg15: memref<1x128xf32, #tpu.memory_space<vmem>>, %arg16: memref<1x8x128xf32, #tpu.memory_space<vmem>>, %arg17: memref<8x4096xbf16, #tpu.memory_space<vmem>>) attributes {dimension_semantics = [#tpu.dimension_semantics<parallel>], iteration_bounds = array<i64: 2>, scalar_prefetch = 0 : i64, scratch_operands = 1 : i64, tpu.core_type = #tpu.core_type<tc>, window_params = [{pipeline_mode = #tpu.pipeline_mode<synchronous>, transform_indices = @transform_0, window_bounds = array<i64: 512, 256>}, {pipeline_mode = #tpu.pipeline_mode<synchronous>, transform_indices = @transform_1, window_bounds = array<i64: 32, 512>}, {pipeline_mode = #tpu.pipeline_mode<synchronous>, transform_indices = @transform_2, window_bounds = array<i64: 4096, 128>}, {pipeline_mode = #tpu.pipeline_mode<synchronous>, transform_indices = @transform_3, window_bounds = array<i64: 1, 128>}, {pipeline_mode = #tpu.pipeline_mode<synchronous>, transform_indices = @transform_4, window_bounds = array<i64: 16, 128>}, {pipeline_mode = #tpu.pipeline_mode<synchronous>, transform_indices = @transform_5, window_bounds = array<i64: 2, 16, 16>}, {pipeline_mode = #tpu.pipeline_mode<synchronous>, transform_indices = @transform_6, window_bounds = array<i64: 2, 128, 128>}, {pipeline_mode = #tpu.pipeline_mode<synchronous>, transform_indices = @transform_7, window_bounds = array<i64: 2, 2, 128>}, {pipeline_mode = #tpu.pipeline_mode<synchronous>, transform_indices = @transform_8, window_bounds = array<i64: 128, 256>}, {pipeline_mode = #tpu.pipeline_mode<synchronous>, transform_indices = @transform_9, window_bounds = array<i64: 2, 256>}, {pipeline_mode = #tpu.pipeline_mode<synchronous>, transform_indices = @transform_10, window_bounds = array<i64: 8, 16>}, {pipeline_mode = #tpu.pipeline_mode<synchronous>, transform_indices = @transform_11, window_bounds = array<i64: 256, 1024>}, {pipeline_mode = #tpu.pipeline_mode<synchronous>, transform_indices = @transform_12, window_bounds = array<i64: 1, 1024>}, {pipeline_mode = #tpu.pipeline_mode<synchronous>, transform_indices = @transform_13, window_bounds = array<i64: 1024, 128>}, {pipeline_mode = #tpu.pipeline_mode<synchronous>, transform_indices = @transform_14, window_bounds = array<i64: 1, 128>}, {transform_indices = @transform_15, window_bounds = array<i64: 1, 8, 128>}]} {
    %c0_i32 = arith.constant 0 : i32
    %0 = arith.cmpi eq, %arg0, %c0_i32 : i32
    %1 = arith.extui %0 : i1 to i32
    %c0_i32_0 = arith.constant 0 : i32
    %2 = arith.cmpi ne, %1, %c0_i32_0 : i32
    scf.if %2 {
      %c0 = arith.constant 0 : index
      %c0_2 = arith.constant 0 : index
      %6 = vector.load %arg2[%c0, %c0_2] : memref<32x512xbf16, #tpu.memory_space<vmem>>, vector<32x512xbf16>
      %c0_3 = arith.constant 0 : index
      %c0_4 = arith.constant 0 : index
      %7 = vector.load %arg1[%c0_3, %c0_4] : memref<512x256xbf16, #tpu.memory_space<vmem>>, vector<512x256xbf16>
      %cst = arith.constant dense<0.000000e+00> : vector<32x256xf32>
      %8 = tpu.matmul %6, %7, %cst {dimension_numbers = #tpu.dot_dimension_numbers<[1], [0], [0], [1], [0, 0, 1, 1], [], []>} : vector<32x512xbf16>, vector<512x256xbf16>, vector<32x256xf32> -> vector<32x256xf32>
      %cst_5 = arith.constant 0.000000e+00 : bf16
      %9 = vector.broadcast %cst_5 : bf16 to vector<8x4096xbf16>
      %c0_6 = arith.constant 0 : index
      %c0_7 = arith.constant 0 : index
      %10 = vector.load %arg17[%c0_6, %c0_7] : memref<8x4096xbf16, #tpu.memory_space<vmem>>, vector<8x4096xbf16>
      tpu.vector_store %arg17[%c0_6, %c0_7], %9 {strides = array<i32>} : memref<8x4096xbf16, #tpu.memory_space<vmem>>, vector<8x4096xbf16>,
      %11 = vector.extract_strided_slice %8 {offsets = [0, 0], sizes = [1, 128], strides = [1, 1]} : vector<32x256xf32> to vector<1x128xf32>
      %12 = arith.truncf %11 : vector<1x128xf32> to vector<1x128xbf16>
      %c0_8 = arith.constant 0 : index
      %c0_9 = arith.constant 0 : index
      %13 = vector.load %arg17[%c0_8, %c0_9] : memref<8x4096xbf16, #tpu.memory_space<vmem>>, vector<1x128xbf16>
      tpu.vector_store %arg17[%c0_8, %c0_9], %12 {strides = array<i32>} : memref<8x4096xbf16, #tpu.memory_space<vmem>>, vector<1x128xbf16>,
      %14 = vector.extract_strided_slice %8 {offsets = [1, 0], sizes = [1, 128], strides = [1, 1]} : vector<32x256xf32> to vector<1x128xf32>
      %15 = arith.truncf %14 : vector<1x128xf32> to vector<1x128xbf16>
      %c0_10 = arith.constant 0 : index
      %c128 = arith.constant 128 : index
      %16 = vector.load %arg17[%c0_10, %c128] : memref<8x4096xbf16, #tpu.memory_space<vmem>>, vector<1x128xbf16>
      tpu.vector_store %arg17[%c0_10, %c128], %15 {strides = array<i32>} : memref<8x4096xbf16, #tpu.memory_space<vmem>>, vector<1x128xbf16>,
      %17 = vector.extract_strided_slice %8 {offsets = [2, 0], sizes = [1, 128], strides = [1, 1]} : vector<32x256xf32> to vector<1x128xf32>
      %18 = arith.truncf %17 : vector<1x128xf32> to vector<1x128xbf16>
      %c0_11 = arith.constant 0 : index
      %c256 = arith.constant 256 : index
      %19 = vector.load %arg17[%c0_11, %c256] : memref<8x4096xbf16, #tpu.memory_space<vmem>>, vector<1x128xbf16>
      tpu.vector_store %arg17[%c0_11, %c256], %18 {strides = array<i32>} : memref<8x4096xbf16, #tpu.memory_space<vmem>>, vector<1x128xbf16>,
      %20 = vector.extract_strided_slice %8 {offsets = [3, 0], sizes = [1, 128], strides = [1, 1]} : vector<32x256xf32> to vector<1x128xf32>
      %21 = arith.truncf %20 : vector<1x128xf32> to vector<1x128xbf16>
      %c0_12 = arith.constant 0 : index
      %c384 = arith.constant 384 : index
      %22 = vector.load %arg17[%c0_12, %c384] : memref<8x4096xbf16, #tpu.memory_space<vmem>>, vector<1x128xbf16>
      tpu.vector_store %arg17[%c0_12, %c384], %21 {strides = array<i32>} : memref<8x4096xbf16, #tpu.memory_space<vmem>>, vector<1x128xbf16>,
      %23 = vector.extract_strided_slice %8 {offsets = [4, 0], sizes = [1, 128], strides = [1, 1]} : vector<32x256xf32> to vector<1x128xf32>
      %24 = arith.truncf %23 : vector<1x128xf32> to vector<1x128xbf16>
      %c0_13 = arith.constant 0 : index
      %c512 = arith.constant 512 : index
      %25 = vector.load %arg17[%c0_13, %c512] : memref<8x4096xbf16, #tpu.memory_space<vmem>>, vector<1x128xbf16>
      tpu.vector_store %arg17[%c0_13, %c512], %24 {strides = array<i32>} : memref<8x4096xbf16, #tpu.memory_space<vmem>>, vector<1x128xbf16>,
      %26 = vector.extract_strided_slice %8 {offsets = [5, 0], sizes = [1, 128], strides = [1, 1]} : vector<32x256xf32> to vector<1x128xf32>
      %27 = arith.truncf %26 : vector<1x128xf32> to vector<1x128xbf16>
      %c0_14 = arith.constant 0 : index
      %c640 = arith.constant 640 : index
      %28 = vector.load %arg17[%c0_14, %c640] : memref<8x4096xbf16, #tpu.memory_space<vmem>>, vector<1x128xbf16>
      tpu.vector_store %arg17[%c0_14, %c640], %27 {strides = array<i32>} : memref<8x4096xbf16, #tpu.memory_space<vmem>>, vector<1x128xbf16>,
      %29 = vector.extract_strided_slice %8 {offsets = [6, 0], sizes = [1, 128], strides = [1, 1]} : vector<32x256xf32> to vector<1x128xf32>
      %30 = arith.truncf %29 : vector<1x128xf32> to vector<1x128xbf16>
      %c0_15 = arith.constant 0 : index
      %c768 = arith.constant 768 : index
      %31 = vector.load %arg17[%c0_15, %c768] : memref<8x4096xbf16, #tpu.memory_space<vmem>>, vector<1x128xbf16>
      tpu.vector_store %arg17[%c0_15, %c768], %30 {strides = array<i32>} : memref<8x4096xbf16, #tpu.memory_space<vmem>>, vector<1x128xbf16>,
      %32 = vector.extract_strided_slice %8 {offsets = [7, 0], sizes = [1, 128], strides = [1, 1]} : vector<32x256xf32> to vector<1x128xf32>
      %33 = arith.truncf %32 : vector<1x128xf32> to vector<1x128xbf16>
      %c0_16 = arith.constant 0 : index
      %c896 = arith.constant 896 : index
      %34 = vector.load %arg17[%c0_16, %c896] : memref<8x4096xbf16, #tpu.memory_space<vmem>>, vector<1x128xbf16>
      tpu.vector_store %arg17[%c0_16, %c896], %33 {strides = array<i32>} : memref<8x4096xbf16, #tpu.memory_space<vmem>>, vector<1x128xbf16>,
      %35 = vector.extract_strided_slice %8 {offsets = [8, 0], sizes = [1, 128], strides = [1, 1]} : vector<32x256xf32> to vector<1x128xf32>
      %36 = arith.truncf %35 : vector<1x128xf32> to vector<1x128xbf16>
      %c0_17 = arith.constant 0 : index
      %c1024 = arith.constant 1024 : index
      %37 = vector.load %arg17[%c0_17, %c1024] : memref<8x4096xbf16, #tpu.memory_space<vmem>>, vector<1x128xbf16>
      tpu.vector_store %arg17[%c0_17, %c1024], %36 {strides = array<i32>} : memref<8x4096xbf16, #tpu.memory_space<vmem>>, vector<1x128xbf16>,
      %38 = vector.extract_strided_slice %8 {offsets = [9, 0], sizes = [1, 128], strides = [1, 1]} : vector<32x256xf32> to vector<1x128xf32>
      %39 = arith.truncf %38 : vector<1x128xf32> to vector<1x128xbf16>
      %c0_18 = arith.constant 0 : index
      %c1152 = arith.constant 1152 : index
      %40 = vector.load %arg17[%c0_18, %c1152] : memref<8x4096xbf16, #tpu.memory_space<vmem>>, vector<1x128xbf16>
      tpu.vector_store %arg17[%c0_18, %c1152], %39 {strides = array<i32>} : memref<8x4096xbf16, #tpu.memory_space<vmem>>, vector<1x128xbf16>,
      %41 = vector.extract_strided_slice %8 {offsets = [10, 0], sizes = [1, 128], strides = [1, 1]} : vector<32x256xf32> to vector<1x128xf32>
      %42 = arith.truncf %41 : vector<1x128xf32> to vector<1x128xbf16>
      %c0_19 = arith.constant 0 : index
      %c1280 = arith.constant 1280 : index
      %43 = vector.load %arg17[%c0_19, %c1280] : memref<8x4096xbf16, #tpu.memory_space<vmem>>, vector<1x128xbf16>
      tpu.vector_store %arg17[%c0_19, %c1280], %42 {strides = array<i32>} : memref<8x4096xbf16, #tpu.memory_space<vmem>>, vector<1x128xbf16>,
      %44 = vector.extract_strided_slice %8 {offsets = [11, 0], sizes = [1, 128], strides = [1, 1]} : vector<32x256xf32> to vector<1x128xf32>
      %45 = arith.truncf %44 : vector<1x128xf32> to vector<1x128xbf16>
      %c0_20 = arith.constant 0 : index
      %c1408 = arith.constant 1408 : index
      %46 = vector.load %arg17[%c0_20, %c1408] : memref<8x4096xbf16, #tpu.memory_space<vmem>>, vector<1x128xbf16>
      tpu.vector_store %arg17[%c0_20, %c1408], %45 {strides = array<i32>} : memref<8x4096xbf16, #tpu.memory_space<vmem>>, vector<1x128xbf16>,
      %47 = vector.extract_strided_slice %8 {offsets = [12, 0], sizes = [1, 128], strides = [1, 1]} : vector<32x256xf32> to vector<1x128xf32>
      %48 = arith.truncf %47 : vector<1x128xf32> to vector<1x128xbf16>
      %c0_21 = arith.constant 0 : index
      %c1536 = arith.constant 1536 : index
      %49 = vector.load %arg17[%c0_21, %c1536] : memref<8x4096xbf16, #tpu.memory_space<vmem>>, vector<1x128xbf16>
      tpu.vector_store %arg17[%c0_21, %c1536], %48 {strides = array<i32>} : memref<8x4096xbf16, #tpu.memory_space<vmem>>, vector<1x128xbf16>,
      %50 = vector.extract_strided_slice %8 {offsets = [13, 0], sizes = [1, 128], strides = [1, 1]} : vector<32x256xf32> to vector<1x128xf32>
      %51 = arith.truncf %50 : vector<1x128xf32> to vector<1x128xbf16>
      %c0_22 = arith.constant 0 : index
      %c1664 = arith.constant 1664 : index
      %52 = vector.load %arg17[%c0_22, %c1664] : memref<8x4096xbf16, #tpu.memory_space<vmem>>, vector<1x128xbf16>
      tpu.vector_store %arg17[%c0_22, %c1664], %51 {strides = array<i32>} : memref<8x4096xbf16, #tpu.memory_space<vmem>>, vector<1x128xbf16>,
      %53 = vector.extract_strided_slice %8 {offsets = [14, 0], sizes = [1, 128], strides = [1, 1]} : vector<32x256xf32> to vector<1x128xf32>
      %54 = arith.truncf %53 : vector<1x128xf32> to vector<1x128xbf16>
      %c0_23 = arith.constant 0 : index
      %c1792 = arith.constant 1792 : index
      %55 = vector.load %arg17[%c0_23, %c1792] : memref<8x4096xbf16, #tpu.memory_space<vmem>>, vector<1x128xbf16>
      tpu.vector_store %arg17[%c0_23, %c1792], %54 {strides = array<i32>} : memref<8x4096xbf16, #tpu.memory_space<vmem>>, vector<1x128xbf16>,
      %56 = vector.extract_strided_slice %8 {offsets = [15, 0], sizes = [1, 128], strides = [1, 1]} : vector<32x256xf32> to vector<1x128xf32>
      %57 = arith.truncf %56 : vector<1x128xf32> to vector<1x128xbf16>
      %c0_24 = arith.constant 0 : index
      %c1920 = arith.constant 1920 : index
      %58 = vector.load %arg17[%c0_24, %c1920] : memref<8x4096xbf16, #tpu.memory_space<vmem>>, vector<1x128xbf16>
      tpu.vector_store %arg17[%c0_24, %c1920], %57 {strides = array<i32>} : memref<8x4096xbf16, #tpu.memory_space<vmem>>, vector<1x128xbf16>,
      %59 = vector.extract_strided_slice %8 {offsets = [16, 0], sizes = [1, 128], strides = [1, 1]} : vector<32x256xf32> to vector<1x128xf32>
      %60 = arith.truncf %59 : vector<1x128xf32> to vector<1x128xbf16>
      %c0_25 = arith.constant 0 : index
      %c2048 = arith.constant 2048 : index
      %61 = vector.load %arg17[%c0_25, %c2048] : memref<8x4096xbf16, #tpu.memory_space<vmem>>, vector<1x128xbf16>
      tpu.vector_store %arg17[%c0_25, %c2048], %60 {strides = array<i32>} : memref<8x4096xbf16, #tpu.memory_space<vmem>>, vector<1x128xbf16>,
      %62 = vector.extract_strided_slice %8 {offsets = [17, 0], sizes = [1, 128], strides = [1, 1]} : vector<32x256xf32> to vector<1x128xf32>
      %63 = arith.truncf %62 : vector<1x128xf32> to vector<1x128xbf16>
      %c0_26 = arith.constant 0 : index
      %c2176 = arith.constant 2176 : index
      %64 = vector.load %arg17[%c0_26, %c2176] : memref<8x4096xbf16, #tpu.memory_space<vmem>>, vector<1x128xbf16>
      tpu.vector_store %arg17[%c0_26, %c2176], %63 {strides = array<i32>} : memref<8x4096xbf16, #tpu.memory_space<vmem>>, vector<1x128xbf16>,
      %65 = vector.extract_strided_slice %8 {offsets = [18, 0], sizes = [1, 128], strides = [1, 1]} : vector<32x256xf32> to vector<1x128xf32>
      %66 = arith.truncf %65 : vector<1x128xf32> to vector<1x128xbf16>
      %c0_27 = arith.constant 0 : index
      %c2304 = arith.constant 2304 : index
      %67 = vector.load %arg17[%c0_27, %c2304] : memref<8x4096xbf16, #tpu.memory_space<vmem>>, vector<1x128xbf16>
      tpu.vector_store %arg17[%c0_27, %c2304], %66 {strides = array<i32>} : memref<8x4096xbf16, #tpu.memory_space<vmem>>, vector<1x128xbf16>,
      %68 = vector.extract_strided_slice %8 {offsets = [19, 0], sizes = [1, 128], strides = [1, 1]} : vector<32x256xf32> to vector<1x128xf32>
      %69 = arith.truncf %68 : vector<1x128xf32> to vector<1x128xbf16>
      %c0_28 = arith.constant 0 : index
      %c2432 = arith.constant 2432 : index
      %70 = vector.load %arg17[%c0_28, %c2432] : memref<8x4096xbf16, #tpu.memory_space<vmem>>, vector<1x128xbf16>
      tpu.vector_store %arg17[%c0_28, %c2432], %69 {strides = array<i32>} : memref<8x4096xbf16, #tpu.memory_space<vmem>>, vector<1x128xbf16>,
      %71 = vector.extract_strided_slice %8 {offsets = [20, 0], sizes = [1, 128], strides = [1, 1]} : vector<32x256xf32> to vector<1x128xf32>
      %72 = arith.truncf %71 : vector<1x128xf32> to vector<1x128xbf16>
      %c0_29 = arith.constant 0 : index
      %c2560 = arith.constant 2560 : index
      %73 = vector.load %arg17[%c0_29, %c2560] : memref<8x4096xbf16, #tpu.memory_space<vmem>>, vector<1x128xbf16>
      tpu.vector_store %arg17[%c0_29, %c2560], %72 {strides = array<i32>} : memref<8x4096xbf16, #tpu.memory_space<vmem>>, vector<1x128xbf16>,
      %74 = vector.extract_strided_slice %8 {offsets = [21, 0], sizes = [1, 128], strides = [1, 1]} : vector<32x256xf32> to vector<1x128xf32>
      %75 = arith.truncf %74 : vector<1x128xf32> to vector<1x128xbf16>
      %c0_30 = arith.constant 0 : index
      %c2688 = arith.constant 2688 : index
      %76 = vector.load %arg17[%c0_30, %c2688] : memref<8x4096xbf16, #tpu.memory_space<vmem>>, vector<1x128xbf16>
      tpu.vector_store %arg17[%c0_30, %c2688], %75 {strides = array<i32>} : memref<8x4096xbf16, #tpu.memory_space<vmem>>, vector<1x128xbf16>,
      %77 = vector.extract_strided_slice %8 {offsets = [22, 0], sizes = [1, 128], strides = [1, 1]} : vector<32x256xf32> to vector<1x128xf32>
      %78 = arith.truncf %77 : vector<1x128xf32> to vector<1x128xbf16>
      %c0_31 = arith.constant 0 : index
      %c2816 = arith.constant 2816 : index
      %79 = vector.load %arg17[%c0_31, %c2816] : memref<8x4096xbf16, #tpu.memory_space<vmem>>, vector<1x128xbf16>
      tpu.vector_store %arg17[%c0_31, %c2816], %78 {strides = array<i32>} : memref<8x4096xbf16, #tpu.memory_space<vmem>>, vector<1x128xbf16>,
      %80 = vector.extract_strided_slice %8 {offsets = [23, 0], sizes = [1, 128], strides = [1, 1]} : vector<32x256xf32> to vector<1x128xf32>
      %81 = arith.truncf %80 : vector<1x128xf32> to vector<1x128xbf16>
      %c0_32 = arith.constant 0 : index
      %c2944 = arith.constant 2944 : index
      %82 = vector.load %arg17[%c0_32, %c2944] : memref<8x4096xbf16, #tpu.memory_space<vmem>>, vector<1x128xbf16>
      tpu.vector_store %arg17[%c0_32, %c2944], %81 {strides = array<i32>} : memref<8x4096xbf16, #tpu.memory_space<vmem>>, vector<1x128xbf16>,
      %83 = vector.extract_strided_slice %8 {offsets = [24, 0], sizes = [1, 128], strides = [1, 1]} : vector<32x256xf32> to vector<1x128xf32>
      %84 = arith.truncf %83 : vector<1x128xf32> to vector<1x128xbf16>
      %c0_33 = arith.constant 0 : index
      %c3072 = arith.constant 3072 : index
      %85 = vector.load %arg17[%c0_33, %c3072] : memref<8x4096xbf16, #tpu.memory_space<vmem>>, vector<1x128xbf16>
      tpu.vector_store %arg17[%c0_33, %c3072], %84 {strides = array<i32>} : memref<8x4096xbf16, #tpu.memory_space<vmem>>, vector<1x128xbf16>,
      %86 = vector.extract_strided_slice %8 {offsets = [25, 0], sizes = [1, 128], strides = [1, 1]} : vector<32x256xf32> to vector<1x128xf32>
      %87 = arith.truncf %86 : vector<1x128xf32> to vector<1x128xbf16>
      %c0_34 = arith.constant 0 : index
      %c3200 = arith.constant 3200 : index
      %88 = vector.load %arg17[%c0_34, %c3200] : memref<8x4096xbf16, #tpu.memory_space<vmem>>, vector<1x128xbf16>
      tpu.vector_store %arg17[%c0_34, %c3200], %87 {strides = array<i32>} : memref<8x4096xbf16, #tpu.memory_space<vmem>>, vector<1x128xbf16>,
      %89 = vector.extract_strided_slice %8 {offsets = [26, 0], sizes = [1, 128], strides = [1, 1]} : vector<32x256xf32> to vector<1x128xf32>
      %90 = arith.truncf %89 : vector<1x128xf32> to vector<1x128xbf16>
      %c0_35 = arith.constant 0 : index
      %c3328 = arith.constant 3328 : index
      %91 = vector.load %arg17[%c0_35, %c3328] : memref<8x4096xbf16, #tpu.memory_space<vmem>>, vector<1x128xbf16>
      tpu.vector_store %arg17[%c0_35, %c3328], %90 {strides = array<i32>} : memref<8x4096xbf16, #tpu.memory_space<vmem>>, vector<1x128xbf16>,
      %92 = vector.extract_strided_slice %8 {offsets = [27, 0], sizes = [1, 128], strides = [1, 1]} : vector<32x256xf32> to vector<1x128xf32>
      %93 = arith.truncf %92 : vector<1x128xf32> to vector<1x128xbf16>
      %c0_36 = arith.constant 0 : index
      %c3456 = arith.constant 3456 : index
      %94 = vector.load %arg17[%c0_36, %c3456] : memref<8x4096xbf16, #tpu.memory_space<vmem>>, vector<1x128xbf16>
      tpu.vector_store %arg17[%c0_36, %c3456], %93 {strides = array<i32>} : memref<8x4096xbf16, #tpu.memory_space<vmem>>, vector<1x128xbf16>,
      %95 = vector.extract_strided_slice %8 {offsets = [28, 0], sizes = [1, 128], strides = [1, 1]} : vector<32x256xf32> to vector<1x128xf32>
      %96 = arith.truncf %95 : vector<1x128xf32> to vector<1x128xbf16>
      %c0_37 = arith.constant 0 : index
      %c3584 = arith.constant 3584 : index
      %97 = vector.load %arg17[%c0_37, %c3584] : memref<8x4096xbf16, #tpu.memory_space<vmem>>, vector<1x128xbf16>
      tpu.vector_store %arg17[%c0_37, %c3584], %96 {strides = array<i32>} : memref<8x4096xbf16, #tpu.memory_space<vmem>>, vector<1x128xbf16>,
      %98 = vector.extract_strided_slice %8 {offsets = [29, 0], sizes = [1, 128], strides = [1, 1]} : vector<32x256xf32> to vector<1x128xf32>
      %99 = arith.truncf %98 : vector<1x128xf32> to vector<1x128xbf16>
      %c0_38 = arith.constant 0 : index
      %c3712 = arith.constant 3712 : index
      %100 = vector.load %arg17[%c0_38, %c3712] : memref<8x4096xbf16, #tpu.memory_space<vmem>>, vector<1x128xbf16>
      tpu.vector_store %arg17[%c0_38, %c3712], %99 {strides = array<i32>} : memref<8x4096xbf16, #tpu.memory_space<vmem>>, vector<1x128xbf16>,
      %101 = vector.extract_strided_slice %8 {offsets = [30, 0], sizes = [1, 128], strides = [1, 1]} : vector<32x256xf32> to vector<1x128xf32>
      %102 = arith.truncf %101 : vector<1x128xf32> to vector<1x128xbf16>
      %c0_39 = arith.constant 0 : index
      %c3840 = arith.constant 3840 : index
      %103 = vector.load %arg17[%c0_39, %c3840] : memref<8x4096xbf16, #tpu.memory_space<vmem>>, vector<1x128xbf16>
      tpu.vector_store %arg17[%c0_39, %c3840], %102 {strides = array<i32>} : memref<8x4096xbf16, #tpu.memory_space<vmem>>, vector<1x128xbf16>,
      %104 = vector.extract_strided_slice %8 {offsets = [31, 0], sizes = [1, 128], strides = [1, 1]} : vector<32x256xf32> to vector<1x128xf32>
      %105 = arith.truncf %104 : vector<1x128xf32> to vector<1x128xbf16>
      %c0_40 = arith.constant 0 : index
      %c3968 = arith.constant 3968 : index
      %106 = vector.load %arg17[%c0_40, %c3968] : memref<8x4096xbf16, #tpu.memory_space<vmem>>, vector<1x128xbf16>
      tpu.vector_store %arg17[%c0_40, %c3968], %105 {strides = array<i32>} : memref<8x4096xbf16, #tpu.memory_space<vmem>>, vector<1x128xbf16>,
      %107 = vector.extract_strided_slice %8 {offsets = [0, 128], sizes = [1, 128], strides = [1, 1]} : vector<32x256xf32> to vector<1x128xf32>
      %108 = arith.truncf %107 : vector<1x128xf32> to vector<1x128xbf16>
      %c1 = arith.constant 1 : index
      %c0_41 = arith.constant 0 : index
      %109 = vector.load %arg17[%c1, %c0_41] : memref<8x4096xbf16, #tpu.memory_space<vmem>>, vector<1x128xbf16>
      tpu.vector_store %arg17[%c1, %c0_41], %108 {strides = array<i32>} : memref<8x4096xbf16, #tpu.memory_space<vmem>>, vector<1x128xbf16>,
      %110 = vector.extract_strided_slice %8 {offsets = [1, 128], sizes = [1, 128], strides = [1, 1]} : vector<32x256xf32> to vector<1x128xf32>
      %111 = arith.truncf %110 : vector<1x128xf32> to vector<1x128xbf16>
      %c1_42 = arith.constant 1 : index
      %c128_43 = arith.constant 128 : index
      %112 = vector.load %arg17[%c1_42, %c128_43] : memref<8x4096xbf16, #tpu.memory_space<vmem>>, vector<1x128xbf16>
      tpu.vector_store %arg17[%c1_42, %c128_43], %111 {strides = array<i32>} : memref<8x4096xbf16, #tpu.memory_space<vmem>>, vector<1x128xbf16>,
      %113 = vector.extract_strided_slice %8 {offsets = [2, 128], sizes = [1, 128], strides = [1, 1]} : vector<32x256xf32> to vector<1x128xf32>
      %114 = arith.truncf %113 : vector<1x128xf32> to vector<1x128xbf16>
      %c1_44 = arith.constant 1 : index
      %c256_45 = arith.constant 256 : index
      %115 = vector.load %arg17[%c1_44, %c256_45] : memref<8x4096xbf16, #tpu.memory_space<vmem>>, vector<1x128xbf16>
      tpu.vector_store %arg17[%c1_44, %c256_45], %114 {strides = array<i32>} : memref<8x4096xbf16, #tpu.memory_space<vmem>>, vector<1x128xbf16>,
      %116 = vector.extract_strided_slice %8 {offsets = [3, 128], sizes = [1, 128], strides = [1, 1]} : vector<32x256xf32> to vector<1x128xf32>
      %117 = arith.truncf %116 : vector<1x128xf32> to vector<1x128xbf16>
      %c1_46 = arith.constant 1 : index
      %c384_47 = arith.constant 384 : index
      %118 = vector.load %arg17[%c1_46, %c384_47] : memref<8x4096xbf16, #tpu.memory_space<vmem>>, vector<1x128xbf16>
      tpu.vector_store %arg17[%c1_46, %c384_47], %117 {strides = array<i32>} : memref<8x4096xbf16, #tpu.memory_space<vmem>>, vector<1x128xbf16>,
      %119 = vector.extract_strided_slice %8 {offsets = [4, 128], sizes = [1, 128], strides = [1, 1]} : vector<32x256xf32> to vector<1x128xf32>
      %120 = arith.truncf %119 : vector<1x128xf32> to vector<1x128xbf16>
      %c1_48 = arith.constant 1 : index
      %c512_49 = arith.constant 512 : index
      %121 = vector.load %arg17[%c1_48, %c512_49] : memref<8x4096xbf16, #tpu.memory_space<vmem>>, vector<1x128xbf16>
      tpu.vector_store %arg17[%c1_48, %c512_49], %120 {strides = array<i32>} : memref<8x4096xbf16, #tpu.memory_space<vmem>>, vector<1x128xbf16>,
      %122 = vector.extract_strided_slice %8 {offsets = [5, 128], sizes = [1, 128], strides = [1, 1]} : vector<32x256xf32> to vector<1x128xf32>
      %123 = arith.truncf %122 : vector<1x128xf32> to vector<1x128xbf16>
      %c1_50 = arith.constant 1 : index
      %c640_51 = arith.constant 640 : index
      %124 = vector.load %arg17[%c1_50, %c640_51] : memref<8x4096xbf16, #tpu.memory_space<vmem>>, vector<1x128xbf16>
      tpu.vector_store %arg17[%c1_50, %c640_51], %123 {strides = array<i32>} : memref<8x4096xbf16, #tpu.memory_space<vmem>>, vector<1x128xbf16>,
      %125 = vector.extract_strided_slice %8 {offsets = [6, 128], sizes = [1, 128], strides = [1, 1]} : vector<32x256xf32> to vector<1x128xf32>
      %126 = arith.truncf %125 : vector<1x128xf32> to vector<1x128xbf16>
      %c1_52 = arith.constant 1 : index
      %c768_53 = arith.constant 768 : index
      %127 = vector.load %arg17[%c1_52, %c768_53] : memref<8x4096xbf16, #tpu.memory_space<vmem>>, vector<1x128xbf16>
      tpu.vector_store %arg17[%c1_52, %c768_53], %126 {strides = array<i32>} : memref<8x4096xbf16, #tpu.memory_space<vmem>>, vector<1x128xbf16>,
      %128 = vector.extract_strided_slice %8 {offsets = [7, 128], sizes = [1, 128], strides = [1, 1]} : vector<32x256xf32> to vector<1x128xf32>
      %129 = arith.truncf %128 : vector<1x128xf32> to vector<1x128xbf16>
      %c1_54 = arith.constant 1 : index
      %c896_55 = arith.constant 896 : index
      %130 = vector.load %arg17[%c1_54, %c896_55] : memref<8x4096xbf16, #tpu.memory_space<vmem>>, vector<1x128xbf16>
      tpu.vector_store %arg17[%c1_54, %c896_55], %129 {strides = array<i32>} : memref<8x4096xbf16, #tpu.memory_space<vmem>>, vector<1x128xbf16>,
      %131 = vector.extract_strided_slice %8 {offsets = [8, 128], sizes = [1, 128], strides = [1, 1]} : vector<32x256xf32> to vector<1x128xf32>
      %132 = arith.truncf %131 : vector<1x128xf32> to vector<1x128xbf16>
      %c1_56 = arith.constant 1 : index
      %c1024_57 = arith.constant 1024 : index
      %133 = vector.load %arg17[%c1_56, %c1024_57] : memref<8x4096xbf16, #tpu.memory_space<vmem>>, vector<1x128xbf16>
      tpu.vector_store %arg17[%c1_56, %c1024_57], %132 {strides = array<i32>} : memref<8x4096xbf16, #tpu.memory_space<vmem>>, vector<1x128xbf16>,
      %134 = vector.extract_strided_slice %8 {offsets = [9, 128], sizes = [1, 128], strides = [1, 1]} : vector<32x256xf32> to vector<1x128xf32>
      %135 = arith.truncf %134 : vector<1x128xf32> to vector<1x128xbf16>
      %c1_58 = arith.constant 1 : index
      %c1152_59 = arith.constant 1152 : index
      %136 = vector.load %arg17[%c1_58, %c1152_59] : memref<8x4096xbf16, #tpu.memory_space<vmem>>, vector<1x128xbf16>
      tpu.vector_store %arg17[%c1_58, %c1152_59], %135 {strides = array<i32>} : memref<8x4096xbf16, #tpu.memory_space<vmem>>, vector<1x128xbf16>,
      %137 = vector.extract_strided_slice %8 {offsets = [10, 128], sizes = [1, 128], strides = [1, 1]} : vector<32x256xf32> to vector<1x128xf32>
      %138 = arith.truncf %137 : vector<1x128xf32> to vector<1x128xbf16>
      %c1_60 = arith.constant 1 : index
      %c1280_61 = arith.constant 1280 : index
      %139 = vector.load %arg17[%c1_60, %c1280_61] : memref<8x4096xbf16, #tpu.memory_space<vmem>>, vector<1x128xbf16>
      tpu.vector_store %arg17[%c1_60, %c1280_61], %138 {strides = array<i32>} : memref<8x4096xbf16, #tpu.memory_space<vmem>>, vector<1x128xbf16>,
      %140 = vector.extract_strided_slice %8 {offsets = [11, 128], sizes = [1, 128], strides = [1, 1]} : vector<32x256xf32> to vector<1x128xf32>
      %141 = arith.truncf %140 : vector<1x128xf32> to vector<1x128xbf16>
      %c1_62 = arith.constant 1 : index
      %c1408_63 = arith.constant 1408 : index
      %142 = vector.load %arg17[%c1_62, %c1408_63] : memref<8x4096xbf16, #tpu.memory_space<vmem>>, vector<1x128xbf16>
      tpu.vector_store %arg17[%c1_62, %c1408_63], %141 {strides = array<i32>} : memref<8x4096xbf16, #tpu.memory_space<vmem>>, vector<1x128xbf16>,
      %143 = vector.extract_strided_slice %8 {offsets = [12, 128], sizes = [1, 128], strides = [1, 1]} : vector<32x256xf32> to vector<1x128xf32>
      %144 = arith.truncf %143 : vector<1x128xf32> to vector<1x128xbf16>
      %c1_64 = arith.constant 1 : index
      %c1536_65 = arith.constant 1536 : index
      %145 = vector.load %arg17[%c1_64, %c1536_65] : memref<8x4096xbf16, #tpu.memory_space<vmem>>, vector<1x128xbf16>
      tpu.vector_store %arg17[%c1_64, %c1536_65], %144 {strides = array<i32>} : memref<8x4096xbf16, #tpu.memory_space<vmem>>, vector<1x128xbf16>,
      %146 = vector.extract_strided_slice %8 {offsets = [13, 128], sizes = [1, 128], strides = [1, 1]} : vector<32x256xf32> to vector<1x128xf32>
      %147 = arith.truncf %146 : vector<1x128xf32> to vector<1x128xbf16>
      %c1_66 = arith.constant 1 : index
      %c1664_67 = arith.constant 1664 : index
      %148 = vector.load %arg17[%c1_66, %c1664_67] : memref<8x4096xbf16, #tpu.memory_space<vmem>>, vector<1x128xbf16>
      tpu.vector_store %arg17[%c1_66, %c1664_67], %147 {strides = array<i32>} : memref<8x4096xbf16, #tpu.memory_space<vmem>>, vector<1x128xbf16>,
      %149 = vector.extract_strided_slice %8 {offsets = [14, 128], sizes = [1, 128], strides = [1, 1]} : vector<32x256xf32> to vector<1x128xf32>
      %150 = arith.truncf %149 : vector<1x128xf32> to vector<1x128xbf16>
      %c1_68 = arith.constant 1 : index
      %c1792_69 = arith.constant 1792 : index
      %151 = vector.load %arg17[%c1_68, %c1792_69] : memref<8x4096xbf16, #tpu.memory_space<vmem>>, vector<1x128xbf16>
      tpu.vector_store %arg17[%c1_68, %c1792_69], %150 {strides = array<i32>} : memref<8x4096xbf16, #tpu.memory_space<vmem>>, vector<1x128xbf16>,
      %152 = vector.extract_strided_slice %8 {offsets = [15, 128], sizes = [1, 128], strides = [1, 1]} : vector<32x256xf32> to vector<1x128xf32>
      %153 = arith.truncf %152 : vector<1x128xf32> to vector<1x128xbf16>
      %c1_70 = arith.constant 1 : index
      %c1920_71 = arith.constant 1920 : index
      %154 = vector.load %arg17[%c1_70, %c1920_71] : memref<8x4096xbf16, #tpu.memory_space<vmem>>, vector<1x128xbf16>
      tpu.vector_store %arg17[%c1_70, %c1920_71], %153 {strides = array<i32>} : memref<8x4096xbf16, #tpu.memory_space<vmem>>, vector<1x128xbf16>,
      %155 = vector.extract_strided_slice %8 {offsets = [16, 128], sizes = [1, 128], strides = [1, 1]} : vector<32x256xf32> to vector<1x128xf32>
      %156 = arith.truncf %155 : vector<1x128xf32> to vector<1x128xbf16>
      %c1_72 = arith.constant 1 : index
      %c2048_73 = arith.constant 2048 : index
      %157 = vector.load %arg17[%c1_72, %c2048_73] : memref<8x4096xbf16, #tpu.memory_space<vmem>>, vector<1x128xbf16>
      tpu.vector_store %arg17[%c1_72, %c2048_73], %156 {strides = array<i32>} : memref<8x4096xbf16, #tpu.memory_space<vmem>>, vector<1x128xbf16>,
      %158 = vector.extract_strided_slice %8 {offsets = [17, 128], sizes = [1, 128], strides = [1, 1]} : vector<32x256xf32> to vector<1x128xf32>
      %159 = arith.truncf %158 : vector<1x128xf32> to vector<1x128xbf16>
      %c1_74 = arith.constant 1 : index
      %c2176_75 = arith.constant 2176 : index
      %160 = vector.load %arg17[%c1_74, %c2176_75] : memref<8x4096xbf16, #tpu.memory_space<vmem>>, vector<1x128xbf16>
      tpu.vector_store %arg17[%c1_74, %c2176_75], %159 {strides = array<i32>} : memref<8x4096xbf16, #tpu.memory_space<vmem>>, vector<1x128xbf16>,
      %161 = vector.extract_strided_slice %8 {offsets = [18, 128], sizes = [1, 128], strides = [1, 1]} : vector<32x256xf32> to vector<1x128xf32>
      %162 = arith.truncf %161 : vector<1x128xf32> to vector<1x128xbf16>
      %c1_76 = arith.constant 1 : index
      %c2304_77 = arith.constant 2304 : index
      %163 = vector.load %arg17[%c1_76, %c2304_77] : memref<8x4096xbf16, #tpu.memory_space<vmem>>, vector<1x128xbf16>
      tpu.vector_store %arg17[%c1_76, %c2304_77], %162 {strides = array<i32>} : memref<8x4096xbf16, #tpu.memory_space<vmem>>, vector<1x128xbf16>,
      %164 = vector.extract_strided_slice %8 {offsets = [19, 128], sizes = [1, 128], strides = [1, 1]} : vector<32x256xf32> to vector<1x128xf32>
      %165 = arith.truncf %164 : vector<1x128xf32> to vector<1x128xbf16>
      %c1_78 = arith.constant 1 : index
      %c2432_79 = arith.constant 2432 : index
      %166 = vector.load %arg17[%c1_78, %c2432_79] : memref<8x4096xbf16, #tpu.memory_space<vmem>>, vector<1x128xbf16>
      tpu.vector_store %arg17[%c1_78, %c2432_79], %165 {strides = array<i32>} : memref<8x4096xbf16, #tpu.memory_space<vmem>>, vector<1x128xbf16>,
      %167 = vector.extract_strided_slice %8 {offsets = [20, 128], sizes = [1, 128], strides = [1, 1]} : vector<32x256xf32> to vector<1x128xf32>
      %168 = arith.truncf %167 : vector<1x128xf32> to vector<1x128xbf16>
      %c1_80 = arith.constant 1 : index
      %c2560_81 = arith.constant 2560 : index
      %169 = vector.load %arg17[%c1_80, %c2560_81] : memref<8x4096xbf16, #tpu.memory_space<vmem>>, vector<1x128xbf16>
      tpu.vector_store %arg17[%c1_80, %c2560_81], %168 {strides = array<i32>} : memref<8x4096xbf16, #tpu.memory_space<vmem>>, vector<1x128xbf16>,
      %170 = vector.extract_strided_slice %8 {offsets = [21, 128], sizes = [1, 128], strides = [1, 1]} : vector<32x256xf32> to vector<1x128xf32>
      %171 = arith.truncf %170 : vector<1x128xf32> to vector<1x128xbf16>
      %c1_82 = arith.constant 1 : index
      %c2688_83 = arith.constant 2688 : index
      %172 = vector.load %arg17[%c1_82, %c2688_83] : memref<8x4096xbf16, #tpu.memory_space<vmem>>, vector<1x128xbf16>
      tpu.vector_store %arg17[%c1_82, %c2688_83], %171 {strides = array<i32>} : memref<8x4096xbf16, #tpu.memory_space<vmem>>, vector<1x128xbf16>,
      %173 = vector.extract_strided_slice %8 {offsets = [22, 128], sizes = [1, 128], strides = [1, 1]} : vector<32x256xf32> to vector<1x128xf32>
      %174 = arith.truncf %173 : vector<1x128xf32> to vector<1x128xbf16>
      %c1_84 = arith.constant 1 : index
      %c2816_85 = arith.constant 2816 : index
      %175 = vector.load %arg17[%c1_84, %c2816_85] : memref<8x4096xbf16, #tpu.memory_space<vmem>>, vector<1x128xbf16>
      tpu.vector_store %arg17[%c1_84, %c2816_85], %174 {strides = array<i32>} : memref<8x4096xbf16, #tpu.memory_space<vmem>>, vector<1x128xbf16>,
      %176 = vector.extract_strided_slice %8 {offsets = [23, 128], sizes = [1, 128], strides = [1, 1]} : vector<32x256xf32> to vector<1x128xf32>
      %177 = arith.truncf %176 : vector<1x128xf32> to vector<1x128xbf16>
      %c1_86 = arith.constant 1 : index
      %c2944_87 = arith.constant 2944 : index
      %178 = vector.load %arg17[%c1_86, %c2944_87] : memref<8x4096xbf16, #tpu.memory_space<vmem>>, vector<1x128xbf16>
      tpu.vector_store %arg17[%c1_86, %c2944_87], %177 {strides = array<i32>} : memref<8x4096xbf16, #tpu.memory_space<vmem>>, vector<1x128xbf16>,
      %179 = vector.extract_strided_slice %8 {offsets = [24, 128], sizes = [1, 128], strides = [1, 1]} : vector<32x256xf32> to vector<1x128xf32>
      %180 = arith.truncf %179 : vector<1x128xf32> to vector<1x128xbf16>
      %c1_88 = arith.constant 1 : index
      %c3072_89 = arith.constant 3072 : index
      %181 = vector.load %arg17[%c1_88, %c3072_89] : memref<8x4096xbf16, #tpu.memory_space<vmem>>, vector<1x128xbf16>
      tpu.vector_store %arg17[%c1_88, %c3072_89], %180 {strides = array<i32>} : memref<8x4096xbf16, #tpu.memory_space<vmem>>, vector<1x128xbf16>,
      %182 = vector.extract_strided_slice %8 {offsets = [25, 128], sizes = [1, 128], strides = [1, 1]} : vector<32x256xf32> to vector<1x128xf32>
      %183 = arith.truncf %182 : vector<1x128xf32> to vector<1x128xbf16>
      %c1_90 = arith.constant 1 : index
      %c3200_91 = arith.constant 3200 : index
      %184 = vector.load %arg17[%c1_90, %c3200_91] : memref<8x4096xbf16, #tpu.memory_space<vmem>>, vector<1x128xbf16>
      tpu.vector_store %arg17[%c1_90, %c3200_91], %183 {strides = array<i32>} : memref<8x4096xbf16, #tpu.memory_space<vmem>>, vector<1x128xbf16>,
      %185 = vector.extract_strided_slice %8 {offsets = [26, 128], sizes = [1, 128], strides = [1, 1]} : vector<32x256xf32> to vector<1x128xf32>
      %186 = arith.truncf %185 : vector<1x128xf32> to vector<1x128xbf16>
      %c1_92 = arith.constant 1 : index
      %c3328_93 = arith.constant 3328 : index
      %187 = vector.load %arg17[%c1_92, %c3328_93] : memref<8x4096xbf16, #tpu.memory_space<vmem>>, vector<1x128xbf16>
      tpu.vector_store %arg17[%c1_92, %c3328_93], %186 {strides = array<i32>} : memref<8x4096xbf16, #tpu.memory_space<vmem>>, vector<1x128xbf16>,
      %188 = vector.extract_strided_slice %8 {offsets = [27, 128], sizes = [1, 128], strides = [1, 1]} : vector<32x256xf32> to vector<1x128xf32>
      %189 = arith.truncf %188 : vector<1x128xf32> to vector<1x128xbf16>
      %c1_94 = arith.constant 1 : index
      %c3456_95 = arith.constant 3456 : index
      %190 = vector.load %arg17[%c1_94, %c3456_95] : memref<8x4096xbf16, #tpu.memory_space<vmem>>, vector<1x128xbf16>
      tpu.vector_store %arg17[%c1_94, %c3456_95], %189 {strides = array<i32>} : memref<8x4096xbf16, #tpu.memory_space<vmem>>, vector<1x128xbf16>,
      %191 = vector.extract_strided_slice %8 {offsets = [28, 128], sizes = [1, 128], strides = [1, 1]} : vector<32x256xf32> to vector<1x128xf32>
      %192 = arith.truncf %191 : vector<1x128xf32> to vector<1x128xbf16>
      %c1_96 = arith.constant 1 : index
      %c3584_97 = arith.constant 3584 : index
      %193 = vector.load %arg17[%c1_96, %c3584_97] : memref<8x4096xbf16, #tpu.memory_space<vmem>>, vector<1x128xbf16>
      tpu.vector_store %arg17[%c1_96, %c3584_97], %192 {strides = array<i32>} : memref<8x4096xbf16, #tpu.memory_space<vmem>>, vector<1x128xbf16>,
      %194 = vector.extract_strided_slice %8 {offsets = [29, 128], sizes = [1, 128], strides = [1, 1]} : vector<32x256xf32> to vector<1x128xf32>
      %195 = arith.truncf %194 : vector<1x128xf32> to vector<1x128xbf16>
      %c1_98 = arith.constant 1 : index
      %c3712_99 = arith.constant 3712 : index
      %196 = vector.load %arg17[%c1_98, %c3712_99] : memref<8x4096xbf16, #tpu.memory_space<vmem>>, vector<1x128xbf16>
      tpu.vector_store %arg17[%c1_98, %c3712_99], %195 {strides = array<i32>} : memref<8x4096xbf16, #tpu.memory_space<vmem>>, vector<1x128xbf16>,
      %197 = vector.extract_strided_slice %8 {offsets = [30, 128], sizes = [1, 128], strides = [1, 1]} : vector<32x256xf32> to vector<1x128xf32>
      %198 = arith.truncf %197 : vector<1x128xf32> to vector<1x128xbf16>
      %c1_100 = arith.constant 1 : index
      %c3840_101 = arith.constant 3840 : index
      %199 = vector.load %arg17[%c1_100, %c3840_101] : memref<8x4096xbf16, #tpu.memory_space<vmem>>, vector<1x128xbf16>
      tpu.vector_store %arg17[%c1_100, %c3840_101], %198 {strides = array<i32>} : memref<8x4096xbf16, #tpu.memory_space<vmem>>, vector<1x128xbf16>,
      %200 = vector.extract_strided_slice %8 {offsets = [31, 128], sizes = [1, 128], strides = [1, 1]} : vector<32x256xf32> to vector<1x128xf32>
      %201 = arith.truncf %200 : vector<1x128xf32> to vector<1x128xbf16>
      %c1_102 = arith.constant 1 : index
      %c3968_103 = arith.constant 3968 : index
      %202 = vector.load %arg17[%c1_102, %c3968_103] : memref<8x4096xbf16, #tpu.memory_space<vmem>>, vector<1x128xbf16>
      tpu.vector_store %arg17[%c1_102, %c3968_103], %201 {strides = array<i32>} : memref<8x4096xbf16, #tpu.memory_space<vmem>>, vector<1x128xbf16>,
      %c0_104 = arith.constant 0 : index
      %c0_105 = arith.constant 0 : index
      %203 = vector.load %arg17[%c0_104, %c0_105] : memref<8x4096xbf16, #tpu.memory_space<vmem>>, vector<8x4096xbf16>
      %c0_106 = arith.constant 0 : index
      %c0_107 = arith.constant 0 : index
      %204 = vector.load %arg3[%c0_106, %c0_107] : memref<4096x128xbf16, #tpu.memory_space<vmem>>, vector<4096x128xbf16>
      %cst_108 = arith.constant dense<0.000000e+00> : vector<8x128xf32>
      %205 = tpu.matmul %203, %204, %cst_108 {dimension_numbers = #tpu.dot_dimension_numbers<[1], [0], [0], [1], [0, 0, 1, 1], [], []>} : vector<8x4096xbf16>, vector<4096x128xbf16>, vector<8x128xf32> -> vector<8x128xf32>
      %c0_109 = arith.constant 0 : index
      %c0_110 = arith.constant 0 : index
      %206 = vector.load %arg4[%c0_109, %c0_110] : memref<1x128xf32, #tpu.memory_space<vmem>>, vector<1x128xf32>
      %207 = vector.broadcast %206 : vector<1x128xf32> to vector<8x128xf32>
      %208 = arith.addf %205, %207 : vector<8x128xf32>
      %c0_111 = arith.constant 0 : index
      %c0_112 = arith.constant 0 : index
      %c0_113 = arith.constant 0 : index
      %209 = vector.load %arg16[%c0_111, %c0_112, %c0_113] : memref<1x8x128xf32, #tpu.memory_space<vmem>>, vector<1x8x128xf32>
      %210 = vector.shape_cast %209 : vector<1x8x128xf32> to vector<8x128xf32>
      %211 = vector.shape_cast %208 : vector<8x128xf32> to vector<1x8x128xf32>
      tpu.vector_store %arg16[%c0_111, %c0_112, %c0_113], %211 {strides = array<i32>} : memref<1x8x128xf32, #tpu.memory_space<vmem>>, vector<1x8x128xf32>,
    } else {
    }
    %c1_i32 = arith.constant 1 : i32
    %3 = arith.cmpi eq, %arg0, %c1_i32 : i32
    %4 = arith.extui %3 : i1 to i32
    %c0_i32_1 = arith.constant 0 : i32
    %5 = arith.cmpi ne, %4, %c0_i32_1 : i32
    scf.if %5 {
      %c0 = arith.constant 0 : index
      %c0_2 = arith.constant 0 : index
      %6 = vector.load %arg5[%c0, %c0_2] : memref<16x128xbf16, #tpu.memory_space<vmem>>, vector<16x128xbf16>
      %c0_3 = arith.constant 0 : index
      %c0_4 = arith.constant 0 : index
      %c0_5 = arith.constant 0 : index
      %7 = vector.load %arg6[%c0_3, %c0_4, %c0_5] : memref<2x16x16xbf16, #tpu.memory_space<vmem>>, vector<1x16x16xbf16>
      %8 = vector.shape_cast %7 : vector<1x16x16xbf16> to vector<16x16xbf16>
      %c0_6 = arith.constant 0 : index
      %c0_7 = arith.constant 0 : index
      %c0_8 = arith.constant 0 : index
      %9 = vector.load %arg7[%c0_6, %c0_7, %c0_8] : memref<2x128x128xbf16, #tpu.memory_space<vmem>>, vector<1x128x128xbf16>
      %10 = vector.shape_cast %9 : vector<1x128x128xbf16> to vector<128x128xbf16>
      %c0_9 = arith.constant 0 : index
      %c0_10 = arith.constant 0 : index
      %c0_11 = arith.constant 0 : index
      %11 = vector.load %arg8[%c0_9, %c0_10, %c0_11] : memref<2x2x128xf32, #tpu.memory_space<vmem>>, vector<1x2x128xf32>
      %12 = vector.shape_cast %11 : vector<1x2x128xf32> to vector<2x128xf32>
      %cst = arith.constant dense<0.000000e+00> : vector<16x128xf32>
      %13 = tpu.matmul %6, %10, %cst {dimension_numbers = #tpu.dot_dimension_numbers<[1], [0], [0], [1], [0, 0, 1, 1], [], []>} : vector<16x128xbf16>, vector<128x128xbf16>, vector<16x128xf32> -> vector<16x128xf32>
      %14 = arith.truncf %13 : vector<16x128xf32> to vector<16x128xbf16>
      %cst_12 = arith.constant dense<0.000000e+00> : vector<16x128xf32>
      %15 = tpu.matmul %8, %14, %cst_12 {dimension_numbers = #tpu.dot_dimension_numbers<[1], [0], [0], [1], [0, 0, 1, 1], [], []>} : vector<16x16xbf16>, vector<16x128xbf16>, vector<16x128xf32> -> vector<16x128xf32>
      %16 = vector.extract_strided_slice %12 {offsets = [0, 0], sizes = [1, 128], strides = [1, 1]} : vector<2x128xf32> to vector<1x128xf32>
      %17 = vector.broadcast %16 : vector<1x128xf32> to vector<16x128xf32>
      %18 = arith.mulf %15, %17 : vector<16x128xf32>
      %19 = vector.extract_strided_slice %12 {offsets = [1, 0], sizes = [1, 128], strides = [1, 1]} : vector<2x128xf32> to vector<1x128xf32>
      %20 = vector.broadcast %19 : vector<1x128xf32> to vector<16x128xf32>
      %21 = arith.addf %18, %20 : vector<16x128xf32>
      %cst_13 = arith.constant 0.000000e+00 : f32
      %22 = vector.broadcast %cst_13 : f32 to vector<16x128xf32>
      %23 = arith.maximumf %21, %22 : vector<16x128xf32>
      %24 = arith.truncf %23 : vector<16x128xf32> to vector<16x128xbf16>
      %c1 = arith.constant 1 : index
      %c0_14 = arith.constant 0 : index
      %c0_15 = arith.constant 0 : index
      %25 = vector.load %arg6[%c1, %c0_14, %c0_15] : memref<2x16x16xbf16, #tpu.memory_space<vmem>>, vector<1x16x16xbf16>
      %26 = vector.shape_cast %25 : vector<1x16x16xbf16> to vector<16x16xbf16>
      %c1_16 = arith.constant 1 : index
      %c0_17 = arith.constant 0 : index
      %c0_18 = arith.constant 0 : index
      %27 = vector.load %arg7[%c1_16, %c0_17, %c0_18] : memref<2x128x128xbf16, #tpu.memory_space<vmem>>, vector<1x128x128xbf16>
      %28 = vector.shape_cast %27 : vector<1x128x128xbf16> to vector<128x128xbf16>
      %c1_19 = arith.constant 1 : index
      %c0_20 = arith.constant 0 : index
      %c0_21 = arith.constant 0 : index
      %29 = vector.load %arg8[%c1_19, %c0_20, %c0_21] : memref<2x2x128xf32, #tpu.memory_space<vmem>>, vector<1x2x128xf32>
      %30 = vector.shape_cast %29 : vector<1x2x128xf32> to vector<2x128xf32>
      %cst_22 = arith.constant dense<0.000000e+00> : vector<16x128xf32>
      %31 = tpu.matmul %24, %28, %cst_22 {dimension_numbers = #tpu.dot_dimension_numbers<[1], [0], [0], [1], [0, 0, 1, 1], [], []>} : vector<16x128xbf16>, vector<128x128xbf16>, vector<16x128xf32> -> vector<16x128xf32>
      %32 = arith.truncf %31 : vector<16x128xf32> to vector<16x128xbf16>
      %cst_23 = arith.constant dense<0.000000e+00> : vector<16x128xf32>
      %33 = tpu.matmul %26, %32, %cst_23 {dimension_numbers = #tpu.dot_dimension_numbers<[1], [0], [0], [1], [0, 0, 1, 1], [], []>} : vector<16x16xbf16>, vector<16x128xbf16>, vector<16x128xf32> -> vector<16x128xf32>
      %34 = vector.extract_strided_slice %30 {offsets = [0, 0], sizes = [1, 128], strides = [1, 1]} : vector<2x128xf32> to vector<1x128xf32>
      %35 = vector.broadcast %34 : vector<1x128xf32> to vector<16x128xf32>
      %36 = arith.mulf %33, %35 : vector<16x128xf32>
      %37 = vector.extract_strided_slice %30 {offsets = [1, 0], sizes = [1, 128], strides = [1, 1]} : vector<2x128xf32> to vector<1x128xf32>
      %38 = vector.broadcast %37 : vector<1x128xf32> to vector<16x128xf32>
      %39 = arith.addf %36, %38 : vector<16x128xf32>
      %cst_24 = arith.constant 0.000000e+00 : f32
      %40 = vector.broadcast %cst_24 : f32 to vector<16x128xf32>
      %41 = arith.maximumf %39, %40 : vector<16x128xf32>
      %42 = arith.truncf %41 : vector<16x128xf32> to vector<16x128xbf16>
      %c1_25 = arith.constant 1 : index
      %c0_26 = arith.constant 0 : index
      %c0_27 = arith.constant 0 : index
      %43 = vector.load %arg6[%c1_25, %c0_26, %c0_27] : memref<2x16x16xbf16, #tpu.memory_space<vmem>>, vector<1x16x16xbf16>
      %44 = vector.shape_cast %43 : vector<1x16x16xbf16> to vector<16x16xbf16>
      %c0_28 = arith.constant 0 : index
      %c0_29 = arith.constant 0 : index
      %45 = vector.load %arg9[%c0_28, %c0_29] : memref<128x256xbf16, #tpu.memory_space<vmem>>, vector<128x256xbf16>
      %c0_30 = arith.constant 0 : index
      %c0_31 = arith.constant 0 : index
      %46 = vector.load %arg10[%c0_30, %c0_31] : memref<2x256xf32, #tpu.memory_space<vmem>>, vector<2x256xf32>
      %cst_32 = arith.constant dense<0.000000e+00> : vector<16x256xf32>
      %47 = tpu.matmul %42, %45, %cst_32 {dimension_numbers = #tpu.dot_dimension_numbers<[1], [0], [0], [1], [0, 0, 1, 1], [], []>} : vector<16x128xbf16>, vector<128x256xbf16>, vector<16x256xf32> -> vector<16x256xf32>
      %48 = arith.truncf %47 : vector<16x256xf32> to vector<16x256xbf16>
      %cst_33 = arith.constant dense<0.000000e+00> : vector<16x256xf32>
      %49 = tpu.matmul %44, %48, %cst_33 {dimension_numbers = #tpu.dot_dimension_numbers<[1], [0], [0], [1], [0, 0, 1, 1], [], []>} : vector<16x16xbf16>, vector<16x256xbf16>, vector<16x256xf32> -> vector<16x256xf32>
      %50 = vector.extract_strided_slice %46 {offsets = [0, 0], sizes = [1, 256], strides = [1, 1]} : vector<2x256xf32> to vector<1x256xf32>
      %51 = vector.broadcast %50 : vector<1x256xf32> to vector<16x256xf32>
      %52 = arith.mulf %49, %51 : vector<16x256xf32>
      %53 = vector.extract_strided_slice %46 {offsets = [1, 0], sizes = [1, 256], strides = [1, 1]} : vector<2x256xf32> to vector<1x256xf32>
      %54 = vector.broadcast %53 : vector<1x256xf32> to vector<16x256xf32>
      %55 = arith.addf %52, %54 : vector<16x256xf32>
      %cst_34 = arith.constant 0.000000e+00 : f32
      %56 = vector.broadcast %cst_34 : f32 to vector<16x256xf32>
      %57 = arith.maximumf %55, %56 : vector<16x256xf32>
      %58 = arith.truncf %57 : vector<16x256xf32> to vector<16x256xbf16>
      %c0_35 = arith.constant 0 : index
      %c0_36 = arith.constant 0 : index
      %59 = vector.load %arg11[%c0_35, %c0_36] : memref<8x16xbf16, #tpu.memory_space<vmem>>, vector<8x16xbf16>
      %cst_37 = arith.constant dense<0.000000e+00> : vector<8x256xf32>
      %60 = tpu.matmul %59, %58, %cst_37 {dimension_numbers = #tpu.dot_dimension_numbers<[1], [0], [0], [1], [0, 0, 1, 1], [], []>} : vector<8x16xbf16>, vector<16x256xbf16>, vector<8x256xf32> -> vector<8x256xf32>
      %61 = arith.truncf %60 : vector<8x256xf32> to vector<8x256xbf16>
      %c0_38 = arith.constant 0 : index
      %c0_39 = arith.constant 0 : index
      %62 = vector.load %arg12[%c0_38, %c0_39] : memref<256x1024xbf16, #tpu.memory_space<vmem>>, vector<256x1024xbf16>
      %cst_40 = arith.constant dense<0.000000e+00> : vector<8x1024xf32>
      %63 = tpu.matmul %61, %62, %cst_40 {dimension_numbers = #tpu.dot_dimension_numbers<[1], [0], [0], [1], [0, 0, 1, 1], [], []>} : vector<8x256xbf16>, vector<256x1024xbf16>, vector<8x1024xf32> -> vector<8x1024xf32>
      %c0_41 = arith.constant 0 : index
      %c0_42 = arith.constant 0 : index
      %64 = vector.load %arg13[%c0_41, %c0_42] : memref<1x1024xf32, #tpu.memory_space<vmem>>, vector<1x1024xf32>
      %65 = vector.broadcast %64 : vector<1x1024xf32> to vector<8x1024xf32>
      %66 = arith.addf %63, %65 : vector<8x1024xf32>
      %cst_43 = arith.constant 0.000000e+00 : f32
      %67 = vector.broadcast %cst_43 : f32 to vector<8x1024xf32>
      %68 = arith.maximumf %66, %67 : vector<8x1024xf32>
      %69 = arith.truncf %68 : vector<8x1024xf32> to vector<8x1024xbf16>
      %c0_44 = arith.constant 0 : index
      %c0_45 = arith.constant 0 : index
      %70 = vector.load %arg14[%c0_44, %c0_45] : memref<1024x128xbf16, #tpu.memory_space<vmem>>, vector<1024x128xbf16>
      %cst_46 = arith.constant dense<0.000000e+00> : vector<8x128xf32>
      %71 = tpu.matmul %69, %70, %cst_46 {dimension_numbers = #tpu.dot_dimension_numbers<[1], [0], [0], [1], [0, 0, 1, 1], [], []>} : vector<8x1024xbf16>, vector<1024x128xbf16>, vector<8x128xf32> -> vector<8x128xf32>
      %c0_47 = arith.constant 0 : index
      %c0_48 = arith.constant 0 : index
      %72 = vector.load %arg15[%c0_47, %c0_48] : memref<1x128xf32, #tpu.memory_space<vmem>>, vector<1x128xf32>
      %73 = vector.broadcast %72 : vector<1x128xf32> to vector<8x128xf32>
      %74 = arith.addf %71, %73 : vector<8x128xf32>
      %c0_49 = arith.constant 0 : index
      %c0_50 = arith.constant 0 : index
      %c0_51 = arith.constant 0 : index
      %75 = vector.load %arg16[%c0_49, %c0_50, %c0_51] : memref<1x8x128xf32, #tpu.memory_space<vmem>>, vector<1x8x128xf32>
      %76 = vector.shape_cast %75 : vector<1x8x128xf32> to vector<8x128xf32>
      %77 = vector.shape_cast %74 : vector<8x128xf32> to vector<1x8x128xf32>
      tpu.vector_store %arg16[%c0_49, %c0_50, %c0_51], %77 {strides = array<i32>} : memref<1x8x128xf32, #tpu.memory_space<vmem>>, vector<1x8x128xf32>,
    } else {
    }
    return
  }
  func.func @transform_0(%arg0: i32) -> (i32, i32) {
    %c0_i32 = arith.constant 0 : i32
    %c0_i32_0 = arith.constant 0 : i32
    %c0_i32_1 = arith.constant 0 : i32
    return %c0_i32, %c0_i32_0 : i32, i32
  }
  func.func @transform_1(%arg0: i32) -> (i32, i32) {
    %c0_i32 = arith.constant 0 : i32
    %c0_i32_0 = arith.constant 0 : i32
    %c0_i32_1 = arith.constant 0 : i32
    return %c0_i32, %c0_i32_0 : i32, i32
  }
  func.func @transform_2(%arg0: i32) -> (i32, i32) {
    %c0_i32 = arith.constant 0 : i32
    %c0_i32_0 = arith.constant 0 : i32
    %c0_i32_1 = arith.constant 0 : i32
    return %c0_i32, %c0_i32_0 : i32, i32
  }
  func.func @transform_3(%arg0: i32) -> (i32, i32) {
    %c0_i32 = arith.constant 0 : i32
    %c0_i32_0 = arith.constant 0 : i32
    %c0_i32_1 = arith.constant 0 : i32
    return %c0_i32, %c0_i32_0 : i32, i32
  }
  func.func @transform_4(%arg0: i32) -> (i32, i32) {
    %c0_i32 = arith.constant 0 : i32
    %c0_i32_0 = arith.constant 0 : i32
    %c0_i32_1 = arith.constant 0 : i32
    return %c0_i32, %c0_i32_0 : i32, i32
  }
  func.func @transform_5(%arg0: i32) -> (i32, i32, i32) {
    %c0_i32 = arith.constant 0 : i32
    %c0_i32_0 = arith.constant 0 : i32
    %c0_i32_1 = arith.constant 0 : i32
    %c0_i32_2 = arith.constant 0 : i32
    return %c0_i32, %c0_i32_0, %c0_i32_1 : i32, i32, i32
  }
  func.func @transform_6(%arg0: i32) -> (i32, i32, i32) {
    %c0_i32 = arith.constant 0 : i32
    %c0_i32_0 = arith.constant 0 : i32
    %c0_i32_1 = arith.constant 0 : i32
    %c0_i32_2 = arith.constant 0 : i32
    return %c0_i32, %c0_i32_0, %c0_i32_1 : i32, i32, i32
  }
  func.func @transform_7(%arg0: i32) -> (i32, i32, i32) {
    %c0_i32 = arith.constant 0 : i32
    %c0_i32_0 = arith.constant 0 : i32
    %c0_i32_1 = arith.constant 0 : i32
    %c0_i32_2 = arith.constant 0 : i32
    return %c0_i32, %c0_i32_0, %c0_i32_1 : i32, i32, i32
  }
  func.func @transform_8(%arg0: i32) -> (i32, i32) {
    %c0_i32 = arith.constant 0 : i32
    %c0_i32_0 = arith.constant 0 : i32
    %c0_i32_1 = arith.constant 0 : i32
    return %c0_i32, %c0_i32_0 : i32, i32
  }
  func.func @transform_9(%arg0: i32) -> (i32, i32) {
    %c0_i32 = arith.constant 0 : i32
    %c0_i32_0 = arith.constant 0 : i32
    %c0_i32_1 = arith.constant 0 : i32
    return %c0_i32, %c0_i32_0 : i32, i32
  }
  func.func @transform_10(%arg0: i32) -> (i32, i32) {
    %c0_i32 = arith.constant 0 : i32
    %c0_i32_0 = arith.constant 0 : i32
    %c0_i32_1 = arith.constant 0 : i32
    return %c0_i32, %c0_i32_0 : i32, i32
  }
  func.func @transform_11(%arg0: i32) -> (i32, i32) {
    %c0_i32 = arith.constant 0 : i32
    %c0_i32_0 = arith.constant 0 : i32
    %c0_i32_1 = arith.constant 0 : i32
    return %c0_i32, %c0_i32_0 : i32, i32
  }
  func.func @transform_12(%arg0: i32) -> (i32, i32) {
    %c0_i32 = arith.constant 0 : i32
    %c0_i32_0 = arith.constant 0 : i32
    %c0_i32_1 = arith.constant 0 : i32
    return %c0_i32, %c0_i32_0 : i32, i32
  }
  func.func @transform_13(%arg0: i32) -> (i32, i32) {
    %c0_i32 = arith.constant 0 : i32
    %c0_i32_0 = arith.constant 0 : i32
    %c0_i32_1 = arith.constant 0 : i32
    return %c0_i32, %c0_i32_0 : i32, i32
  }
  func.func @transform_14(%arg0: i32) -> (i32, i32) {
    %c0_i32 = arith.constant 0 : i32
    %c0_i32_0 = arith.constant 0 : i32
    %c0_i32_1 = arith.constant 0 : i32
    return %c0_i32, %c0_i32_0 : i32, i32
  }
  func.func @transform_15(%arg0: i32) -> (i32, i32, i32) {
    %c0_i32 = arith.constant 0 : i32
    %c0_i32_0 = arith.constant 0 : i32
    %c0_i32_1 = arith.constant 0 : i32
    return %arg0, %c0_i32, %c0_i32_0 : i32, i32, i32
  }
}

</mosaic_0001>

<bundles_post_ra>
// kernel: tpu_custom_call.1
= control target key start
LH: loop header
LB: loop body
LE: loop exit
PB: predicated region body
PF: predicated region fallthrough
CT: control target
= control target key end

     0   :  { %s9861_s0 = inlined_call_operand.hbm [shape: bf16[512,256], index: 0, kind: input, shape index: {}]   ;;  %s9862_s1 = inlined_call_operand.hbm [shape: bf16[32,512], index: 1, kind: input, shape index: {}]   ;;  %s9863_s2 = inlined_call_operand.hbm [shape: bf16[4096,128], index: 2, kind: input, shape index: {}]   ;;  %s9864_s3 = inlined_call_operand.vmem [shape: f32[1,128], index: 3, kind: input, shape index: {}]   ;;  %s9865_s4 = inlined_call_operand.hbm [shape: bf16[16,128], index: 4, kind: input, shape index: {}]   ;;  %s9866_s5 = inlined_call_operand.vmem [shape: bf16[2,16,16], index: 5, kind: input, shape index: {}]   ;;  %s9867_s6 = inlined_call_operand.hbm [shape: bf16[2,128,128], index: 6, kind: input, shape index: {}]   ;;  %s9868_s7 = inlined_call_operand.hbm [shape: f32[2,2,128], index: 7, kind: input, shape index: {}]   ;;  %s9869_s8 = inlined_call_operand.hbm [shape: bf16[128,256], index: 8, kind: input, shape index: {}]   ;;  %s9870_s9 = inlined_call_operand.vmem [shape: f32[2,256], index: 9, kind: input, shape index: {}]   ;;  %s9871_s10 = inlined_call_operand.vmem [shape: bf16[8,16], index: 10, kind: input, shape index: {}]   ;;  %s9872_s11 = inlined_call_operand.hbm [shape: bf16[256,1024], index: 11, kind: input, shape index: {}]   ;;  %s9873_s12 = inlined_call_operand.vmem [shape: f32[1,1024], index: 12, kind: input, shape index: {}]   ;;  %s9874_s13 = inlined_call_operand.hbm [shape: bf16[1024,128], index: 13, kind: input, shape index: {}]   ;;  %s9875_s14 = inlined_call_operand.vmem [shape: f32[1,128], index: 14, kind: input, shape index: {}]   ;;  %s9876_s15 = inlined_call_operand.hbm [shape: f32[2,8,128], index: 15, kind: output, shape index: {}]  }
   0x1   :  { %9892 = sst [smem:[#allocation32_spill]] %s9870_s9 }
   0x2   :  { %9893 = sst [smem:[#allocation33_spill]] %s9871_s10 }
   0x3   :  { %9894 = sst [smem:[#allocation34_spill]] %s9873_s12 }
   0x4   :  { %9895 = sst [smem:[#allocation35_spill]] %s9875_s14 }
   0x5   :  { %9896 = sst [smem:[#allocation36_spill]] %s9876_s15 }
   0x6   :  { %20 = vsyncpa [#allocation4], 0 }
   0x7   :  { %21 = vsyncpa [#allocation7], 0 }
   0x8   :  { %22 = vsyncpa [#allocation10], 0 }
   0x9   :  { %23 = vsyncpa [#allocation13], 0 }
   0xa   :  { %24 = vsyncpa [#allocation16], 0 }
   0xb   :  { %25 = vsyncpa [#allocation5], 0 }
   0xc   :  { %27 = vsyncpa [#allocation5 + $0x1], 0  ;;  %s9162_s18 = smov 0   ;;  %s9164_s19 = smov 0  }
   0xd   :  { %s9166_s20 = smov 0   ;;  %s9168_s21 = smov 0  }
   0xe LB: > { %9897 = sst [smem:[#allocation25_spill]] %s9045_s18  ;;  %s9183_s22 = sadd.s32 4294967295, %s9057_s21   ;;  %s9057_s21 = sphi %s9168_s21, %s9938_s21   ;;  %s9053_s20 = sphi %s9166_s20, %s9940_s20   ;;  %s9049_s19 = sphi %s9164_s19, %s9942_s19   ;;  %s9045_s18 = sphi %s9162_s18, %s9941_s18  }
   0xf   : > { %9898 = sst [smem:[#allocation26_spill]] %s9053_s20  ;;  %s6864_s23 = sadd.s32 4294967294, %s9057_s21  }
  0x10   : > { %9899 = sst [smem:[#allocation27_spill]] %s9057_s21  ;;  %s9187_s24 = sadd.s32 1, %s9057_s21  }
  0x11   : > { %9900 = sst [smem:[#allocation28_spill]] %s9187_s24  ;;  %s355_s25 = sadd.s32 1, %s9053_s20 }
  0x12   : > { %s352_s26 = ssub.s32 %s9057_s21, %s9187_s24  ;;  %p365_p0 = scmp.ne.s32.totalorder %s9053_s20, %s9049_s19 }
  0x13   : > { %p353_p1 = scmp.eq.s32.totalorder %s352_s26, 0  ;;  %p366_p2 = scmp.eq.s32.totalorder %s9183_s22, 1 }
  0x14   : > { %p371_p3 = scmp.ne.s32.totalorder %s9049_s19, %s9045_s18  ;;  %p372_p4 = scmp.eq.s32.totalorder %s6864_s23, 1 }
  0x15   : > { %s9198_s27 = scalar_select %p353_p1, %s9053_s20, %s355_s25  }
  0x16   : > { %p9200_p5 = por %p366_p2, %p365_p0  ;;  %p9204_p6 = por %p372_p4, %p371_p3 }
  0x17   : > { %9901 = sst [smem:[#allocation29_spill]] %s9198_s27  ;;  %p6865_p7 = scmp.ge.s32.totalorder %s9057_s21, 1 }
  0x18   : > { %s9902_s28 = scalar_select %p9200_p5, 1, 0 }
  0x19   : > { %s9904_s29 = scalar_select %p9204_p6, 1, 0 }
  0x1a   : > { %9903 = sst [smem:[#allocation30_spill]] %s9902_s28  ;;  %p379_p8 = scmp.lt.s32.totalorder %s9057_s21, 3 }
  0x1b   : > { %9905 = sst [smem:[#allocation31_spill]] %s9904_s29  ;;  %p9884_p10 = scmp.eq.s32.totalorder %s9183_s22, 0 }
  0x1c   : > { %p9212_p11 = pnand %p6865_p7, %p379_p8  ;;  %s9059_s16 = smov [#allocation6]  }
  0x1d   : > { %s404_s17 = sshll.u32 %s9059_s16, 4  ;;  %s9060_s25 = smov [#allocation9]   ;;  %s405_s17 = int_to_ptr.vmem [resolvable:$true] %s404_s17 }
  0x1e   : > { %s9906_s30 = scalar_select %p9212_p11, 1, 0 }
  0x1f   : > { %p8115_p12 = pneg %p9212_p11  ;;  %s433_s26 = sshll.u32 %s9060_s25, 4  ;;  %s434_s26 = int_to_ptr.vmem [resolvable:$true] %s433_s26 }
  0x20   : > { %s8723_s24 = scalar_lea.hbm %s9862_s1, 1024 }
  0x21   : > { %p9220_p13 = pnand %p9884_p10, %p8115_p12  ;;  %p8724_p0 = scmp.ne.s32.totalorder %s9862_s1, %s8723_s24 }
  0x22   : > { %p8730_p4 = scmp.lt.u32.totalorder %s8723_s24, %s9862_s1 }
  0x23   : > { %p9232_p1 = pneg %p9220_p13 }
  0x25   : > { %p8726_p2 = pnand %p9232_p1, %p8724_p0 }
  0x27   : > { %p8727_p3 = pneg %p8726_p2 }
  0x29   : > { %p8732_p7 = pnand %p8730_p4, %p8727_p3 }
  0x2b   : > { %8735 = shalt.err (!%p8732_p7)
}
  0x2c   : > { %s8736_s20 = scalar_lea.vmem %s405_s17, 1024  ;;  %p8744_p10 = scmp.lt.s32.totalorder %s405_s17, %s405_s17 }
  0x2d   : > { %p8737_p8 = scmp.ne.s32.totalorder %s405_s17, %s8736_s20  ;;  %p8745_p6 = scmp.lt.s32.totalorder %s8736_s20, %s8736_s20 }
  0x2f   : > { %p8739_p12 = pnand %p8737_p8, %p9232_p1  ;;  %p8746_p5 = por %p8745_p6, %p8744_p10 }
  0x31   : > { %p8740_p9 = pneg %p8739_p12 }
  0x33   : > { %p8747_p11 = pnand %p8746_p5, %p8740_p9 }
  0x35   : > { %8750 = shalt.err (!%p8747_p11)
}
  0x36   : > { %s9061_s18 = smov 256   ;;  %s9062_s27 = smov 16  }
  0x37   : > { %8121 = dma.hbm_to_vmem [thread:$0]  (!%p9220_p13), %s9862_s1, 1024, %s405_s17, [#allocation7], %s9061_s18, %s9061_s18, %s9062_s27  }
  0x38   : > { %s9063_s24 = smov [#allocation12]   ;;  %s8751_s14 = scalar_lea.hbm %s9865_s4, 128 }
  0x39   : > { %s462_s29 = sshll.u32 %s9063_s24, 4  ;;  %p8752_p5 = scmp.ne.s32.totalorder %s9865_s4, %s8751_s14  ;;  %s463_s29 = int_to_ptr.vmem [resolvable:$true] %s462_s29 }
  0x3a   : > { %p8758_p10 = scmp.lt.u32.totalorder %s8751_s14, %s9865_s4 }
  0x3b   : > { %p8754_p6 = pnand %p8752_p5, %p9232_p1 }
  0x3d   : > { %p8755_p9 = pneg %p8754_p6 }
  0x3f   : > { %p8760_p11 = pnand %p8758_p10, %p8755_p9 }
  0x41   : > { %8763 = shalt.err (!%p8760_p11)
}
  0x42   : > { %s8764_s17 = scalar_lea.vmem %s434_s26, 128  ;;  %p8772_p4 = scmp.lt.s32.totalorder %s434_s26, %s434_s26 }
  0x43   : > { %p8765_p0 = scmp.ne.s32.totalorder %s434_s26, %s8764_s17  ;;  %p8773_p7 = scmp.lt.s32.totalorder %s8764_s17, %s8764_s17 }
  0x45   : > { %p8767_p2 = pnand %p8765_p0, %p9232_p1  ;;  %p8774_p8 = por %p8773_p7, %p8772_p4 }
  0x47   : > { %p8768_p3 = pneg %p8767_p2 }
  0x49   : > { %p8775_p12 = pnand %p8774_p8, %p8768_p3 }
  0x4b   : > { %8778 = shalt.err (!%p8775_p12)
}
  0x4c   : > { %s9889_s12 = smov 64   ;;  %s9065_s28 = smov 4  }
  0x4d   : > { %8127 = dma.hbm_to_vmem [thread:$0]  (!%p9220_p13), %s9865_s4, 128, %s434_s26, [#allocation10], %s9889_s12, %s9889_s12, %s9065_s28  }
  0x4e   : > { %s8779_s27 = scalar_lea.hbm %s9868_s7, 64 }
  0x4f   : > { %p8780_p5 = scmp.ne.s32.totalorder %s9868_s7, %s8779_s27  ;;  %p8786_p10 = scmp.lt.u32.totalorder %s8779_s27, %s9868_s7 }
  0x51   : > { %p8782_p6 = pnand %p8780_p5, %p9232_p1 }
  0x53   : > { %p8783_p9 = pneg %p8782_p6 }
  0x55   : > { %p8788_p11 = pnand %p8786_p10, %p8783_p9 }
  0x57   : > { %8791 = shalt.err (!%p8788_p11)
}
  0x58   : > { %s8792_s20 = scalar_lea.vmem %s463_s29, 64  ;;  %p8800_p4 = scmp.lt.s32.totalorder %s463_s29, %s463_s29 }
  0x59   : > { %p8793_p0 = scmp.ne.s32.totalorder %s463_s29, %s8792_s20  ;;  %p8801_p7 = scmp.lt.s32.totalorder %s8792_s20, %s8792_s20 }
  0x5b   : > { %p8795_p2 = pnand %p8793_p0, %p9232_p1  ;;  %p8802_p8 = por %p8801_p7, %p8800_p4 }
  0x5d   : > { %p8796_p3 = pneg %p8795_p2 }
  0x5f   : > { %p8803_p12 = pnand %p8802_p8, %p8796_p3 }
  0x61   : > { %8806 = shalt.err (!%p8803_p12)
}
  0x62   : > { %s9066_s26 = smov 32   ;;  %s9067_s17 = smov 2  }
  0x63   : > { %8133 = dma.hbm_to_vmem [thread:$0]  (!%p9220_p13), %s9868_s7, 64, %s463_s29, [#allocation13], %s9066_s26, %s9066_s26, %s9067_s17  }
  0x64   : > { %s9068_s14 = smov [#allocation15]   ;;  %s8807_s21 = scalar_lea.hbm %s9872_s11, 16384 }
  0x65   : > { %s494_s18 = sshll.u32 %s9068_s14, 4  ;;  %p8808_p5 = scmp.ne.s32.totalorder %s9872_s11, %s8807_s21  ;;  %s495_s18 = int_to_ptr.vmem [resolvable:$true] %s494_s18 }
  0x66   : > { %p8814_p10 = scmp.lt.u32.totalorder %s8807_s21, %s9872_s11 }
  0x67   : > { %p8810_p6 = pnand %p8808_p5, %p9232_p1 }
  0x69   : > { %p8811_p9 = pneg %p8810_p6 }
  0x6b   : > { %p8816_p11 = pnand %p8814_p10, %p8811_p9 }
  0x6d   : > { %8819 = shalt.err (!%p8816_p11)
}
  0x6e   : > { %s8820_s29 = scalar_lea.vmem %s495_s18, 16384  ;;  %p8828_p4 = scmp.lt.s32.totalorder %s495_s18, %s495_s18 }
  0x6f   : > { %p8821_p0 = scmp.ne.s32.totalorder %s495_s18, %s8820_s29  ;;  %p8829_p7 = scmp.lt.s32.totalorder %s8820_s29, %s8820_s29 }
  0x71   : > { %p8823_p2 = pnand %p8821_p0, %p9232_p1  ;;  %p8830_p8 = por %p8829_p7, %p8828_p4 }
  0x73   : > { %p8824_p3 = pneg %p8823_p2 }
  0x75   : > { %p8831_p12 = pnand %p8830_p8, %p8824_p3 }
  0x77   : > { %8834 = shalt.err (!%p8831_p12)
}
  0x78   : > { %s9069_s17 = smov 512   ;;  %s9070_s12 = smov [#allocation3]  }
  0x79   : > { %8139 = dma.hbm_to_vmem [thread:$0]  (!%p9220_p13), %s9872_s11, 16384, %s495_s18, [#allocation16], %s9069_s17, %s9069_s17, %s9066_s26  }
  0x7a   : > { %s391_s14 = sshll.u32 %s9070_s12, 4  ;;  %s8835_s21 = scalar_lea.hbm %s9861_s0, 8192  ;;  %s392_s14 = int_to_ptr.vmem [resolvable:$true] %s391_s14 }
  0x7b   : > { %p8836_p5 = scmp.ne.s32.totalorder %s9861_s0, %s8835_s21  ;;  %p8842_p10 = scmp.lt.u32.totalorder %s8835_s21, %s9861_s0 }
  0x7d   : > { %p8838_p6 = pnand %p8836_p5, %p9232_p1 }
  0x7f   : > { %p8839_p9 = pneg %p8838_p6 }
  0x81   : > { %p8844_p11 = pnand %p8842_p10, %p8839_p9 }
  0x83   : > { %8847 = shalt.err (!%p8844_p11)
}
  0x84   : > { %s8848_s26 = scalar_lea.vmem %s392_s14, 8192  ;;  %p8856_p4 = scmp.lt.s32.totalorder %s392_s14, %s392_s14 }
  0x85   : > { %p8849_p0 = scmp.ne.s32.totalorder %s392_s14, %s8848_s26  ;;  %p8857_p7 = scmp.lt.s32.totalorder %s8848_s26, %s8848_s26 }
  0x87   : > { %p8851_p2 = pnand %p8849_p0, %p9232_p1  ;;  %p8858_p8 = por %p8857_p7, %p8856_p4 }
  0x89   : > { %p8852_p3 = pneg %p8851_p2 }
  0x8b   : > { %p8859_p12 = pnand %p8858_p8, %p8852_p3 }
  0x8d   : > { %8862 = shalt.err (!%p8859_p12)
}
  0x8e   : > { %s9891_s18 = smov 128   ;;  %s9072_s17 = smov 8  }
  0x8f   : > { %8118 = dma.hbm_to_vmem [thread:$0]  (!%p9220_p13), %s9861_s0, 8192, %s392_s14, [#allocation4], %s9891_s18, %s9891_s18, %s9072_s17  }
  0x90   : > { %s9073_s12 = smov [#allocation8]   ;;  %s9074_s15 = smov [#allocation11]  }
  0x91   : > { %s417_s27 = sshll.u32 %s9073_s12, 4  ;;  %s449_s21 = sshll.u32 %s9074_s15, 4  ;;  %s418_s27 = int_to_ptr.vmem [resolvable:$true] %s417_s27  ;;  %s9326_s21 = int_to_ptr.vmem [resolvable:$true] %s449_s21 }
  0x92   : > { %s8863_s20 = scalar_lea.hbm %s9863_s2, 32768 }
  0x93   : > { %p8864_p5 = scmp.ne.s32.totalorder %s9863_s2, %s8863_s20  ;;  %p8870_p10 = scmp.lt.u32.totalorder %s8863_s20, %s9863_s2 }
  0x95   : > { %p8866_p6 = pnand %p8864_p5, %p9232_p1 }
  0x97   : > { %p8867_p9 = pneg %p8866_p6 }
  0x99   : > { %p8872_p11 = pnand %p8870_p10, %p8867_p9 }
  0x9b   : > { %8875 = shalt.err (!%p8872_p11)
}
  0x9c   : > { %s8876_s10 = scalar_lea.vmem %s418_s27, 32768  ;;  %p8884_p4 = scmp.lt.s32.totalorder %s418_s27, %s418_s27 }
  0x9d   : > { %p8877_p0 = scmp.ne.s32.totalorder %s418_s27, %s8876_s10  ;;  %p8885_p7 = scmp.lt.s32.totalorder %s8876_s10, %s8876_s10 }
  0x9f   : > { %p8879_p2 = pnand %p8877_p0, %p9232_p1  ;;  %p8886_p8 = por %p8885_p7, %p8884_p4 }
  0xa1   : > { %p8880_p3 = pneg %p8879_p2 }
  0xa3   : > { %p8887_p12 = pnand %p8886_p8, %p8880_p3 }
  0xa5   : > { %8890 = shalt.err (!%p8887_p12)
}
  0xa6   : > { %s9909_s12 = smov 64   ;;  %s8891_s29 = scalar_lea.hbm %s9867_s6, 2048 }
  0xa7   : > { %8124 = dma.hbm_to_vmem [thread:$0]  (!%p9220_p13), %s9863_s2, 32768, %s418_s27, [#allocation7], %s9909_s12, %s9909_s12, %s9065_s28  }
  0xa8   : > { %p8892_p5 = scmp.ne.s32.totalorder %s9867_s6, %s8891_s29  ;;  %p8898_p10 = scmp.lt.u32.totalorder %s8891_s29, %s9867_s6 }
  0xaa   : > { %p8894_p6 = pnand %p8892_p5, %p9232_p1 }
  0xac   : > { %p8895_p9 = pneg %p8894_p6 }
  0xae   : > { %p8900_p11 = pnand %p8898_p10, %p8895_p9 }
  0xb0   : > { %8903 = shalt.err (!%p8900_p11)
}
  0xb1   : > { %s8904_s27 = scalar_lea.vmem %s9326_s21, 2048  ;;  %p8912_p4 = scmp.lt.s32.totalorder %s9326_s21, %s9326_s21 }
  0xb2   : > { %p8905_p0 = scmp.ne.s32.totalorder %s9326_s21, %s8904_s27  ;;  %p8913_p7 = scmp.lt.s32.totalorder %s8904_s27, %s8904_s27 }
  0xb4   : > { %p8907_p2 = pnand %p8905_p0, %p9232_p1  ;;  %p8914_p8 = por %p8913_p7, %p8912_p4 }
  0xb6   : > { %p8908_p3 = pneg %p8907_p2 }
  0xb8   : > { %p8915_p12 = pnand %p8914_p8, %p8908_p3 }
  0xba   : > { %8918 = shalt.err (!%p8915_p12)
}
  0xbb   : > { %8130 = dma.hbm_to_vmem [thread:$0]  (!%p9220_p13), %s9867_s6, 2048, %s9326_s21, [#allocation10], %s9909_s12, %s9909_s12, %s9065_s28  }
  0xbc   : > { %s9075_s25 = smov [#allocation14]   ;;  %s9076_s29 = smov [#allocation17]  }
  0xbd   : > { %s475_s20 = sshll.u32 %s9075_s25, 4  ;;  %s510_s26 = sshll.u32 %s9076_s29, 4  ;;  %s476_s20 = int_to_ptr.vmem [resolvable:$true] %s475_s20  ;;  %s9375_s26 = int_to_ptr.vmem [resolvable:$true] %s510_s26 }
  0xbe   : > { %s8919_s10 = scalar_lea.hbm %s9869_s8, 2048 }
  0xbf   : > { %p8920_p5 = scmp.ne.s32.totalorder %s9869_s8, %s8919_s10  ;;  %p8926_p10 = scmp.lt.u32.totalorder %s8919_s10, %s9869_s8 }
  0xc1   : > { %p8922_p6 = pnand %p8920_p5, %p9232_p1 }
  0xc3   : > { %p8923_p9 = pneg %p8922_p6 }
  0xc5   : > { %p8928_p11 = pnand %p8926_p10, %p8923_p9 }
  0xc7   : > { %8931 = shalt.err (!%p8928_p11)
}
  0xc8   : > { %s8932_s24 = scalar_lea.vmem %s476_s20, 2048  ;;  %p8940_p4 = scmp.lt.s32.totalorder %s476_s20, %s476_s20 }
  0xc9   : > { %p8933_p0 = scmp.ne.s32.totalorder %s476_s20, %s8932_s24  ;;  %p8941_p7 = scmp.lt.s32.totalorder %s8932_s24, %s8932_s24 }
  0xcb   : > { %p8935_p2 = pnand %p8933_p0, %p9232_p1  ;;  %p8942_p8 = por %p8941_p7, %p8940_p4 }
  0xcd   : > { %p8936_p3 = pneg %p8935_p2 }
  0xcf   : > { %p8943_p12 = pnand %p8942_p8, %p8936_p3 }
  0xd1   : > { %8946 = shalt.err (!%p8943_p12)
}
  0xd2   : > { %s9910_s18 = smov 128   ;;  %s8947_s10 = scalar_lea.hbm %s9874_s13, 8192 }
  0xd3   : > { %8136 = dma.hbm_to_vmem [thread:$0]  (!%p9220_p13), %s9869_s8, 2048, %s476_s20, [#allocation13], %s9910_s18, %s9910_s18, %s9072_s17  }
  0xd4   : > { %p8948_p5 = scmp.ne.s32.totalorder %s9874_s13, %s8947_s10  ;;  %p8954_p10 = scmp.lt.u32.totalorder %s8947_s10, %s9874_s13 }
  0xd6   : > { %p8950_p6 = pnand %p8948_p5, %p9232_p1 }
  0xd8   : > { %p8951_p9 = pneg %p8950_p6 }
  0xda   : > { %p8956_p11 = pnand %p8954_p10, %p8951_p9 }
  0xdc   : > { %8959 = shalt.err (!%p8956_p11)
}
  0xdd   : > { %s8960_s17 = scalar_lea.vmem %s9375_s26, 8192  ;;  %p8968_p4 = scmp.lt.s32.totalorder %s9375_s26, %s9375_s26 }
  0xde   : > { %p8961_p0 = scmp.ne.s32.totalorder %s9375_s26, %s8960_s17  ;;  %p8969_p7 = scmp.lt.s32.totalorder %s8960_s17, %s8960_s17 }
  0xe0   : > { %p8963_p2 = pnand %p8961_p0, %p9232_p1  ;;  %p8970_p8 = por %p8969_p7, %p8968_p4 }
  0xe2   : > { %p8964_p3 = pneg %p8963_p2 }
  0xe4   : > { %p8971_p12 = pnand %p8970_p8, %p8964_p3 }
  0xe6   : > { %8974 = shalt.err (!%p8971_p12)
}
  0xe7   : > { %8142 = dma.hbm_to_vmem [thread:$0]  (!%p9220_p13), %s9874_s13, 8192, %s9375_s26, [#allocation16], %s9909_s12, %s9909_s12, %s9065_s28  }
  0xe8   : > { %p9911_p5 = scmp.ne.s32.totalorder %s9906_s30, 0 }
  0xe9   : > { %p9912_p1 = scmp.eq.s32.totalorder (!%p9911_p5), %s9183_s22, 0 }
  0xea   : > { %529 = sbr.rel (%p9911_p5) target bundleno = 3254 (0xcb6), region = 80 }
  0xf1   : > { %9020 = dma.done.wait (%p9912_p1), [#allocation4], 8192   ;;  %p9913_p6 = pmov %p9912_p1 }
  0xf2   : > { %p9914_p9 = pmov %p9912_p1 }
  0xf3   : > { %9022 = vsyncadd (%p9913_p6), [#allocation4], 4294959104 }
  0xf4   : > { %9024 = dma.done.wait (%p9914_p9), [#allocation7], 33792   ;;  %p9915_p10 = pmov %p9912_p1 }
  0xf5   : > { %p9916_p11 = pmov %p9912_p1 }
  0xf6   : > { %9026 = vsyncadd (%p9915_p10), [#allocation7], 4294933504 }
  0xf7   : > { %9028 = dma.done.wait (%p9916_p11), [#allocation10], 2176   ;;  %p9917_p13 = pmov %p9912_p1 }
  0xf8   : > { %p9918_p0 = pmov %p9912_p1 }
  0xf9   : > { %9030 = vsyncadd (%p9917_p13), [#allocation10], 4294965120 }
  0xfa   : > { %9032 = dma.done.wait (%p9918_p0), [#allocation13], 2112   ;;  %p9919_p2 = pmov %p9918_p0 }
  0xfb   : > { %p9920_p3 = pmov %p9918_p0 }
  0xfc   : > { %9034 = vsyncadd (%p9919_p2), [#allocation13], 4294965184 }
  0xfd   : > { %9036 = dma.done.wait (%p9920_p3), [#allocation16], 24576   ;;  %p9921_p4 = pmov %p9918_p0 }
  0xfe   : > { %s601_s30 = sand.u32 1, %s9049_s19   ;;  %p9922_p7 = scmp.ne.s32.totalorder %s9183_s22, 0 }
  0xff   : > { %9038 = vsyncadd (%p9921_p4), [#allocation16], 4294942720  ;;  %s6885_s23 = sshll.u32 %s601_s30, 3  ;;  %v8220_v0 = vld [vmem:[#allocation3 + $0x4] ss:$8 sps:$4 sm:$0xff] (!%p9922_p7)   ;;  %vm1164_vm0 = vcmask (!%p9922_p7), 1040384  }
 0x100   : > { %s9449_s16 = scalar_lea.vmem [#allocation18], %s6885_s23  ;;  %608 = sbr.rel (%p9922_p7) target bundleno = 1143 (0x477), region = 120  ;;  %v8222_v1 = vld [vmem:[#allocation3] ss:$8 sps:$4 sm:$0xff] (!%p9922_p7)   ;;  %1041 = vmatprep.subr.bf16.mxu0 (!%p9922_p7), %v8220_v0  ;;  %v8223_v2 = vld [vmem:[#allocation3 + $0x14] ss:$8 sps:$4 sm:$0xff] (!%p9922_p7)  }
 0x101   : > { %1042 = vmatpush1.bf16.msra.mxu0 (!%p9922_p7), %v8222_v1  ;;  %v8225_v3 = vld [vmem:[#allocation3 + $0x10] ss:$8 sps:$4 sm:$0xff] (!%p9922_p7)   ;;  %v8226_v4 = vld [vmem:[#allocation3 + $0x24] ss:$8 sps:$4 sm:$0xff] (!%p9922_p7)   ;;  %v8228_v5 = vld [vmem:[#allocation3 + $0x20] ss:$8 sps:$4 sm:$0xff] (!%p9922_p7)  }
 0x102   : > { %1043 = vmatprep.subr.bf16.mxu0 (!%p9922_p7), %v8223_v2  ;;  %v8229_v6 = vld [vmem:[#allocation3 + $0x34] ss:$8 sps:$4 sm:$0xff] (!%p9922_p7)   ;;  %v8231_v7 = vld [vmem:[#allocation3 + $0x30] ss:$8 sps:$4 sm:$0xff] (!%p9922_p7)   ;;  %v8232_v8 = vld [vmem:[#allocation3 + $0x44] ss:$8 sps:$4 sm:$0xff] (!%p9922_p7)  }
 0x103   : > { %v8234_v9 = vld [vmem:[#allocation3 + $0x40] ss:$8 sps:$4 sm:$0xff] (!%p9922_p7)   ;;  %v8235_v10 = vld [vmem:[#allocation3 + $0x54] ss:$8 sps:$4 sm:$0xff] (!%p9922_p7)   ;;  %v8237_v11 = vld [vmem:[#allocation3 + $0x50] ss:$8 sps:$4 sm:$0xff] (!%p9922_p7)  }
 0x104   : > { %v8238_v12 = vld [vmem:[#allocation3 + $0x64] ss:$8 sps:$4 sm:$0xff] (!%p9922_p7)   ;;  %v8240_v14 = vld [vmem:[#allocation3 + $0x60] ss:$8 sps:$4 sm:$0xff] (!%p9922_p7)   ;;  %v8241_v15 = vld [vmem:[#allocation3 + $0x74] ss:$8 sps:$4 sm:$0xff] (!%p9922_p7)  }
 0x105   : > { %1044 = vmatpush1.bf16.msra.mxu0 (!%p9922_p7), %v8225_v3  ;;  %v8270_v13 = vld [vmem:[#allocation6 + $0x4] ss:$16 sps:$4 sm:$0xff] (!%p9922_p7)   ;;  %v8243_v16 = vld [vmem:[#allocation3 + $0x70] ss:$8 sps:$4 sm:$0xff] (!%p9922_p7)   ;;  %v8246_v18 = vld [vmem:[#allocation3 + $0x80] ss:$8 sps:$4 sm:$0xff] (!%p9922_p7)  }
 0x106   : > { %1045 = vmatprep.subr.bf16.mxu0 (!%p9922_p7), %v8226_v4  ;;  %1073 = vmatprep.mubr.bf16.mxu0 (!%p9922_p7), %v8270_v13  ;;  %v8244_v17 = vld [vmem:[#allocation3 + $0x84] ss:$8 sps:$4 sm:$0xff] (!%p9922_p7)   ;;  %v8247_v19 = vld [vmem:[#allocation3 + $0x94] ss:$8 sps:$4 sm:$0xff] (!%p9922_p7)   ;;  %v8249_v20 = vld [vmem:[#allocation3 + $0x90] ss:$8 sps:$4 sm:$0xff] (!%p9922_p7)  }
 0x107   : > { %v8250_v21 = vld [vmem:[#allocation3 + $0xa4] ss:$8 sps:$4 sm:$0xff]   ;;  %v8252_v22 = vld [vmem:[#allocation3 + $0xa0] ss:$8 sps:$4 sm:$0xff]   ;;  %v8253_v23 = vld [vmem:[#allocation3 + $0xb4] ss:$8 sps:$4 sm:$0xff]  }
 0x108   : > { %v8255_v24 = vld [vmem:[#allocation3 + $0xb0] ss:$8 sps:$4 sm:$0xff]   ;;  %v8256_v25 = vld [vmem:[#allocation3 + $0xc4] ss:$8 sps:$4 sm:$0xff]   ;;  %v8258_v26 = vld [vmem:[#allocation3 + $0xc0] ss:$8 sps:$4 sm:$0xff]  }
 0x109   : > { %1046 = vmatpush1.bf16.msra.mxu0 %v8228_v5  ;;  %v8259_v27 = vld [vmem:[#allocation3 + $0xd4] ss:$8 sps:$4 sm:$0xff]   ;;  %v8328_v28 = vld [vmem:[#allocation8 + $0x40] sm:$0xff]   ;;  %v8261_v30 = vld [vmem:[#allocation3 + $0xd0] ss:$8 sps:$4 sm:$0xff]  }
 0x10a   : > { %1047 = vmatprep.subr.bf16.mxu0 %v8229_v6  ;;  %v8329_v29 = vld [vmem:[#allocation8] sm:$0xff]   ;;  %7555 = vmatprep.subr.bf16.mxu1 %v8328_v28  ;;  %v8332_v32 = vld [vmem:[#allocation8 + $0x48] sm:$0xff]   ;;  %v8265_v35 = vld [vmem:[#allocation3 + $0xf4] ss:$8 sps:$4 sm:$0xff]   ;;  %vm1165_vm1 = vsmask.f32 256 }
 0x10b   : > { %v8262_v31 = vld [vmem:[#allocation3 + $0xe4] ss:$8 sps:$4 sm:$0xff]   ;;  %7556 = vmatpush3.bf16.msra.mxu1 %v8329_v29  ;;  %v8264_v33 = vld [vmem:[#allocation3 + $0xe0] ss:$8 sps:$4 sm:$0xff]   ;;  %v8267_v36 = vld [vmem:[#allocation3 + $0xf0] ss:$8 sps:$4 sm:$0xff]  }
 0x10c   : > { %v8333_v34 = vld [vmem:[#allocation8 + $0x8] sm:$0xff]   ;;  %7557 = vmatprep.subr.bf16.mxu1 %v8332_v32  ;;  %v8268_v38 = vld [vmem:[#allocation6] ss:$16 sps:$4 sm:$0xff]   ;;  %v8313_v40 = vld [vmem:[#allocation6 + $0x24] ss:$16 sps:$4 sm:$0xff]  }
 0x10d   : > { %1048 = vmatpush1.bf16.msra.mxu0 %v8231_v7  ;;  %v8273_v37 = vld [vmem:[#allocation3 + $0x104] ss:$8 sps:$4 sm:$0xff]   ;;  %v8271_v39 = vld [vmem:[#allocation3 + $0x100] ss:$8 sps:$4 sm:$0xff]   ;;  %v8276_v41 = vld [vmem:[#allocation3 + $0x114] ss:$8 sps:$4 sm:$0xff]  }
 0x10e   : > { %1049 = vmatprep.subr.bf16.mxu0 %v8232_v8  ;;  %v8274_v42 = vld [vmem:[#allocation3 + $0x110] ss:$8 sps:$4 sm:$0xff]   ;;  %v8279_v43 = vld [vmem:[#allocation3 + $0x124] ss:$8 sps:$4 sm:$0xff]   ;;  %v8277_v45 = vld [vmem:[#allocation3 + $0x120] ss:$8 sps:$4 sm:$0xff]  }
 0x10f   : > { %7558 = vmatpush3.bf16.msra.mxu1 %v8333_v34  ;;  %v8315_v44 = vld [vmem:[#allocation6 + $0x20] ss:$16 sps:$4 sm:$0xff]   ;;  %v8324_v46 = vld [vmem:[#allocation6 + $0xc] ss:$16 sps:$4 sm:$0xff]   ;;  %vm9454_vm2 = vmand %vm1164_vm0, %vm1165_vm1  ;;  %vm1382_vm3 = vsmask.f32 7938 }
 0x110   : > { %v8282_v47 = vld [vmem:[#allocation3 + $0x134] ss:$8 sps:$4 sm:$0xff]   ;;  %v8280_v48 = vld [vmem:[#allocation3 + $0x130] ss:$8 sps:$4 sm:$0xff]   ;;  %v8285_v49 = vld [vmem:[#allocation3 + $0x144] ss:$8 sps:$4 sm:$0xff]  }
 0x111   : > { %1050 = vmatpush1.bf16.msra.mxu0 %v8234_v9  ;;  %v8283_v50 = vld [vmem:[#allocation3 + $0x140] ss:$8 sps:$4 sm:$0xff]   ;;  %v8288_v51 = vld [vmem:[#allocation3 + $0x154] ss:$8 sps:$4 sm:$0xff]   ;;  %v8286_v52 = vld [vmem:[#allocation3 + $0x150] ss:$8 sps:$4 sm:$0xff]  }
 0x112   : > { %1051 = vmatprep.subr.bf16.mxu0 %v8235_v10  ;;  %v8291_v53 = vld [vmem:[#allocation3 + $0x164] ss:$8 sps:$4 sm:$0xff]   ;;  %v8289_v54 = vld [vmem:[#allocation3 + $0x160] ss:$8 sps:$4 sm:$0xff]   ;;  %v8294_v55 = vld [vmem:[#allocation3 + $0x174] ss:$8 sps:$4 sm:$0xff]  }
 0x113   : > { %v8292_v56 = vld [vmem:[#allocation3 + $0x170] ss:$8 sps:$4 sm:$0xff]   ;;  %v8297_v57 = vld [vmem:[#allocation3 + $0x184] ss:$8 sps:$4 sm:$0xff]   ;;  %v8295_v58 = vld [vmem:[#allocation3 + $0x180] ss:$8 sps:$4 sm:$0xff]  }
 0x114   : > { %v8300_v59 = vld [vmem:[#allocation3 + $0x194] ss:$8 sps:$4 sm:$0xff]   ;;  %v8298_v60 = vld [vmem:[#allocation3 + $0x190] ss:$8 sps:$4 sm:$0xff]   ;;  %v8303_v61 = vld [vmem:[#allocation3 + $0x1a4] ss:$8 sps:$4 sm:$0xff]  }
 0x115   : > { %1052 = vmatpush1.bf16.msra.mxu0 %v8237_v11  ;;  %v8301_v62 = vld [vmem:[#allocation3 + $0x1a0] ss:$8 sps:$4 sm:$0xff]   ;;  %v8306_v63 = vld [vmem:[#allocation3 + $0x1b4] ss:$8 sps:$4 sm:$0xff]   ;;  %v8304_v0 = vld [vmem:[#allocation3 + $0x1b0] ss:$8 sps:$4 sm:$0xff]  }
 0x116   : > { %1053 = vmatprep.subr.bf16.mxu0 %v8238_v12  ;;  %v8309_v1 = vld [vmem:[#allocation3 + $0x1c4] ss:$8 sps:$4 sm:$0xff]   ;;  %v8307_v2 = vld [vmem:[#allocation3 + $0x1c0] ss:$8 sps:$4 sm:$0xff]   ;;  %v8312_v3 = vld [vmem:[#allocation3 + $0x1d4] ss:$8 sps:$4 sm:$0xff]  }
 0x117   : > { %v8310_v4 = vld [vmem:[#allocation3 + $0x1d0] ss:$8 sps:$4 sm:$0xff]   ;;  %v8318_v5 = vld [vmem:[#allocation3 + $0x1e4] ss:$8 sps:$4 sm:$0xff]   ;;  %v8316_v6 = vld [vmem:[#allocation3 + $0x1e0] ss:$8 sps:$4 sm:$0xff]  }
 0x118   : > { %v8321_v7 = vld [vmem:[#allocation3 + $0x1f4] ss:$8 sps:$4 sm:$0xff]   ;;  %v8319_v8 = vld [vmem:[#allocation3 + $0x1f0] ss:$8 sps:$4 sm:$0xff]   ;;  %v8330_v9 = vld [vmem:[#allocation8 + $0x240] sm:$0xff]  }
 0x119   : > { %1054 = vmatpush1.bf16.msra.mxu0 %v8240_v14  ;;  %v8322_v10 = vld [vmem:[#allocation6 + $0x8] ss:$16 sps:$4 sm:$0xff]   ;;  %v8325_v11 = vld [vmem:[#allocation6 + $0x2c] ss:$16 sps:$4 sm:$0xff]   ;;  %v8331_v12 = vld [vmem:[#allocation8 + $0x200] sm:$0xff]  }
 0x11a   : > { %1055 = vmatprep.subr.bf16.mxu0 %v8241_v15  ;;  %v8334_v13 = vld [vmem:[#allocation8 + $0x248] sm:$0xff]   ;;  %v9077_v15 = vmov 0   ;;  %v8347_v28 = vld [vmem:[#allocation8 + $0x220] sm:$0xff]   ;;  %v8353_v34 = vld [vmem:[#allocation8 + $0x30] sm:$0xff]  }
 0x11b   : > { %v8327_v14 = vld [vmem:[#allocation6 + $0x28] ss:$16 sps:$4 sm:$0xff]   ;;  %1147 = vst [vmem:[#allocation2] sm:$0xff] %v9077_v15  ;;  %1148 = vst [vmem:[#allocation2 + $0x8] sm:$0xff] %v9077_v15 }
 0x11c   : > { %1149 = vst [vmem:[#allocation2 + $0x10] sm:$0xff] %v9077_v15  ;;  %1150 = vst [vmem:[#allocation2 + $0x18] sm:$0xff] %v9077_v15  ;;  %v8348_v29 = vld [vmem:[#allocation8 + $0x68] sm:$0xff]  }
 0x11d   : > { %1056 = vmatpush1.bf16.msra.mxu0 %v8243_v16  ;;  %1151 = vst [vmem:[#allocation2 + $0x20] sm:$0xff] %v9077_v15  ;;  %1152 = vst [vmem:[#allocation2 + $0x28] sm:$0xff] %v9077_v15  ;;  %v8335_v16 = vld [vmem:[#allocation8 + $0x208] sm:$0xff]  }
 0x11e   : > { %1057 = vmatprep.subr.bf16.mxu0 %v8244_v17  ;;  %1153 = vst [vmem:[#allocation2 + $0x30] sm:$0xff] %v9077_v15  ;;  %1154 = vst [vmem:[#allocation2 + $0x38] sm:$0xff] %v9077_v15  ;;  %v8336_v17 = vld [vmem:[#allocation8 + $0x50] sm:$0xff]   ;;  %v8351_v32 = vld [vmem:[#allocation8 + $0x228] sm:$0xff]  }
 0x11f   : > { %1155 = vst [vmem:[#allocation2 + $0x40] sm:$0xff] %v9077_v15  ;;  %1156 = vst [vmem:[#allocation2 + $0x48] sm:$0xff] %v9077_v15  ;;  %7559 = vmatprep.subr.bf16.mxu1 %v8336_v17 }
 0x120   : > { %1157 = vst [vmem:[#allocation2 + $0x50] sm:$0xff] %v9077_v15  ;;  %1158 = vst [vmem:[#allocation2 + $0x58] sm:$0xff] %v9077_v15 }
 0x121   : > { %1058 = vmatpush1.bf16.msra.mxu0 %v8246_v18  ;;  %1159 = vst [vmem:[#allocation2 + $0x60] sm:$0xff] %v9077_v15  ;;  %1160 = vst [vmem:[#allocation2 + $0x68] sm:$0xff] %v9077_v15  ;;  %v8337_v18 = vld [vmem:[#allocation8 + $0x10] sm:$0xff]  }
 0x122   : > { %1059 = vmatprep.subr.bf16.mxu0 %v8247_v19  ;;  %1161 = vst [vmem:[#allocation2 + $0x70] sm:$0xff] %v9077_v15  ;;  %1162 = vst [vmem:[#allocation2 + $0x78] sm:$0xff] %v9077_v15  ;;  %7560 = vmatpush3.bf16.msra.mxu1 %v8337_v18  ;;  %v8338_v19 = vld [vmem:[#allocation8 + $0x250] sm:$0xff]  }
 0x123   : > { %vm9486_vm4 = vmand %vm1164_vm0, %vm1382_vm3 }
 0x125   : > { %1060 = vmatpush1.bf16.msra.mxu0 %v8249_v20  ;;  %v8339_v20 = vld [vmem:[#allocation8 + $0x210] sm:$0xff]  }
 0x126   : > { %1061 = vmatprep.subr.bf16.mxu0 %v8250_v21  ;;  %v8340_v21 = vld [vmem:[#allocation8 + $0x58] sm:$0xff]   ;;  %v1249_v17 = vld [vmem:[#allocation2 + $0x30] sm:$0x1] }
 0x127   : > { %7561 = vmatprep.subr.bf16.mxu1 %v8340_v21 }
 0x129   : > { %1062 = vmatpush1.bf16.msra.mxu0 %v8252_v22  ;;  %v8341_v22 = vld [vmem:[#allocation8 + $0x18] sm:$0xff]  }
 0x12a   : > { %1063 = vmatprep.subr.bf16.mxu0 %v8253_v23  ;;  %v8342_v23 = vld [vmem:[#allocation8 + $0x258] sm:$0xff]   ;;  %7562 = vmatpush3.bf16.msra.mxu1 %v8341_v22 }
 0x12d   : > { %1064 = vmatpush1.bf16.msra.mxu0 %v8255_v24  ;;  %v8343_v24 = vld [vmem:[#allocation8 + $0x218] sm:$0xff]  }
 0x12e   : > { %1065 = vmatprep.subr.bf16.mxu0 %v8256_v25  ;;  %v8344_v25 = vld [vmem:[#allocation8 + $0x60] sm:$0xff]  }
 0x12f   : > { %7563 = vmatprep.subr.bf16.mxu1 %v8344_v25  ;;  %v1261_v25 = vld [vmem:[#allocation2 + $0x38] sm:$0x1] }
 0x131   : > { %1066 = vmatpush1.bf16.msra.mxu0 %v8258_v26  ;;  %v8345_v26 = vld [vmem:[#allocation8 + $0x20] sm:$0xff]  }
 0x132   : > { %1067 = vmatprep.subr.bf16.mxu0 %v8259_v27  ;;  %7564 = vmatpush3.bf16.msra.mxu1 %v8345_v26  ;;  %v8346_v27 = vld [vmem:[#allocation8 + $0x260] sm:$0xff]  }
 0x133   : > { %7565 = vmatprep.subr.bf16.mxu1 %v8348_v29 }
 0x135   : > { %1068 = vmatpush1.bf16.msra.mxu0 %v8261_v30  ;;  %v8349_v30 = vld [vmem:[#allocation8 + $0x28] sm:$0xff]  }
 0x136   : > { %1069 = vmatprep.subr.bf16.mxu0 %v8262_v31  ;;  %v8350_v31 = vld [vmem:[#allocation8 + $0x268] sm:$0xff]   ;;  %7566 = vmatpush3.bf16.msra.mxu1 %v8349_v30 }
 0x139   : > { %1070 = vmatpush1.bf16.msra.mxu0 %v8264_v33  ;;  %v8352_v33 = vld [vmem:[#allocation8 + $0x70] sm:$0xff]  }
 0x13a   : > { %1071 = vmatprep.subr.bf16.mxu0 %v8265_v35  ;;  %7567 = vmatprep.subr.bf16.mxu1 %v8352_v33  ;;  %v8354_v35 = vld [vmem:[#allocation8 + $0x270] sm:$0xff]  }
 0x13b   : > { %7568 = vmatpush3.bf16.msra.mxu1 %v8353_v34 }
 0x13d   : > { %1072 = vmatpush1.bf16.msra.mxu0 %v8267_v36  ;;  %v8355_v36 = vld [vmem:[#allocation8 + $0x230] sm:$0xff]  }
 0x13e   : > { %1094 = vmatprep.subr.bf16.mxu0 %v8273_v37  ;;  %v8356_v37 = vld [vmem:[#allocation8 + $0x78] sm:$0xff]  }
 0x13f   : > { %7569 = vmatprep.subr.bf16.mxu1 %v8356_v37 }
 0x140   : > { %1074 = vmatmul.mubr.bf16.vlgmr.msra.gmra.mrb[0].mxu0 %v8268_v38  ;;  %v8357_v38 = vld [vmem:[#allocation8 + $0x38] sm:$0xff]  }
 0x141   : > { %1095 = vmatpush1.bf16.msra.mxu0 %v8271_v39  ;;  %1083 = vmatprep.mubr.bf16.mxu0 %v8313_v40  ;;  %v8358_v39 = vld [vmem:[#allocation8 + $0x278] sm:$0xff]  }
 0x142   : > { %1096 = vmatprep.subr.bf16.mxu0 %v8276_v41  ;;  %7570 = vmatpush3.bf16.msra.mxu1 %v8357_v38  ;;  %v8359_v40 = vld [vmem:[#allocation8 + $0x238] sm:$0xff]   ;;  %v8362_v41 = vld [vmem:[#allocation8 + $0xc0] sm:$0xff]  }
 0x143   : > { %7577 = vmatprep.subr.bf16.mxu1 %v8362_v41 }
 0x145   : > { %1097 = vmatpush1.bf16.msra.mxu0 %v8274_v42  ;;  %v8368_v42 = vld [vmem:[#allocation8 + $0x340] sm:$0xff]  }
 0x146   : > { %1098 = vmatprep.subr.bf16.mxu0 %v8279_v43 }
 0x148   : > { %1084 = vmatmul.mubr.bf16.gmra.mrb[4].mxu0 %v8315_v44  ;;  %v8369_v44 = vld [vmem:[#allocation8 + $0x300] sm:$0xff]  }
 0x149   : > { %1099 = vmatpush1.bf16.msra.mxu0 %v8277_v45  ;;  %1126 = vmatprep.mubr.bf16.mxu0 %v8324_v46  ;;  %v1167_v45 = vld [vmem:[#allocation2] sm:$0x1] }
 0x14a   : > { %1100 = vmatprep.subr.bf16.mxu0 %v8282_v47  ;;  %v1179_v47 = vld [vmem:[#allocation2 + $0x4] sm:$0x1] }
 0x14d   : > { %1101 = vmatpush1.bf16.msra.mxu0 %v8280_v48 }
 0x14e   : > { %1102 = vmatprep.subr.bf16.mxu0 %v8285_v49  ;;  %v1185_v49 = vld [vmem:[#allocation2 + $0x8] sm:$0x1] }
 0x151   : > { %1103 = vmatpush1.bf16.msra.mxu0 %v8283_v50  ;;  %v1197_v50 = vld [vmem:[#allocation2 + $0x10] sm:$0x1] }
 0x152   : > { %1104 = vmatprep.subr.bf16.mxu0 %v8288_v51 }
 0x155   : > { %1105 = vmatpush1.bf16.msra.mxu0 %v8286_v52 }
 0x156   : > { %1106 = vmatprep.subr.bf16.mxu0 %v8291_v53 }
 0x159   : > { %1107 = vmatpush1.bf16.msra.mxu0 %v8289_v54 }
 0x15a   : > { %1108 = vmatprep.subr.bf16.mxu0 %v8294_v55 }
 0x15d   : > { %1109 = vmatpush1.bf16.msra.mxu0 %v8292_v56 }
 0x15e   : > { %1110 = vmatprep.subr.bf16.mxu0 %v8297_v57  ;;  %v1209_v57 = vld [vmem:[#allocation2 + $0x18] sm:$0x1] }
 0x161   : > { %1111 = vmatpush1.bf16.msra.mxu0 %v8295_v58 }
 0x162   : > { %1112 = vmatprep.subr.bf16.mxu0 %v8300_v59  ;;  %v1191_v59 = vld [vmem:[#allocation2 + $0xc] sm:$0x1] }
 0x165   : > { %1113 = vmatpush1.bf16.msra.mxu0 %v8298_v60 }
 0x166   : > { %1114 = vmatprep.subr.bf16.mxu0 %v8303_v61 }
 0x169   : > { %1115 = vmatpush1.bf16.msra.mxu0 %v8301_v62 }
 0x16a   : > { %1116 = vmatprep.subr.bf16.mxu0 %v8306_v63 }
 0x16d   : > { %1117 = vmatpush1.bf16.msra.mxu0 %v8304_v0 }
 0x16e   : > { %1118 = vmatprep.subr.bf16.mxu0 %v8309_v1 }
 0x171   : > { %1119 = vmatpush1.bf16.msra.mxu0 %v8307_v2  ;;  %v1203_v2 = vld [vmem:[#allocation2 + $0x14] sm:$0x1] }
 0x172   : > { %1120 = vmatprep.subr.bf16.mxu0 %v8312_v3  ;;  %v1215_v3 = vld [vmem:[#allocation2 + $0x1c] sm:$0x1] }
 0x175   : > { %1121 = vmatpush1.bf16.msra.mxu0 %v8310_v4 }
 0x176   : > { %1122 = vmatprep.subr.bf16.mxu0 %v8318_v5 }
 0x179   : > { %1123 = vmatpush1.bf16.msra.mxu0 %v8316_v6 }
 0x17a   : > { %1124 = vmatprep.subr.bf16.mxu0 %v8321_v7  ;;  %v1219_v7 = vld [vmem:[#allocation2 + $0x20] sm:$0x1] }
 0x17d   : > { %1125 = vmatpush1.bf16.msra.mxu0 %v8319_v8 }
 0x17e   : > { %7643 = vmatprep.subr.bf16.mxu0 %v8330_v9 }
 0x180   : > { %1127 = vmatmul.mubr.bf16.vlgmr.msra.gmra.mrb[0].mxu0 %v8322_v10 }
 0x181   : > { %1136 = vmatprep.mubr.bf16.mxu0 %v8325_v11  ;;  %7644 = vmatpush3.bf16.msra.mxu0 %v8331_v12  ;;  %v1231_v12 = vld [vmem:[#allocation2 + $0x24] sm:$0x1] }
 0x182   : > { %7645 = vmatprep.subr.bf16.mxu0 %v8334_v13 }
 0x185   : > { %7646 = vmatpush3.bf16.msra.mxu0 %v8335_v16  ;;  %v1237_v16 = vld [vmem:[#allocation2 + $0x28] sm:$0x1] }
 0x186   : > { %7647 = vmatprep.subr.bf16.mxu0 %v8338_v19 }
 0x188   : > { %1137 = vmatmul.mubr.bf16.gmra.mrb[4].mxu0 %v8327_v14 }
 0x189   : > { %7648 = vmatpush3.bf16.msra.mxu0 %v8339_v20  ;;  %v8389_v20 = vld [vmem:[#allocation8 + $0xa8] sm:$0xff]  }
 0x18a   : > { %7649 = vmatprep.subr.bf16.mxu0 %v8342_v23 }
 0x18d   : > { %7650 = vmatpush3.bf16.msra.mxu0 %v8343_v24  ;;  %v1243_v24 = vld [vmem:[#allocation2 + $0x2c] sm:$0x1] }
 0x18e   : > { %7651 = vmatprep.subr.bf16.mxu0 %v8346_v27 }
 0x191   : > { %7652 = vmatpush3.bf16.msra.mxu0 %v8347_v28 }
 0x192   : > { %7653 = vmatprep.subr.bf16.mxu0 %v8350_v31 }
 0x195   : > { %7654 = vmatpush3.bf16.msra.mxu0 %v8351_v32  ;;  %v1271_v32 = vld [vmem:[#allocation2 + $0x40] sm:$0x1] }
 0x196   : > { %7655 = vmatprep.subr.bf16.mxu0 %v8354_v35 }
 0x199   : > { %7656 = vmatpush3.bf16.msra.mxu0 %v8355_v36 }
 0x19a   : > { %7657 = vmatprep.subr.bf16.mxu0 %v8358_v39 }
 0x19d   : > { %7658 = vmatpush3.bf16.msra.mxu0 %v8359_v40 }
 0x19e   : > { %7687 = vmatprep.subr.bf16.mxu0 %v8368_v42 }
 0x253   : > { %v1128_v43 = vpop.f32.mrb[0].mxu0 }
 0x254   : > { %v1163_v46 = vpack.c.bf16 %v1128_v43, %v1128_v43  ;;  %v1130_v48 = vpop.f32.mrb[1].mxu0 }
 0x255   : > { %v9458_v51 = vpack.c.bf16 %v1130_v48, %v1130_v48  ;;  %v1132_v52 = vpop.f32.mrb[2].mxu0 }
 0x256   : > { %v1168_v53 = vsel %vm9454_vm2, %v1163_v46, %v1167_v45  ;;  %v1174_v54 = vshrl.u32 %v1163_v46, 16  ;;  %v6961_v55 = vrot.slane %v1163_v46, 9  ;;  %v6963_v56 = vrot.slane %v1163_v46, 10  ;;  %v1134_v58 = vpop.f32.mrb[3].mxu0 }
 0x257   : > { %1169 = vst [vmem:[#allocation2] sm:$0x1] %v1168_v53  ;;  %v6965_v60 = vrot.slane %v1163_v46, 11  ;;  %v9463_v61 = vshll.u32 %v9458_v51, 16  ;;  %v6993_v10 = vrot.slane %v9458_v51, 9  ;;  %v6995_v11 = vrot.slane %v9458_v51, 10 }
 0x258   : > { %v1180_v62 = vsel %vm9454_vm2, %v1174_v54, %v1179_v47  ;;  %v1186_v63 = vsel %vm9454_vm2, %v6961_v55, %v1185_v49  ;;  %v6962_v0 = vrot.slane %v1174_v54, 9  ;;  %v1198_v1 = vsel %vm9454_vm2, %v6963_v56, %v1197_v50 }
 0x259   : > { %1187 = vst [vmem:[#allocation2 + $0x8] sm:$0x1] %v1186_v63  ;;  %1199 = vst [vmem:[#allocation2 + $0x10] sm:$0x1] %v1198_v1  ;;  %v6964_v4 = vrot.slane %v1174_v54, 10  ;;  %v1210_v5 = vsel %vm9454_vm2, %v6965_v60, %v1209_v57  ;;  %v6966_v6 = vrot.slane %v1174_v54, 11  ;;  %v1218_v15 = vpack.c.bf16 %v1132_v52, %v1132_v52 }
 0x25a   : > { %1181 = vst [vmem:[#allocation2 + $0x4] sm:$0x1] %v1180_v62  ;;  %v1192_v8 = vsel %vm9454_vm2, %v6962_v0, %v1191_v59  ;;  %1211 = vst [vmem:[#allocation2 + $0x18] sm:$0x1] %v1210_v5  ;;  %v6992_v9 = vrot.slane %v9463_v61, 9  ;;  %v9482_v18 = vpack.c.bf16 %v1134_v58, %v1134_v58  ;;  %v6994_v21 = vrot.slane %v9463_v61, 10 }
 0x25b   : > { %v1204_v13 = vsel %vm9454_vm2, %v6964_v4, %v1203_v2  ;;  %v1216_v14 = vsel %vm9454_vm2, %v6966_v6, %v1215_v3  ;;  %1193 = vst [vmem:[#allocation2 + $0xc] sm:$0x1] %v1192_v8  ;;  %v1138_v19 = vpop.f32.mrb[4].mxu0  ;;  %v6996_v22 = vrot.slane %v9463_v61, 11  ;;  %v6997_v23 = vrot.slane %v9458_v51, 11 }
 0x25c   : > { %1205 = vst [vmem:[#allocation2 + $0x14] sm:$0x1] %v1204_v13  ;;  %1217 = vst [vmem:[#allocation2 + $0x1c] sm:$0x1] %v1216_v14  ;;  %v9493_v26 = vpack.c.bf16 %v1138_v19, %v1138_v19  ;;  %v1140_v27 = vpop.f32.mrb[5].mxu0  ;;  %v1220_v28 = vsel %vm9454_vm2, %v1218_v15, %v1219_v7  ;;  %v1226_v29 = vshrl.u32 %v1218_v15, 16 }
 0x25d   : > { %v6969_v30 = vrot.slane %v1218_v15, 9  ;;  %v6971_v31 = vrot.slane %v1218_v15, 10  ;;  %v9497_v33 = vpop.f32.mrb[6].mxu0  ;;  %1221 = vst [vmem:[#allocation2 + $0x20] sm:$0x1] %v1220_v28  ;;  %v6973_v35 = vrot.slane %v1218_v15, 11  ;;  %v9520_v52 = vpack.c.bf16 %v1140_v27, %v1140_v27 }
 0x25e   : > { %v1384_v34 = vld [vmem:[#allocation2] sm:$0x1]  ;;  %v9500_v36 = vshll.u32 %v9482_v18, 16  ;;  %v7000_v37 = vrot.slane %v9482_v18, 9  ;;  %v7002_v38 = vrot.slane %v9482_v18, 10  ;;  %v1232_v40 = vsel %vm9454_vm2, %v1226_v29, %v1231_v12  ;;  %v9511_v43 = vpop.f32.mrb[7].mxu0 }
 0x25f   : > { %v1385_v39 = vsel %vm9486_vm4, %v9463_v61, %v1384_v34  ;;  %v1238_v41 = vsel %vm9454_vm2, %v6969_v30, %v1237_v16  ;;  %v6970_v42 = vrot.slane %v1226_v29, 9  ;;  %v1250_v48 = vsel %vm9454_vm2, %v6971_v31, %v1249_v17  ;;  %1233 = vst [vmem:[#allocation2 + $0x24] sm:$0x1] %v1232_v40  ;;  %v1255_v58 = vld [vmem:[#allocation2 + $0x34] sm:$0x1] }
 0x260   : > { %1386 = vst [vmem:[#allocation2] sm:$0x1] %v1385_v39  ;;  %v1393_v46 = vld [vmem:[#allocation2 + $0x8] sm:$0x1]  ;;  %v1405_v47 = vld [vmem:[#allocation2 + $0x10] sm:$0x1]  ;;  %v1262_v49 = vsel %vm9454_vm2, %v6973_v35, %v1261_v25  ;;  %v1272_v50 = vsel %vm9454_vm2, %v9493_v26, %v1271_v32 }
 0x261   : > { %v1387_v45 = vld [vmem:[#allocation2 + $0x4] sm:$0x1]  ;;  %1239 = vst [vmem:[#allocation2 + $0x28] sm:$0x1] %v1238_v41  ;;  %v1394_v54 = vsel %vm9486_vm4, %v6992_v9, %v1393_v46  ;;  %v1406_v55 = vsel %vm9486_vm4, %v6994_v21, %v1405_v47  ;;  %v1417_v56 = vld [vmem:[#allocation2 + $0x18] sm:$0x1]  ;;  %v1244_v57 = vsel %vm9454_vm2, %v6970_v42, %v1243_v24  ;;  %v9555_v21 = vpack.c.bf16 %v9497_v33, %v9497_v33 }
 0x262   : > { %v1388_v53 = vsel %vm9486_vm4, %v9458_v51, %v1387_v45  ;;  %1251 = vst [vmem:[#allocation2 + $0x30] sm:$0x1] %v1250_v48  ;;  %1263 = vst [vmem:[#allocation2 + $0x38] sm:$0x1] %v1262_v49  ;;  %v1267_v59 = vld [vmem:[#allocation2 + $0x3c] sm:$0x1]  ;;  %v1418_v61 = vsel %vm9486_vm4, %v6996_v22, %v1417_v56 }
 0x263   : > { %1273 = vst [vmem:[#allocation2 + $0x40] sm:$0x1] %v1272_v50  ;;  %1389 = vst [vmem:[#allocation2 + $0x4] sm:$0x1] %v1388_v53  ;;  %v1399_v60 = vld [vmem:[#allocation2 + $0xc] sm:$0x1] }
 0x264   : > { %1395 = vst [vmem:[#allocation2 + $0x8] sm:$0x1] %v1394_v54  ;;  %1407 = vst [vmem:[#allocation2 + $0x10] sm:$0x1] %v1406_v55  ;;  %v6972_v62 = vrot.slane %v1226_v29, 10  ;;  %v6974_v63 = vrot.slane %v1226_v29, 11  ;;  %v1400_v3 = vsel %vm9486_vm4, %v6993_v10, %v1399_v60 }
 0x265   : > { %1245 = vst [vmem:[#allocation2 + $0x2c] sm:$0x1] %v1244_v57  ;;  %v6999_v0 = vrot.slane %v9500_v36, 9  ;;  %v1283_v1 = vld [vmem:[#allocation2 + $0x44] sm:$0x1]  ;;  %v7001_v6 = vrot.slane %v9500_v36, 10 }
 0x266   : > { %v1289_v2 = vld [vmem:[#allocation2 + $0x48] sm:$0x1]  ;;  %v1411_v4 = vld [vmem:[#allocation2 + $0x14] sm:$0x1]  ;;  %1419 = vst [vmem:[#allocation2 + $0x18] sm:$0x1] %v1418_v61  ;;  %v1256_v12 = vsel %vm9454_vm2, %v6972_v62, %v1255_v58  ;;  %v1268_v10 = vsel %vm9454_vm2, %v6974_v63, %v1267_v59 }
 0x267   : > { %v1423_v5 = vld [vmem:[#allocation2 + $0x1c] sm:$0x1]  ;;  %v7003_v7 = vrot.slane %v9500_v36, 11  ;;  %1401 = vst [vmem:[#allocation2 + $0xc] sm:$0x1] %v1400_v3  ;;  %v1412_v8 = vsel %vm9486_vm4, %v6995_v11, %v1411_v4  ;;  %v1278_v16 = vshrl.u32 %v9493_v26, 16  ;;  %v9606_v4 = vpack.c.bf16 %v9511_v43, %v9511_v43 }
 0x268   : > { %v1424_v9 = vsel %vm9486_vm4, %v6997_v23, %v1423_v5  ;;  %v1295_v13 = vld [vmem:[#allocation2 + $0x4c] sm:$0x1]  ;;  %v1301_v14 = vld [vmem:[#allocation2 + $0x50] sm:$0x1]  ;;  %v1313_v15 = vld [vmem:[#allocation2 + $0x58] sm:$0x1] }
 0x269   : > { %1413 = vst [vmem:[#allocation2 + $0x14] sm:$0x1] %v1412_v8  ;;  %1425 = vst [vmem:[#allocation2 + $0x1c] sm:$0x1] %v1424_v9  ;;  %v1434_v51 = vld [vmem:[#allocation2 + $0x20] sm:$0x1]  ;;  %v1284_v30 = vsel %vm9454_vm2, %v1278_v16, %v1283_v1 }
 0x26a   : > { %1257 = vst [vmem:[#allocation2 + $0x34] sm:$0x1] %v1256_v12  ;;  %1269 = vst [vmem:[#allocation2 + $0x3c] sm:$0x1] %v1268_v10  ;;  %v6977_v11 = vrot.slane %v9493_v26, 9  ;;  %v6979_v17 = vrot.slane %v9493_v26, 10  ;;  %v1435_v22 = vsel %vm9486_vm4, %v9500_v36, %v1434_v51 }
 0x26b   : > { %v1307_v19 = vld [vmem:[#allocation2 + $0x54] sm:$0x1]  ;;  %v7004_v23 = vrot.slane %v9482_v18, 11  ;;  %v6981_v24 = vrot.slane %v9493_v26, 11  ;;  %v1319_v25 = vld [vmem:[#allocation2 + $0x5c] sm:$0x1] }
 0x26c   : > { %v9563_v27 = vshll.u32 %v9520_v52, 16  ;;  %1436 = vst [vmem:[#allocation2 + $0x20] sm:$0x1] %v1435_v22  ;;  %v1437_v28 = vld [vmem:[#allocation2 + $0x24] sm:$0x1]  ;;  %v1290_v31 = vsel %vm9454_vm2, %v6977_v11, %v1289_v2  ;;  %v6978_v32 = vrot.slane %v1278_v16, 9  ;;  %v1302_v33 = vsel %vm9454_vm2, %v6979_v17, %v1301_v14 }
 0x26d   : > { %v1443_v29 = vld [vmem:[#allocation2 + $0x28] sm:$0x1]  ;;  %v1323_v34 = vld [vmem:[#allocation2 + $0x60] sm:$0x1]  ;;  %v1438_v26 = vsel %vm9486_vm4, %v9482_v18, %v1437_v28  ;;  %v1455_v36 = vld [vmem:[#allocation2 + $0x30] sm:$0x1]  ;;  %v1314_v41 = vsel %vm9454_vm2, %v6981_v24, %v1313_v15 }
 0x26e   : > { %v1444_v35 = vsel %vm9486_vm4, %v6999_v0, %v1443_v29  ;;  %v1467_v39 = vld [vmem:[#allocation2 + $0x38] sm:$0x1]  ;;  %1291 = vst [vmem:[#allocation2 + $0x48] sm:$0x1] %v1290_v31  ;;  %1303 = vst [vmem:[#allocation2 + $0x50] sm:$0x1] %v1302_v33  ;;  %v1456_v45 = vsel %vm9486_vm4, %v7001_v6, %v1455_v36  ;;  %v1296_v47 = vsel %vm9454_vm2, %v6978_v32, %v1295_v13 }
 0x26f   : > { %v6980_v40 = vrot.slane %v1278_v16, 10  ;;  %1285 = vst [vmem:[#allocation2 + $0x44] sm:$0x1] %v1284_v30  ;;  %1439 = vst [vmem:[#allocation2 + $0x24] sm:$0x1] %v1438_v26  ;;  %v1468_v46 = vsel %vm9486_vm4, %v7003_v7, %v1467_v39  ;;  %v6982_v48 = vrot.slane %v1278_v16, 11  ;;  %v1324_v2 = vsel %vm9454_vm2, %v9555_v21, %v1323_v34 }
 0x270   : > { %1445 = vst [vmem:[#allocation2 + $0x28] sm:$0x1] %v1444_v35  ;;  %v1449_v42 = vld [vmem:[#allocation2 + $0x2c] sm:$0x1]  ;;  %1315 = vst [vmem:[#allocation2 + $0x58] sm:$0x1] %v1314_v41 }
 0x271   : > { %v1484_v49 = vld [vmem:[#allocation2 + $0x40] sm:$0x1]  ;;  %v1450_v50 = vsel %vm9486_vm4, %v7000_v37, %v1449_v42  ;;  %1457 = vst [vmem:[#allocation2 + $0x30] sm:$0x1] %v1456_v45  ;;  %1469 = vst [vmem:[#allocation2 + $0x38] sm:$0x1] %v1468_v46  ;;  %v1308_v53 = vsel %vm9454_vm2, %v6980_v40, %v1307_v19  ;;  %v1320_v58 = vsel %vm9454_vm2, %v6982_v48, %v1319_v25 }
 0x272   : > { %1297 = vst [vmem:[#allocation2 + $0x4c] sm:$0x1] %v1296_v47  ;;  %v1485_v54 = vsel %vm9486_vm4, %v9563_v27, %v1484_v49  ;;  %v7007_v55 = vrot.slane %v9520_v52, 9  ;;  %v1335_v56 = vld [vmem:[#allocation2 + $0x64] sm:$0x1]  ;;  %v7006_v37 = vrot.slane %v9563_v27, 9 }
 0x273   : > { %v1341_v57 = vld [vmem:[#allocation2 + $0x68] sm:$0x1]  ;;  %1451 = vst [vmem:[#allocation2 + $0x2c] sm:$0x1] %v1450_v50  ;;  %1309 = vst [vmem:[#allocation2 + $0x54] sm:$0x1] %v1308_v53 }
 0x274   : > { %1486 = vst [vmem:[#allocation2 + $0x40] sm:$0x1] %v1485_v54  ;;  %v7008_v59 = vrot.slane %v9563_v27, 10  ;;  %v7009_v60 = vrot.slane %v9520_v52, 10  ;;  %v1353_v61 = vld [vmem:[#allocation2 + $0x70] sm:$0x1] }
 0x275   : > { %v1576_v62 = vld [vmem:[#allocation2] sm:$0xff]  ;;  %v1461_v63 = vld [vmem:[#allocation2 + $0x34] sm:$0x1]  ;;  %v1473_v0 = vld [vmem:[#allocation2 + $0x3c] sm:$0x1]  ;;  %v7010_v1 = vrot.slane %v9563_v27, 11 }
 0x276   : > { %1321 = vst [vmem:[#allocation2 + $0x5c] sm:$0x1] %v1320_v58  ;;  %v1330_v3 = vshrl.u32 %v9555_v21, 16  ;;  %v1462_v5 = vsel %vm9486_vm4, %v7002_v38, %v1461_v63  ;;  %v1474_v6 = vsel %vm9486_vm4, %v7004_v23, %v1473_v0  ;;  %1325 = vst [vmem:[#allocation2 + $0x60] sm:$0x1] %v1324_v2  ;;  %v6985_v7 = vrot.slane %v9555_v21, 9 }
 0x277   : > { %v1347_v8 = vld [vmem:[#allocation2 + $0x6c] sm:$0x1]  ;;  %v6987_v9 = vrot.slane %v9555_v21, 10  ;;  %v1365_v12 = vld [vmem:[#allocation2 + $0x78] sm:$0x1]  ;;  %v6989_v38 = vrot.slane %v9555_v21, 11  ;;  %v7020_v19 = vcombine.low %v1576_v62, %v1576_v62  ;;  %v7021_v22 = vcombine.high %v1576_v62, %v1576_v62 }
 0x278   : > { %1463 = vst [vmem:[#allocation2 + $0x34] sm:$0x1] %v1462_v5  ;;  %1475 = vst [vmem:[#allocation2 + $0x3c] sm:$0x1] %v1474_v6  ;;  %v1336_v43 = vsel %vm9454_vm2, %v1330_v3, %v1335_v56  ;;  %v6986_v10 = vrot.slane %v1330_v3, 9  ;;  %v6988_v18 = vrot.slane %v1330_v3, 10  ;;  %v1342_v11 = vsel %vm9454_vm2, %v6985_v7, %v1341_v57 }
 0x279   : > { %v1359_v13 = vld [vmem:[#allocation2 + $0x74] sm:$0x1]  ;;  %v8363_v14 = vld [vmem:[#allocation8 + $0x80] sm:$0xff]   ;;  %v1493_v51 = vld [vmem:[#allocation2 + $0x48] sm:$0x1]  ;;  %v1354_v17 = vsel %vm9454_vm2, %v6987_v9, %v1353_v61  ;;  %v1366_v33 = vsel %vm9454_vm2, %v6989_v38, %v1365_v12  ;;  %v6990_v34 = vrot.slane %v1330_v3, 11  ;;  %3791 = vmatprep.mubr.bf16.mxu1 %v7021_v22 }
 0x27a   : > { %v1487_v15 = vld [vmem:[#allocation2 + $0x44] sm:$0x1]  ;;  %v1505_v16 = vld [vmem:[#allocation2 + $0x50] sm:$0x1]  ;;  %1337 = vst [vmem:[#allocation2 + $0x64] sm:$0x1] %v1336_v43  ;;  %v1494_v21 = vsel %vm9486_vm4, %v7006_v37, %v1493_v51  ;;  %v1348_v27 = vsel %vm9454_vm2, %v6986_v10, %v1347_v8  ;;  %v1360_v32 = vsel %vm9454_vm2, %v6988_v18, %v1359_v13  ;;  %3792 = vmatmul.mubr.bf16.vlgmr.msra.gmra.mrb[0].mxu1 %v7020_v19 }
 0x27b   : > { %v1488_v23 = vsel %vm9486_vm4, %v9520_v52, %v1487_v15  ;;  %v1506_v24 = vsel %vm9486_vm4, %v7008_v59, %v1505_v16  ;;  %v1517_v25 = vld [vmem:[#allocation2 + $0x58] sm:$0x1]  ;;  %1343 = vst [vmem:[#allocation2 + $0x68] sm:$0x1] %v1342_v11  ;;  %1355 = vst [vmem:[#allocation2 + $0x70] sm:$0x1] %v1354_v17  ;;  %7578 = vmatpush3.bf16.msra.mxu1 %v8363_v14 }
 0x27c   : > { %v1371_v28 = vld [vmem:[#allocation2 + $0x7c] sm:$0x1]  ;;  %v8370_v29 = vld [vmem:[#allocation8 + $0xc8] sm:$0xff]   ;;  %1489 = vst [vmem:[#allocation2 + $0x44] sm:$0x1] %v1488_v23  ;;  %v1518_v31 = vsel %vm9486_vm4, %v7010_v1, %v1517_v25  ;;  %v7011_v36 = vrot.slane %v9520_v52, 11 }
 0x27d   : > { %1495 = vst [vmem:[#allocation2 + $0x48] sm:$0x1] %v1494_v21  ;;  %v1499_v30 = vld [vmem:[#allocation2 + $0x4c] sm:$0x1]  ;;  %1507 = vst [vmem:[#allocation2 + $0x50] sm:$0x1] %v1506_v24  ;;  %v1372_v46 = vsel %vm9454_vm2, %v6990_v34, %v1371_v28  ;;  %7579 = vmatprep.subr.bf16.mxu1 %v8370_v29 }
 0x27e   : > { %1349 = vst [vmem:[#allocation2 + $0x6c] sm:$0x1] %v1348_v27  ;;  %v1500_v26 = vsel %vm9486_vm4, %v7007_v55, %v1499_v30  ;;  %v1511_v35 = vld [vmem:[#allocation2 + $0x54] sm:$0x1]  ;;  %1519 = vst [vmem:[#allocation2 + $0x58] sm:$0x1] %v1518_v31 }
 0x27f   : > { %1367 = vst [vmem:[#allocation2 + $0x78] sm:$0x1] %v1366_v33  ;;  %1361 = vst [vmem:[#allocation2 + $0x74] sm:$0x1] %v1360_v32  ;;  %v1531_v39 = vshll.u32 %v9606_v4, 16  ;;  %v9642_v40 = vld [vmem:[#allocation2 + $0x8] sm:$0xff]  ;;  %v1512_v42 = vsel %vm9486_vm4, %v7009_v60, %v1511_v35 }
 0x280   : > { %v1580_v41 = vld [vmem:[#allocation2 + $0x20] sm:$0xff]  ;;  %1501 = vst [vmem:[#allocation2 + $0x4c] sm:$0x1] %v1500_v26  ;;  %v1523_v45 = vld [vmem:[#allocation2 + $0x5c] sm:$0x1]  ;;  %v8373_v49 = vld [vmem:[#allocation8 + $0x88] sm:$0xff]   ;;  %v7023_v50 = vcombine.high %v9642_v40, %v9642_v40 }
 0x281   : > { %1513 = vst [vmem:[#allocation2 + $0x54] sm:$0x1] %v1512_v42  ;;  %v1524_v47 = vsel %vm9486_vm4, %v7011_v36, %v1523_v45  ;;  %1373 = vst [vmem:[#allocation2 + $0x7c] sm:$0x1] %v1372_v46  ;;  %v1534_v48 = vld [vmem:[#allocation2 + $0x60] sm:$0x1]  ;;  %v7028_v53 = vcombine.low %v1580_v41, %v1580_v41  ;;  %v7029_v54 = vcombine.high %v1580_v41, %v1580_v41  ;;  %7580 = vmatpush3.bf16.msra.mxu1 %v8373_v49 }
 0x282   : > { %1525 = vst [vmem:[#allocation2 + $0x5c] sm:$0x1] %v1524_v47  ;;  %v1535_v52 = vsel %vm9486_vm4, %v1531_v39, %v1534_v48  ;;  %v9656_v55 = vld [vmem:[#allocation2 + $0x30] sm:$0xff]  ;;  %v1537_v56 = vld [vmem:[#allocation2 + $0x64] sm:$0x1]  ;;  %v7013_v57 = vrot.slane %v1531_v39, 9  ;;  %3831 = vmatprep.mubr.bf16.mxu1 %v7023_v50 }
 0x283   : > { %1536 = vst [vmem:[#allocation2 + $0x60] sm:$0x1] %v1535_v52  ;;  %v7015_v58 = vrot.slane %v1531_v39, 10  ;;  %v7033_v37 = vcombine.high %v9656_v55, %v9656_v55  ;;  %v8374_v59 = vld [vmem:[#allocation8 + $0x348] sm:$0xff]   ;;  %v8376_v60 = vld [vmem:[#allocation8 + $0xd0] sm:$0xff]   ;;  %v1538_v61 = vsel %vm9486_vm4, %v9606_v4, %v1537_v56  ;;  %v7014_v63 = vrot.slane %v9606_v4, 9  ;;  %3951 = vmatprep.mubr.bf16.mxu0 %v7029_v54 }
 0x284   : > { %v1543_v62 = vld [vmem:[#allocation2 + $0x68] sm:$0x1]  ;;  %v1555_v0 = vld [vmem:[#allocation2 + $0x70] sm:$0x1]  ;;  %1539 = vst [vmem:[#allocation2 + $0x64] sm:$0x1] %v1538_v61  ;;  %3952 = vmatmul.mubr.bf16.vlgmr.msra.gmra.mrb[8].mxu0 %v7028_v53  ;;  %7581 = vmatprep.subr.bf16.mxu1 %v8376_v60 }
 0x285   : > { %v1544_v1 = vsel %vm9486_vm4, %v7013_v57, %v1543_v62  ;;  %v1549_v2 = vld [vmem:[#allocation2 + $0x6c] sm:$0x1]  ;;  %v1556_v3 = vsel %vm9486_vm4, %v7015_v58, %v1555_v0  ;;  %v7016_v5 = vrot.slane %v9606_v4, 10  ;;  %v7017_v6 = vrot.slane %v1531_v39, 11  ;;  %v8377_v8 = vld [vmem:[#allocation8 + $0x90] sm:$0xff]   ;;  %7688 = vmatpush3.bf16.msra.mxu0 %v8369_v44  ;;  %4031 = vmatprep.mubr.bf16.mxu0 %v7033_v37  ;;  %v8380_v10 = vld [vmem:[#allocation8 + $0xd8] sm:$0xff]  }
 0x286   : > { %v8375_v7 = vld [vmem:[#allocation8 + $0x308] sm:$0xff]   ;;  %1545 = vst [vmem:[#allocation2 + $0x68] sm:$0x1] %v1544_v1  ;;  %v1550_v9 = vsel %vm9486_vm4, %v7014_v63, %v1549_v2  ;;  %1557 = vst [vmem:[#allocation2 + $0x70] sm:$0x1] %v1556_v3  ;;  %v7018_v38 = vrot.slane %v9606_v4, 11  ;;  %7689 = vmatprep.subr.bf16.mxu0 %v8374_v59  ;;  %7582 = vmatpush3.bf16.msra.mxu1 %v8377_v8  ;;  %v7022_v39 = vcombine.low %v9642_v40, %v9642_v40 }
 0x287   : > { %v1561_v12 = vld [vmem:[#allocation2 + $0x74] sm:$0x1]  ;;  %v1567_v43 = vld [vmem:[#allocation2 + $0x78] sm:$0x1]  ;;  %1551 = vst [vmem:[#allocation2 + $0x6c] sm:$0x1] %v1550_v9  ;;  %7583 = vmatprep.subr.bf16.mxu1 %v8380_v10  ;;  %v7032_v40 = vcombine.low %v9656_v55, %v9656_v55 }
 0x288   : > { %v1562_v18 = vsel %vm9486_vm4, %v7016_v5, %v1561_v12  ;;  %v1568_v13 = vsel %vm9486_vm4, %v7017_v6, %v1567_v43  ;;  %v8378_v14 = vld [vmem:[#allocation8 + $0x350] sm:$0xff]   ;;  %v1573_v15 = vld [vmem:[#allocation2 + $0x7c] sm:$0x1]  ;;  %v8384_v17 = vld [vmem:[#allocation8 + $0xe0] sm:$0xff]  }
 0x289   : > { %1563 = vst [vmem:[#allocation2 + $0x74] sm:$0x1] %v1562_v18  ;;  %1569 = vst [vmem:[#allocation2 + $0x78] sm:$0x1] %v1568_v13  ;;  %v1574_v51 = vsel %vm9486_vm4, %v7018_v38, %v1573_v15  ;;  %v8381_v16 = vld [vmem:[#allocation8 + $0x98] sm:$0xff]   ;;  %7690 = vmatpush3.bf16.msra.mxu0 %v8375_v7  ;;  %v8379_v11 = vld [vmem:[#allocation8 + $0x310] sm:$0xff]  }
 0x28a   : > { %1575 = vst [vmem:[#allocation2 + $0x7c] sm:$0x1] %v1574_v51  ;;  %7691 = vmatprep.subr.bf16.mxu0 %v8378_v14  ;;  %v8382_v19 = vld [vmem:[#allocation8 + $0x358] sm:$0xff]   ;;  %7584 = vmatpush3.bf16.msra.mxu1 %v8381_v16  ;;  %v8385_v4 = vld [vmem:[#allocation8 + $0xa0] sm:$0xff]   ;;  %v8388_v23 = vld [vmem:[#allocation8 + $0xe8] sm:$0xff]  }
 0x28b   : > { %v8383_v22 = vld [vmem:[#allocation8 + $0x318] sm:$0xff]   ;;  %7585 = vmatprep.subr.bf16.mxu1 %v8384_v17  ;;  %v8386_v21 = vld [vmem:[#allocation8 + $0x360] sm:$0xff]   ;;  %v8392_v25 = vld [vmem:[#allocation8 + $0xf0] sm:$0xff]  }
 0x28c   : > { %v8387_v24 = vld [vmem:[#allocation8 + $0x320] sm:$0xff]   ;;  %v8390_v27 = vld [vmem:[#allocation8 + $0x368] sm:$0xff]   ;;  %v8393_v28 = vld [vmem:[#allocation8 + $0xb0] sm:$0xff]  }
 0x28d   : > { %7692 = vmatpush3.bf16.msra.mxu0 %v8379_v11  ;;  %v8391_v29 = vld [vmem:[#allocation8 + $0x328] sm:$0xff]   ;;  %v8396_v30 = vld [vmem:[#allocation8 + $0xf8] sm:$0xff]   ;;  %v8394_v31 = vld [vmem:[#allocation8 + $0x370] sm:$0xff]  }
 0x28e   : > { %7693 = vmatprep.subr.bf16.mxu0 %v8382_v19  ;;  %7586 = vmatpush3.bf16.msra.mxu1 %v8385_v4  ;;  %v8397_v32 = vld [vmem:[#allocation8 + $0xb8] sm:$0xff]   ;;  %v8395_v33 = vld [vmem:[#allocation8 + $0x330] sm:$0xff]   ;;  %v8400_v34 = vld [vmem:[#allocation8 + $0x140] sm:$0xff]  }
 0x28f   : > { %7587 = vmatprep.subr.bf16.mxu1 %v8388_v23  ;;  %v8398_v26 = vld [vmem:[#allocation8 + $0x378] sm:$0xff]   ;;  %v9678_v35 = vld [vmem:[#allocation2 + $0x10] sm:$0xff]  ;;  %v8401_v36 = vld [vmem:[#allocation8 + $0x100] sm:$0xff]  }
 0x290   : > { %v8399_v41 = vld [vmem:[#allocation8 + $0x338] sm:$0xff]   ;;  %v8408_v42 = vld [vmem:[#allocation8 + $0x148] sm:$0xff]   ;;  %v7025_v45 = vcombine.high %v9678_v35, %v9678_v35  ;;  %v8404_v46 = vld [vmem:[#allocation8 + $0x440] sm:$0xff]   ;;  %v7024_v38 = vcombine.low %v9678_v35, %v9678_v35 }
 0x291   : > { %7694 = vmatpush3.bf16.msra.mxu0 %v8383_v22  ;;  %v9684_v47 = vld [vmem:[#allocation2 + $0x40] sm:$0xff]  ;;  %v8409_v48 = vld [vmem:[#allocation8 + $0x108] sm:$0xff]   ;;  %v8412_v50 = vld [vmem:[#allocation8 + $0x150] sm:$0xff]  }
 0x292   : > { %7695 = vmatprep.subr.bf16.mxu0 %v8386_v21  ;;  %7588 = vmatpush3.bf16.msra.mxu1 %v8389_v20  ;;  %v8405_v49 = vld [vmem:[#allocation8 + $0x400] sm:$0xff]   ;;  %v8410_v52 = vld [vmem:[#allocation8 + $0x448] sm:$0xff]   ;;  %v7037_v53 = vcombine.high %v9684_v47, %v9684_v47  ;;  %v8413_v54 = vld [vmem:[#allocation8 + $0x110] sm:$0xff]   ;;  %v7036_v4 = vcombine.low %v9684_v47, %v9684_v47 }
 0x293   : > { %7589 = vmatprep.subr.bf16.mxu1 %v8392_v25  ;;  %v8411_v44 = vld [vmem:[#allocation8 + $0x408] sm:$0xff]   ;;  %v8416_v56 = vld [vmem:[#allocation8 + $0x158] sm:$0xff]   ;;  %v8414_v57 = vld [vmem:[#allocation8 + $0x450] sm:$0xff]  }
 0x294   : > { %v8417_v58 = vld [vmem:[#allocation8 + $0x118] sm:$0xff]   ;;  %v8415_v55 = vld [vmem:[#allocation8 + $0x410] sm:$0xff]   ;;  %v8420_v37 = vld [vmem:[#allocation8 + $0x160] sm:$0xff]  }
 0x295   : > { %7696 = vmatpush3.bf16.msra.mxu0 %v8387_v24  ;;  %v8418_v59 = vld [vmem:[#allocation8 + $0x458] sm:$0xff]   ;;  %v8421_v60 = vld [vmem:[#allocation8 + $0x120] sm:$0xff]   ;;  %v8424_v62 = vld [vmem:[#allocation8 + $0x168] sm:$0xff]  }
 0x296   : > { %7697 = vmatprep.subr.bf16.mxu0 %v8390_v27  ;;  %7590 = vmatpush3.bf16.msra.mxu1 %v8393_v28  ;;  %v8419_v61 = vld [vmem:[#allocation8 + $0x418] sm:$0xff]   ;;  %v8422_v63 = vld [vmem:[#allocation8 + $0x460] sm:$0xff]   ;;  %v8425_v0 = vld [vmem:[#allocation8 + $0x128] sm:$0xff]  }
 0x297   : > { %7591 = vmatprep.subr.bf16.mxu1 %v8396_v30  ;;  %v8423_v1 = vld [vmem:[#allocation8 + $0x420] sm:$0xff]   ;;  %v8428_v2 = vld [vmem:[#allocation8 + $0x170] sm:$0xff]   ;;  %v8426_v3 = vld [vmem:[#allocation8 + $0x468] sm:$0xff]  }
 0x298   : > { %v8429_v5 = vld [vmem:[#allocation8 + $0x130] sm:$0xff]   ;;  %v8427_v6 = vld [vmem:[#allocation8 + $0x428] sm:$0xff]   ;;  %v8432_v7 = vld [vmem:[#allocation8 + $0x178] sm:$0xff]  }
 0x299   : > { %7698 = vmatpush3.bf16.msra.mxu0 %v8391_v29  ;;  %v8430_v8 = vld [vmem:[#allocation8 + $0x470] sm:$0xff]   ;;  %v8433_v9 = vld [vmem:[#allocation8 + $0x138] sm:$0xff]   ;;  %v8436_v43 = vld [vmem:[#allocation8 + $0x1c0] sm:$0xff]  }
 0x29a   : > { %7699 = vmatprep.subr.bf16.mxu0 %v8394_v31  ;;  %7592 = vmatpush3.bf16.msra.mxu1 %v8397_v32  ;;  %v8431_v12 = vld [vmem:[#allocation8 + $0x430] sm:$0xff]   ;;  %v8434_v10 = vld [vmem:[#allocation8 + $0x478] sm:$0xff]   ;;  %v8437_v13 = vld [vmem:[#allocation8 + $0x180] sm:$0xff]  }
 0x29b   : > { %7599 = vmatprep.subr.bf16.mxu1 %v8400_v34  ;;  %v9690_v18 = vld [vmem:[#allocation2 + $0x18] sm:$0xff]  ;;  %v8444_v15 = vld [vmem:[#allocation8 + $0x1c8] sm:$0xff]   ;;  %v8440_v16 = vld [vmem:[#allocation8 + $0x540] sm:$0xff]  }
 0x29c   : > { %v8435_v14 = vld [vmem:[#allocation8 + $0x438] sm:$0xff]   ;;  %v7027_v51 = vcombine.high %v9690_v18, %v9690_v18  ;;  %v9696_v11 = vld [vmem:[#allocation2 + $0x50] sm:$0xff]  ;;  %v8445_v17 = vld [vmem:[#allocation8 + $0x188] sm:$0xff]  }
 0x29d   : > { %7700 = vmatpush3.bf16.msra.mxu0 %v8395_v33  ;;  %3832 = vmatmul.mubr.bf16.vlgmr.msra.gmra.mrb[4].mxu1 %v7022_v39  ;;  %v8441_v19 = vld [vmem:[#allocation8 + $0x500] sm:$0xff]   ;;  %v8446_v22 = vld [vmem:[#allocation8 + $0x548] sm:$0xff]   ;;  %v8448_v23 = vld [vmem:[#allocation8 + $0x1d0] sm:$0xff]   ;;  %v7041_v21 = vcombine.high %v9696_v11, %v9696_v11 }
 0x29e   : > { %7701 = vmatprep.subr.bf16.mxu0 %v8398_v26  ;;  %7600 = vmatpush3.bf16.msra.mxu1 %v8401_v36  ;;  %v8449_v20 = vld [vmem:[#allocation8 + $0x190] sm:$0xff]   ;;  %v8447_v24 = vld [vmem:[#allocation8 + $0x508] sm:$0xff]   ;;  %v8452_v25 = vld [vmem:[#allocation8 + $0x1d8] sm:$0xff]  }
 0x29f   : > { %3871 = vmatprep.mubr.bf16.mxu1 %v7025_v45  ;;  %7601 = vmatprep.subr.bf16.mxu1 %v8408_v42  ;;  %v8450_v27 = vld [vmem:[#allocation8 + $0x550] sm:$0xff]   ;;  %v8453_v28 = vld [vmem:[#allocation8 + $0x198] sm:$0xff]   ;;  %v8456_v30 = vld [vmem:[#allocation8 + $0x1e0] sm:$0xff]  }
 0x2a0   : > { %v8451_v29 = vld [vmem:[#allocation8 + $0x510] sm:$0xff]   ;;  %v8454_v31 = vld [vmem:[#allocation8 + $0x558] sm:$0xff]   ;;  %v8457_v32 = vld [vmem:[#allocation8 + $0x1a0] sm:$0xff]  }
 0x2a1   : > { %7702 = vmatpush3.bf16.msra.mxu0 %v8399_v41  ;;  %v8455_v33 = vld [vmem:[#allocation8 + $0x518] sm:$0xff]   ;;  %v8460_v34 = vld [vmem:[#allocation8 + $0x1e8] sm:$0xff]   ;;  %v8458_v26 = vld [vmem:[#allocation8 + $0x560] sm:$0xff]  }
 0x2a2   : > { %7731 = vmatprep.subr.bf16.mxu0 %v8404_v46  ;;  %7602 = vmatpush3.bf16.msra.mxu1 %v8409_v48  ;;  %v8461_v35 = vld [vmem:[#allocation8 + $0x1a8] sm:$0xff]   ;;  %v8459_v36 = vld [vmem:[#allocation8 + $0x520] sm:$0xff]   ;;  %v8464_v39 = vld [vmem:[#allocation8 + $0x1f0] sm:$0xff]  }
 0x2a3   : > { %7603 = vmatprep.subr.bf16.mxu1 %v8412_v50  ;;  %v8462_v41 = vld [vmem:[#allocation8 + $0x568] sm:$0xff]   ;;  %v8465_v42 = vld [vmem:[#allocation8 + $0x1b0] sm:$0xff]   ;;  %v8468_v46 = vld [vmem:[#allocation8 + $0x1f8] sm:$0xff]  }
 0x2a4   : > { %4032 = vmatmul.mubr.bf16.vlgmr.msra.gmra.mrb[12].mxu0 %v7032_v40  ;;  %v8463_v45 = vld [vmem:[#allocation8 + $0x528] sm:$0xff]   ;;  %v8466_v47 = vld [vmem:[#allocation8 + $0x570] sm:$0xff]   ;;  %v8469_v48 = vld [vmem:[#allocation8 + $0x1b8] sm:$0xff]  }
 0x2a5   : > { %7732 = vmatpush3.bf16.msra.mxu0 %v8405_v49  ;;  %4111 = vmatprep.mubr.bf16.mxu0 %v7037_v53  ;;  %v8467_v49 = vld [vmem:[#allocation8 + $0x530] sm:$0xff]   ;;  %v8472_v40 = vld [vmem:[#allocation8 + $0x2c0] sm:$0xff]   ;;  %v9702_v50 = vld [vmem:[#allocation2 + $0x28] sm:$0xff] }
 0x2a6   : > { %7733 = vmatprep.subr.bf16.mxu0 %v8410_v52  ;;  %7604 = vmatpush3.bf16.msra.mxu1 %v8413_v54  ;;  %v8470_v52 = vld [vmem:[#allocation8 + $0x578] sm:$0xff]   ;;  %v8473_v53 = vld [vmem:[#allocation8 + $0x280] sm:$0xff]   ;;  %v7026_v54 = vcombine.low %v9690_v18, %v9690_v18  ;;  %v8497_v18 = vld [vmem:[#allocation8 + $0x2a8] sm:$0xff]  }
 0x2a7   : > { %7605 = vmatprep.subr.bf16.mxu1 %v8416_v56  ;;  %v8480_v56 = vld [vmem:[#allocation8 + $0x2c8] sm:$0xff]  }
 0x2a9   : > { %7734 = vmatpush3.bf16.msra.mxu0 %v8411_v44  ;;  %v8471_v44 = vld [vmem:[#allocation8 + $0x538] sm:$0xff]  }
 0x2aa   : > { %7735 = vmatprep.subr.bf16.mxu0 %v8414_v57  ;;  %7606 = vmatpush3.bf16.msra.mxu1 %v8417_v58  ;;  %v7031_v57 = vcombine.high %v9702_v50, %v9702_v50  ;;  %v8476_v58 = vld [vmem:[#allocation8 + $0x640] sm:$0xff]  }
 0x2ab   : > { %7607 = vmatprep.subr.bf16.mxu1 %v8420_v37  ;;  %v8481_v37 = vld [vmem:[#allocation8 + $0x288] sm:$0xff]  }
 0x2ad   : > { %7736 = vmatpush3.bf16.msra.mxu0 %v8415_v55  ;;  %v9708_v55 = vld [vmem:[#allocation2 + $0x60] sm:$0xff] }
 0x2ae   : > { %7737 = vmatprep.subr.bf16.mxu0 %v8418_v59  ;;  %7608 = vmatpush3.bf16.msra.mxu1 %v8421_v60  ;;  %v8477_v59 = vld [vmem:[#allocation8 + $0x600] sm:$0xff]   ;;  %v7040_v60 = vcombine.low %v9696_v11, %v9696_v11  ;;  %v8502_v11 = vld [vmem:[#allocation8 + $0x670] sm:$0xff]  }
 0x2af   : > { %7609 = vmatprep.subr.bf16.mxu1 %v8424_v62  ;;  %v8484_v62 = vld [vmem:[#allocation8 + $0x2d0] sm:$0xff]  }
 0x2b1   : > { %7738 = vmatpush3.bf16.msra.mxu0 %v8419_v61  ;;  %v8482_v61 = vld [vmem:[#allocation8 + $0x648] sm:$0xff]  }
 0x2b2   : > { %7739 = vmatprep.subr.bf16.mxu0 %v8422_v63  ;;  %7610 = vmatpush3.bf16.msra.mxu1 %v8425_v0  ;;  %v7045_v63 = vcombine.high %v9708_v55, %v9708_v55  ;;  %v8485_v0 = vld [vmem:[#allocation8 + $0x290] sm:$0xff]  }
 0x2b3   : > { %7611 = vmatprep.subr.bf16.mxu1 %v8428_v2  ;;  %v8488_v2 = vld [vmem:[#allocation8 + $0x2d8] sm:$0xff]  }
 0x2b5   : > { %7740 = vmatpush3.bf16.msra.mxu0 %v8423_v1  ;;  %v8483_v1 = vld [vmem:[#allocation8 + $0x608] sm:$0xff]  }
 0x2b6   : > { %7741 = vmatprep.subr.bf16.mxu0 %v8426_v3  ;;  %7612 = vmatpush3.bf16.msra.mxu1 %v8429_v5  ;;  %v8486_v3 = vld [vmem:[#allocation8 + $0x650] sm:$0xff]   ;;  %v8489_v5 = vld [vmem:[#allocation8 + $0x298] sm:$0xff]  }
 0x2b7   : > { %7613 = vmatprep.subr.bf16.mxu1 %v8432_v7  ;;  %v8492_v7 = vld [vmem:[#allocation8 + $0x2e0] sm:$0xff]  }
 0x2b9   : > { %7742 = vmatpush3.bf16.msra.mxu0 %v8427_v6  ;;  %v8487_v6 = vld [vmem:[#allocation8 + $0x610] sm:$0xff]  }
 0x2ba   : > { %7743 = vmatprep.subr.bf16.mxu0 %v8430_v8  ;;  %7614 = vmatpush3.bf16.msra.mxu1 %v8433_v9  ;;  %v8490_v8 = vld [vmem:[#allocation8 + $0x658] sm:$0xff]   ;;  %v8493_v9 = vld [vmem:[#allocation8 + $0x2a0] sm:$0xff]  }
 0x2bb   : > { %7621 = vmatprep.subr.bf16.mxu1 %v8436_v43  ;;  %v8496_v43 = vld [vmem:[#allocation8 + $0x2e8] sm:$0xff]  }
 0x2bd   : > { %7744 = vmatpush3.bf16.msra.mxu0 %v8431_v12  ;;  %3872 = vmatmul.mubr.bf16.vlgmr.msra.gmra.mrb[8].mxu1 %v7024_v38  ;;  %v8491_v12 = vld [vmem:[#allocation8 + $0x618] sm:$0xff]   ;;  %v8500_v38 = vld [vmem:[#allocation8 + $0x2f0] sm:$0xff]  }
 0x2be   : > { %7745 = vmatprep.subr.bf16.mxu0 %v8434_v10  ;;  %7622 = vmatpush3.bf16.msra.mxu1 %v8437_v13  ;;  %v8494_v10 = vld [vmem:[#allocation8 + $0x660] sm:$0xff]  }
 0x2bf   : > { %3911 = vmatprep.mubr.bf16.mxu1 %v7027_v51  ;;  %7623 = vmatprep.subr.bf16.mxu1 %v8444_v15  ;;  %v8495_v13 = vld [vmem:[#allocation8 + $0x620] sm:$0xff]   ;;  %v8501_v15 = vld [vmem:[#allocation8 + $0x2b0] sm:$0xff]   ;;  %v8499_v51 = vld [vmem:[#allocation8 + $0x628] sm:$0xff]  }
 0x2c1   : > { %7746 = vmatpush3.bf16.msra.mxu0 %v8435_v14  ;;  %v8498_v14 = vld [vmem:[#allocation8 + $0x668] sm:$0xff]  }
 0x2c2   : > { %7775 = vmatprep.subr.bf16.mxu0 %v8440_v16  ;;  %7624 = vmatpush3.bf16.msra.mxu1 %v8445_v17  ;;  %v8504_v16 = vld [vmem:[#allocation8 + $0x2f8] sm:$0xff]  }
 0x2c3   : > { %7625 = vmatprep.subr.bf16.mxu1 %v8448_v23  ;;  %v8505_v17 = vld [vmem:[#allocation8 + $0x2b8] sm:$0xff]  }
 0x2c4   : > { %4112 = vmatmul.mubr.bf16.vlgmr.msra.gmra.mrb[16].mxu0 %v7036_v4  ;;  %v8508_v4 = vld [vmem:[#allocation8 + $0x3c0] sm:$0xff]   ;;  %v9714_v23 = vld [vmem:[#allocation2 + $0x38] sm:$0xff] }
 0x2c5   : > { %7776 = vmatpush3.bf16.msra.mxu0 %v8441_v19  ;;  %4191 = vmatprep.mubr.bf16.mxu0 %v7041_v21  ;;  %v8503_v19 = vld [vmem:[#allocation8 + $0x630] sm:$0xff]   ;;  %v8509_v21 = vld [vmem:[#allocation8 + $0x380] sm:$0xff]  }
 0x2c6   : > { %7777 = vmatprep.subr.bf16.mxu0 %v8446_v22  ;;  %7626 = vmatpush3.bf16.msra.mxu1 %v8449_v20  ;;  %v8506_v22 = vld [vmem:[#allocation8 + $0x678] sm:$0xff]   ;;  %v7030_v20 = vcombine.low %v9702_v50, %v9702_v50  ;;  %v8533_v50 = vld [vmem:[#allocation8 + $0x3a8] sm:$0xff]  }
 0x2c7   : > { %7627 = vmatprep.subr.bf16.mxu1 %v8452_v25  ;;  %v8516_v25 = vld [vmem:[#allocation8 + $0x3c8] sm:$0xff]  }
 0x2c9   : > { %7778 = vmatpush3.bf16.msra.mxu0 %v8447_v24  ;;  %v8507_v24 = vld [vmem:[#allocation8 + $0x638] sm:$0xff]  }
 0x2ca   : > { %7779 = vmatprep.subr.bf16.mxu0 %v8450_v27  ;;  %7628 = vmatpush3.bf16.msra.mxu1 %v8453_v28  ;;  %v7035_v27 = vcombine.high %v9714_v23, %v9714_v23  ;;  %v8512_v28 = vld [vmem:[#allocation8 + $0x740] sm:$0xff]  }
 0x2cb   : > { %7629 = vmatprep.subr.bf16.mxu1 %v8456_v30  ;;  %v8517_v30 = vld [vmem:[#allocation8 + $0x388] sm:$0xff]  }
 0x2cd   : > { %7780 = vmatpush3.bf16.msra.mxu0 %v8451_v29  ;;  %v9720_v29 = vld [vmem:[#allocation2 + $0x70] sm:$0xff] }
 0x2ce   : > { %7781 = vmatprep.subr.bf16.mxu0 %v8454_v31  ;;  %7630 = vmatpush3.bf16.msra.mxu1 %v8457_v32  ;;  %v8513_v31 = vld [vmem:[#allocation8 + $0x700] sm:$0xff]   ;;  %v7044_v32 = vcombine.low %v9708_v55, %v9708_v55  ;;  %v8538_v55 = vld [vmem:[#allocation8 + $0x770] sm:$0xff]  }
 0x2cf   : > { %7631 = vmatprep.subr.bf16.mxu1 %v8460_v34  ;;  %v8520_v34 = vld [vmem:[#allocation8 + $0x3d0] sm:$0xff]  }
 0x2d1   : > { %7782 = vmatpush3.bf16.msra.mxu0 %v8455_v33  ;;  %v8518_v33 = vld [vmem:[#allocation8 + $0x748] sm:$0xff]  }
 0x2d2   : > { %7783 = vmatprep.subr.bf16.mxu0 %v8458_v26  ;;  %7632 = vmatpush3.bf16.msra.mxu1 %v8461_v35  ;;  %v7049_v26 = vcombine.high %v9720_v29, %v9720_v29  ;;  %v8521_v35 = vld [vmem:[#allocation8 + $0x390] sm:$0xff]  }
 0x2d3   : > { %7633 = vmatprep.subr.bf16.mxu1 %v8464_v39  ;;  %v8524_v39 = vld [vmem:[#allocation8 + $0x3d8] sm:$0xff]  }
 0x2d5   : > { %7784 = vmatpush3.bf16.msra.mxu0 %v8459_v36  ;;  %v8519_v36 = vld [vmem:[#allocation8 + $0x708] sm:$0xff]  }
 0x2d6   : > { %7785 = vmatprep.subr.bf16.mxu0 %v8462_v41  ;;  %7634 = vmatpush3.bf16.msra.mxu1 %v8465_v42  ;;  %v8522_v41 = vld [vmem:[#allocation8 + $0x750] sm:$0xff]   ;;  %v8525_v42 = vld [vmem:[#allocation8 + $0x398] sm:$0xff]  }
 0x2d7   : > { %7635 = vmatprep.subr.bf16.mxu1 %v8468_v46  ;;  %v8528_v46 = vld [vmem:[#allocation8 + $0x3e0] sm:$0xff]  }
 0x2d9   : > { %7786 = vmatpush3.bf16.msra.mxu0 %v8463_v45  ;;  %v8523_v45 = vld [vmem:[#allocation8 + $0x710] sm:$0xff]  }
 0x2da   : > { %7787 = vmatprep.subr.bf16.mxu0 %v8466_v47  ;;  %7636 = vmatpush3.bf16.msra.mxu1 %v8469_v48  ;;  %v8526_v47 = vld [vmem:[#allocation8 + $0x758] sm:$0xff]   ;;  %v8529_v48 = vld [vmem:[#allocation8 + $0x3a0] sm:$0xff]  }
 0x2db   : > { %7665 = vmatprep.subr.bf16.mxu1 %v8472_v40  ;;  %v8532_v40 = vld [vmem:[#allocation8 + $0x3e8] sm:$0xff]  }
 0x2dd   : > { %7788 = vmatpush3.bf16.msra.mxu0 %v8467_v49  ;;  %3912 = vmatmul.mubr.bf16.vlgmr.msra.gmra.mrb[12].mxu1 %v7026_v54  ;;  %v8527_v49 = vld [vmem:[#allocation8 + $0x718] sm:$0xff]   ;;  %v8536_v54 = vld [vmem:[#allocation8 + $0x3f0] sm:$0xff]  }
 0x2de   : > { %7789 = vmatprep.subr.bf16.mxu0 %v8470_v52  ;;  %7666 = vmatpush3.bf16.msra.mxu1 %v8473_v53  ;;  %v8530_v52 = vld [vmem:[#allocation8 + $0x760] sm:$0xff]  }
 0x2df   : > { %3991 = vmatprep.mubr.bf16.mxu1 %v7031_v57  ;;  %7667 = vmatprep.subr.bf16.mxu1 %v8480_v56  ;;  %v8531_v53 = vld [vmem:[#allocation8 + $0x720] sm:$0xff]   ;;  %v8537_v56 = vld [vmem:[#allocation8 + $0x3b0] sm:$0xff]   ;;  %v8535_v57 = vld [vmem:[#allocation8 + $0x728] sm:$0xff]  }
 0x2e1   : > { %7790 = vmatpush3.bf16.msra.mxu0 %v8471_v44  ;;  %v8534_v44 = vld [vmem:[#allocation8 + $0x768] sm:$0xff]  }
 0x2e2   : > { %7819 = vmatprep.subr.bf16.mxu0 %v8476_v58  ;;  %7668 = vmatpush3.bf16.msra.mxu1 %v8481_v37  ;;  %v8540_v58 = vld [vmem:[#allocation8 + $0x3f8] sm:$0xff]  }
 0x2e3   : > { %7669 = vmatprep.subr.bf16.mxu1 %v8484_v62  ;;  %v8541_v37 = vld [vmem:[#allocation8 + $0x3b8] sm:$0xff]   ;;  %v1585_v62 = vld [vmem:[#allocation2 + $0x48] sm:$0xff] }
 0x2e4   : > { %4192 = vmatmul.mubr.bf16.vlgmr.msra.gmra.mrb[20].mxu0 %v7040_v60  ;;  %v8544_v60 = vld [vmem:[#allocation8 + $0x4c0] sm:$0xff]  }
 0x2e5   : > { %7820 = vmatpush3.bf16.msra.mxu0 %v8477_v59  ;;  %4271 = vmatprep.mubr.bf16.mxu0 %v7045_v63  ;;  %v8539_v59 = vld [vmem:[#allocation8 + $0x730] sm:$0xff]   ;;  %v8545_v63 = vld [vmem:[#allocation8 + $0x480] sm:$0xff]  }
 0x2e6   : > { %7821 = vmatprep.subr.bf16.mxu0 %v8482_v61  ;;  %7670 = vmatpush3.bf16.msra.mxu1 %v8485_v0  ;;  %v8542_v61 = vld [vmem:[#allocation8 + $0x778] sm:$0xff]   ;;  %v7034_v0 = vcombine.low %v9714_v23, %v9714_v23  ;;  %v8567_v23 = vld [vmem:[#allocation8 + $0x588] sm:$0xff]  }
 0x2e7   : > { %7671 = vmatprep.subr.bf16.mxu1 %v8488_v2  ;;  %v8548_v2 = vld [vmem:[#allocation8 + $0x4c8] sm:$0xff]  }
 0x2e9   : > { %7822 = vmatpush3.bf16.msra.mxu0 %v8483_v1  ;;  %v8543_v1 = vld [vmem:[#allocation8 + $0x738] sm:$0xff]  }
 0x2ea   : > { %7823 = vmatprep.subr.bf16.mxu0 %v8486_v3  ;;  %7672 = vmatpush3.bf16.msra.mxu1 %v8489_v5  ;;  %v7039_v3 = vcombine.high %v1585_v62, %v1585_v62  ;;  %v8549_v5 = vld [vmem:[#allocation8 + $0x488] sm:$0xff]  }
 0x2eb   : > { %7673 = vmatprep.subr.bf16.mxu1 %v8492_v7  ;;  %v7048_v7 = vcombine.low %v9720_v29, %v9720_v29  ;;  %v8574_v29 = vld [vmem:[#allocation8 + $0x5e8] sm:$0xff]  }
 0x2ed   : > { %7824 = vmatpush3.bf16.msra.mxu0 %v8487_v6  ;;  %v8550_v6 = vld [vmem:[#allocation8 + $0x4d0] sm:$0xff]  }
 0x2ee   : > { %7825 = vmatprep.subr.bf16.mxu0 %v8490_v8  ;;  %7674 = vmatpush3.bf16.msra.mxu1 %v8493_v9  ;;  %v8551_v8 = vld [vmem:[#allocation8 + $0x490] sm:$0xff]   ;;  %v8552_v9 = vld [vmem:[#allocation8 + $0x4d8] sm:$0xff]  }
 0x2ef   : > { %7675 = vmatprep.subr.bf16.mxu1 %v8496_v43  ;;  %v8554_v43 = vld [vmem:[#allocation8 + $0x4e0] sm:$0xff]  }
 0x2f1   : > { %7826 = vmatpush3.bf16.msra.mxu0 %v8491_v12  ;;  %v8553_v12 = vld [vmem:[#allocation8 + $0x498] sm:$0xff]  }
 0x2f2   : > { %7827 = vmatprep.subr.bf16.mxu0 %v8494_v10  ;;  %7676 = vmatpush3.bf16.msra.mxu1 %v8497_v18  ;;  %v8555_v10 = vld [vmem:[#allocation8 + $0x4a0] sm:$0xff]   ;;  %v8556_v18 = vld [vmem:[#allocation8 + $0x4e8] sm:$0xff]  }
 0x2f3   : > { %7677 = vmatprep.subr.bf16.mxu1 %v8500_v38  ;;  %v8558_v38 = vld [vmem:[#allocation8 + $0x4f0] sm:$0xff]  }
 0x2f5   : > { %7828 = vmatpush3.bf16.msra.mxu0 %v8495_v13  ;;  %v8557_v13 = vld [vmem:[#allocation8 + $0x4a8] sm:$0xff]  }
 0x2f6   : > { %7829 = vmatprep.subr.bf16.mxu0 %v8498_v14  ;;  %7678 = vmatpush3.bf16.msra.mxu1 %v8501_v15  ;;  %v8559_v14 = vld [vmem:[#allocation8 + $0x4b0] sm:$0xff]   ;;  %v8560_v15 = vld [vmem:[#allocation8 + $0x4f8] sm:$0xff]  }
 0x2f7   : > { %7679 = vmatprep.subr.bf16.mxu1 %v8504_v16  ;;  %v8562_v16 = vld [vmem:[#allocation8 + $0x5c0] sm:$0xff]  }
 0x2f9   : > { %7830 = vmatpush3.bf16.msra.mxu0 %v8499_v51  ;;  %v8561_v51 = vld [vmem:[#allocation8 + $0x4b8] sm:$0xff]  }
 0x2fa   : > { %7831 = vmatprep.subr.bf16.mxu0 %v8502_v11  ;;  %7680 = vmatpush3.bf16.msra.mxu1 %v8505_v17  ;;  %v1587_v11 = vld [vmem:[#allocation2 + $0x58] sm:$0xff]  ;;  %v8563_v17 = vld [vmem:[#allocation8 + $0x580] sm:$0xff]  }
 0x2fb   : > { %7709 = vmatprep.subr.bf16.mxu1 %v8508_v4  ;;  %v8566_v4 = vld [vmem:[#allocation8 + $0x5c8] sm:$0xff]  }
 0x2fd   : > { %7832 = vmatpush3.bf16.msra.mxu0 %v8503_v19  ;;  %3992 = vmatmul.mubr.bf16.vlgmr.msra.gmra.mrb[16].mxu1 %v7030_v20  ;;  %v7038_v19 = vcombine.low %v1585_v62, %v1585_v62  ;;  %v8569_v20 = vld [vmem:[#allocation8 + $0x590] sm:$0xff]   ;;  %v7019_v62 = vld [vmem:[%s9864_s3] ss:$0 sm:$0xff] }
 0x2fe   : > { %7833 = vmatprep.subr.bf16.mxu0 %v8506_v22  ;;  %7710 = vmatpush3.bf16.msra.mxu1 %v8509_v21  ;;  %v7043_v22 = vcombine.high %v1587_v11, %v1587_v11  ;;  %v8568_v21 = vld [vmem:[#allocation8 + $0x5d0] sm:$0xff]  }
 0x2ff   : > { %4071 = vmatprep.mubr.bf16.mxu1 %v7035_v27  ;;  %7711 = vmatprep.subr.bf16.mxu1 %v8516_v25  ;;  %v8571_v25 = vld [vmem:[#allocation8 + $0x598] sm:$0xff]   ;;  %v8572_v27 = vld [vmem:[#allocation8 + $0x5e0] sm:$0xff]  }
 0x301   : > { %7834 = vmatpush3.bf16.msra.mxu0 %v8507_v24  ;;  %v8570_v24 = vld [vmem:[#allocation8 + $0x5d8] sm:$0xff]  }
 0x302   : > { %7863 = vmatprep.subr.bf16.mxu0 %v8512_v28  ;;  %7712 = vmatpush3.bf16.msra.mxu1 %v8517_v30  ;;  %v8573_v28 = vld [vmem:[#allocation8 + $0x5a0] sm:$0xff]   ;;  %v8575_v30 = vld [vmem:[#allocation8 + $0x5a8] sm:$0xff]  }
 0x303   : > { %7713 = vmatprep.subr.bf16.mxu1 %v8520_v34 }
 0x304   : > { %4272 = vmatmul.mubr.bf16.vlgmr.msra.gmra.mrb[24].mxu0 %v7044_v32  ;;  %v8576_v32 = vld [vmem:[#allocation8 + $0x5f0] sm:$0xff]  }
 0x305   : > { %7864 = vmatpush3.bf16.msra.mxu0 %v8513_v31  ;;  %4351 = vmatprep.mubr.bf16.mxu0 %v7049_v26 }
 0x306   : > { %7865 = vmatprep.subr.bf16.mxu0 %v8518_v33  ;;  %7714 = vmatpush3.bf16.msra.mxu1 %v8521_v35 }
 0x307   : > { %7715 = vmatprep.subr.bf16.mxu1 %v8524_v39  ;;  %v8578_v39 = vld [vmem:[#allocation8 + $0x5f8] sm:$0xff]  }
 0x309   : > { %7866 = vmatpush3.bf16.msra.mxu0 %v8519_v36  ;;  %v8577_v36 = vld [vmem:[#allocation8 + $0x5b0] sm:$0xff]  }
 0x30a   : > { %7867 = vmatprep.subr.bf16.mxu0 %v8522_v41  ;;  %7716 = vmatpush3.bf16.msra.mxu1 %v8525_v42 }
 0x30b   : > { %7717 = vmatprep.subr.bf16.mxu1 %v8528_v46 }
 0x30d   : > { %7868 = vmatpush3.bf16.msra.mxu0 %v8523_v45  ;;  %v8579_v45 = vld [vmem:[#allocation8 + $0x5b8] sm:$0xff]  }
 0x30e   : > { %7869 = vmatprep.subr.bf16.mxu0 %v8526_v47  ;;  %7718 = vmatpush3.bf16.msra.mxu1 %v8529_v48  ;;  %v8580_v48 = vld [vmem:[#allocation8 + $0x6c0] sm:$0xff]  }
 0x30f   : > { %7719 = vmatprep.subr.bf16.mxu1 %v8532_v40  ;;  %v1589_v40 = vld [vmem:[#allocation2 + $0x68] sm:$0xff] }
 0x311   : > { %7870 = vmatpush3.bf16.msra.mxu0 %v8527_v49 }
 0x312   : > { %7871 = vmatprep.subr.bf16.mxu0 %v8530_v52  ;;  %7720 = vmatpush3.bf16.msra.mxu1 %v8533_v50  ;;  %v8581_v52 = vld [vmem:[#allocation8 + $0x680] sm:$0xff]   ;;  %v7042_v50 = vcombine.low %v1587_v11, %v1587_v11  ;;  %v8602_v11 = vld [vmem:[#allocation8 + $0x7c8] sm:$0xff]  }
 0x313   : > { %7721 = vmatprep.subr.bf16.mxu1 %v8536_v54  ;;  %v7047_v54 = vcombine.high %v1589_v40, %v1589_v40 }
 0x315   : > { %7872 = vmatpush3.bf16.msra.mxu0 %v8531_v53  ;;  %v8584_v53 = vld [vmem:[#allocation8 + $0x6c8] sm:$0xff]  }
 0x316   : > { %7873 = vmatprep.subr.bf16.mxu0 %v8534_v44  ;;  %7722 = vmatpush3.bf16.msra.mxu1 %v8537_v56  ;;  %v8585_v44 = vld [vmem:[#allocation8 + $0x688] sm:$0xff]   ;;  %v8586_v56 = vld [vmem:[#allocation8 + $0x6d0] sm:$0xff]  }
 0x317   : > { %7723 = vmatprep.subr.bf16.mxu1 %v8540_v58  ;;  %v8588_v58 = vld [vmem:[#allocation8 + $0x6d8] sm:$0xff]  }
 0x319   : > { %7874 = vmatpush3.bf16.msra.mxu0 %v8535_v57  ;;  %v8587_v57 = vld [vmem:[#allocation8 + $0x690] sm:$0xff]  }
 0x31a   : > { %7875 = vmatprep.subr.bf16.mxu0 %v8538_v55  ;;  %7724 = vmatpush3.bf16.msra.mxu1 %v8541_v37  ;;  %v8589_v55 = vld [vmem:[#allocation8 + $0x698] sm:$0xff]   ;;  %v8590_v37 = vld [vmem:[#allocation8 + $0x6e0] sm:$0xff]  }
 0x31b   : > { %7753 = vmatprep.subr.bf16.mxu1 %v8544_v60  ;;  %v8592_v60 = vld [vmem:[#allocation8 + $0x6e8] sm:$0xff]  }
 0x31d   : > { %7876 = vmatpush3.bf16.msra.mxu0 %v8539_v59  ;;  %4072 = vmatmul.mubr.bf16.vlgmr.msra.gmra.mrb[20].mxu1 %v7034_v0  ;;  %v8591_v59 = vld [vmem:[#allocation8 + $0x6a0] sm:$0xff]  }
 0x31e   : > { %7877 = vmatprep.subr.bf16.mxu0 %v8542_v61  ;;  %7754 = vmatpush3.bf16.msra.mxu1 %v8545_v63  ;;  %v8593_v61 = vld [vmem:[#allocation8 + $0x6a8] sm:$0xff]   ;;  %v8594_v63 = vld [vmem:[#allocation8 + $0x6f0] sm:$0xff]  }
 0x31f   : > { %4151 = vmatprep.mubr.bf16.mxu1 %v7039_v3  ;;  %7755 = vmatprep.subr.bf16.mxu1 %v8548_v2 }
 0x321   : > { %7878 = vmatpush3.bf16.msra.mxu0 %v8543_v1 }
 0x322   : > { %7756 = vmatpush3.bf16.msra.mxu1 %v8549_v5 }
 0x323   : > { %7757 = vmatprep.subr.bf16.mxu1 %v8550_v6  ;;  %v8595_v6 = vld [vmem:[#allocation8 + $0x6b0] sm:$0xff]  }
 0x324   : > { %4352 = vmatmul.mubr.bf16.vlgmr.msra.gmra.mrb[28].mxu0 %v7048_v7 }
 0x326   : > { %7758 = vmatpush3.bf16.msra.mxu1 %v8551_v8  ;;  %v8596_v8 = vld [vmem:[#allocation8 + $0x6f8] sm:$0xff]  }
 0x327   : > { %7759 = vmatprep.subr.bf16.mxu1 %v8552_v9 }
 0x32a   : > { %7760 = vmatpush3.bf16.msra.mxu1 %v8553_v12 }
 0x32b   : > { %7761 = vmatprep.subr.bf16.mxu1 %v8554_v43 }
 0x32e   : > { %7762 = vmatpush3.bf16.msra.mxu1 %v8555_v10  ;;  %v8597_v10 = vld [vmem:[#allocation8 + $0x6b8] sm:$0xff]  }
 0x32f   : > { %7763 = vmatprep.subr.bf16.mxu1 %v8556_v18 }
 0x332   : > { %7764 = vmatpush3.bf16.msra.mxu1 %v8557_v13 }
 0x333   : > { %7765 = vmatprep.subr.bf16.mxu1 %v8558_v38  ;;  %v8598_v38 = vld [vmem:[#allocation8 + $0x7c0] sm:$0xff]  }
 0x336   : > { %7766 = vmatpush3.bf16.msra.mxu1 %v8559_v14 }
 0x337   : > { %7767 = vmatprep.subr.bf16.mxu1 %v8560_v15  ;;  %v1591_v15 = vld [vmem:[#allocation2 + $0x78] sm:$0xff] }
 0x33a   : > { %7768 = vmatpush3.bf16.msra.mxu1 %v8561_v51  ;;  %v8599_v51 = vld [vmem:[#allocation8 + $0x780] sm:$0xff]  }
 0x33b   : > { %7797 = vmatprep.subr.bf16.mxu1 %v8562_v16  ;;  %v7046_v16 = vcombine.low %v1589_v40, %v1589_v40 }
 0x33d   : > { %4152 = vmatmul.mubr.bf16.vlgmr.msra.gmra.mrb[24].mxu1 %v7038_v19  ;;  %v8603_v19 = vld [vmem:[#allocation8 + $0x788] sm:$0xff]  }
 0x33e   : > { %7798 = vmatpush3.bf16.msra.mxu1 %v8563_v17  ;;  %4231 = vmatprep.mubr.bf16.mxu1 %v7043_v22  ;;  %v7051_v17 = vcombine.high %v1591_v15, %v1591_v15  ;;  %v8605_v22 = vld [vmem:[#allocation8 + $0x790] sm:$0xff]  }
 0x33f   : > { %7799 = vmatprep.subr.bf16.mxu1 %v8566_v4  ;;  %v8604_v4 = vld [vmem:[#allocation8 + $0x7d0] sm:$0xff]  }
 0x342   : > { %7800 = vmatpush3.bf16.msra.mxu1 %v8567_v23  ;;  %v8606_v23 = vld [vmem:[#allocation8 + $0x7d8] sm:$0xff]  }
 0x343   : > { %7801 = vmatprep.subr.bf16.mxu1 %v8568_v21  ;;  %v8607_v21 = vld [vmem:[#allocation8 + $0x798] sm:$0xff]  }
 0x346   : > { %7802 = vmatpush3.bf16.msra.mxu1 %v8569_v20  ;;  %v8608_v20 = vld [vmem:[#allocation8 + $0x7e0] sm:$0xff]  }
 0x347   : > { %7803 = vmatprep.subr.bf16.mxu1 %v8570_v24  ;;  %v8609_v24 = vld [vmem:[#allocation8 + $0x7a0] sm:$0xff]  }
 0x34a   : > { %7804 = vmatpush3.bf16.msra.mxu1 %v8571_v25  ;;  %v8610_v25 = vld [vmem:[#allocation8 + $0x7e8] sm:$0xff]  }
 0x34b   : > { %7805 = vmatprep.subr.bf16.mxu1 %v8572_v27  ;;  %v8611_v27 = vld [vmem:[#allocation8 + $0x7a8] sm:$0xff]  }
 0x34d   : > { %v7571_v31 = vpop.f32.mrb[0].mxu1 }
 0x34e   : > { %7806 = vmatpush3.bf16.msra.mxu1 %v8573_v28  ;;  %v7572_v33 = vpop.f32.mrb[1].mxu1  ;;  %v8612_v28 = vld [vmem:[#allocation8 + $0x7f0] sm:$0xff]  }
 0x34f   : > { %7807 = vmatprep.subr.bf16.mxu1 %v8574_v29  ;;  %v7573_v34 = vadd.f32 %v7572_v33, %v7571_v31  ;;  %v7574_v26 = vpop.f32.mrb[2].mxu1  ;;  %v8613_v33 = vld [vmem:[#allocation8 + $0x7b0] sm:$0xff]  }
 0x350   : > { %v7575_v35 = vpop.f32.mrb[3].mxu1  ;;  %v8614_v26 = vld [vmem:[#allocation8 + $0x7f8] sm:$0xff]  }
 0x351   : > { %v3794_v2 = vadd.f32 %v7573_v34, %v7019_v62 }
 0x352   : > { %7808 = vmatpush3.bf16.msra.mxu1 %v8575_v30 }
 0x353   : > { %7809 = vmatprep.subr.bf16.mxu1 %v8576_v32 }
 0x356   : > { %7810 = vmatpush3.bf16.msra.mxu1 %v8577_v36 }
 0x357   : > { %v7659_v41 = vpop.f32.mrb[8].mxu0  ;;  %7811 = vmatprep.subr.bf16.mxu1 %v8578_v39 }
 0x358   : > { %v7660_v42 = vpop.f32.mrb[9].mxu0 }
 0x359   : > { %v9730_v46 = vadd.f32 %v7660_v42, %v7659_v41  ;;  %v7662_v47 = vpop.f32.mrb[10].mxu0  ;;  %v8615_v41 = vld [vmem:[#allocation8 + $0x7b8] sm:$0xff]  }
 0x35a   : > { %v7663_v49 = vpop.f32.mrb[11].mxu0  ;;  %7812 = vmatpush3.bf16.msra.mxu1 %v8579_v45 }
 0x35b   : > { %7841 = vmatprep.subr.bf16.mxu1 %v8580_v48  ;;  %v7050_v48 = vcombine.low %v1591_v15, %v1591_v15 }
 0x35d   : > { %4232 = vmatmul.mubr.bf16.vlgmr.msra.gmra.mrb[28].mxu1 %v7042_v50 }
 0x35e   : > { %7842 = vmatpush3.bf16.msra.mxu1 %v8581_v52  ;;  %4311 = vmatprep.mubr.bf16.mxu1 %v7047_v54 }
 0x35f   : > { %7843 = vmatprep.subr.bf16.mxu1 %v8584_v53 }
 0x362   : > { %7844 = vmatpush3.bf16.msra.mxu1 %v8585_v44 }
 0x363   : > { %7845 = vmatprep.subr.bf16.mxu1 %v8586_v56 }
 0x366   : > { %7846 = vmatpush3.bf16.msra.mxu1 %v8587_v57 }
 0x367   : > { %7847 = vmatprep.subr.bf16.mxu1 %v8588_v58 }
 0x36a   : > { %7848 = vmatpush3.bf16.msra.mxu1 %v8589_v55 }
 0x36b   : > { %7849 = vmatprep.subr.bf16.mxu1 %v8590_v37 }
 0x36e   : > { %7850 = vmatpush3.bf16.msra.mxu1 %v8591_v59 }
 0x36f   : > { %7851 = vmatprep.subr.bf16.mxu1 %v8592_v60 }
 0x370   : > { %v7593_v0 = vpop.f32.mrb[4].mxu1 }
 0x371   : > { %v7594_v1 = vpop.f32.mrb[5].mxu1 }
 0x372   : > { %v7595_v3 = vadd.f32 %v7594_v1, %v7593_v0  ;;  %v7596_v5 = vpop.f32.mrb[6].mxu1  ;;  %7852 = vmatpush3.bf16.msra.mxu1 %v8593_v61 }
 0x373   : > { %v7597_v7 = vpop.f32.mrb[7].mxu1  ;;  %7853 = vmatprep.subr.bf16.mxu1 %v8594_v63 }
 0x374   : > { %v3834_v9 = vadd.f32 %v7595_v3, %v3794_v2 }
 0x376   : > { %7854 = vmatpush3.bf16.msra.mxu1 %v8595_v6 }
 0x377   : > { %v7703_v12 = vpop.f32.mrb[12].mxu0  ;;  %7855 = vmatprep.subr.bf16.mxu1 %v8596_v8 }
 0x378   : > { %v7704_v43 = vpop.f32.mrb[13].mxu0 }
 0x379   : > { %v9735_v18 = vadd.f32 %v7704_v43, %v7703_v12  ;;  %v7706_v13 = vpop.f32.mrb[14].mxu0 }
 0x37a   : > { %v7707_v14 = vpop.f32.mrb[15].mxu0  ;;  %7856 = vmatpush3.bf16.msra.mxu1 %v8597_v10 }
 0x37b   : > { %7885 = vmatprep.subr.bf16.mxu1 %v8598_v38 }
 0x37d   : > { %4312 = vmatmul.mubr.bf16.vlgmr.msra.gmra.mrb[32].mxu1 %v7046_v16 }
 0x37e   : > { %7886 = vmatpush3.bf16.msra.mxu1 %v8599_v51  ;;  %4391 = vmatprep.mubr.bf16.mxu1 %v7051_v17 }
 0x37f   : > { %7887 = vmatprep.subr.bf16.mxu1 %v8602_v11 }
 0x382   : > { %7888 = vmatpush3.bf16.msra.mxu1 %v8603_v19 }
 0x383   : > { %7889 = vmatprep.subr.bf16.mxu1 %v8604_v4 }
 0x386   : > { %7890 = vmatpush3.bf16.msra.mxu1 %v8605_v22 }
 0x387   : > { %7891 = vmatprep.subr.bf16.mxu1 %v8606_v23 }
 0x38a   : > { %7892 = vmatpush3.bf16.msra.mxu1 %v8607_v21 }
 0x38b   : > { %7893 = vmatprep.subr.bf16.mxu1 %v8608_v20 }
 0x38e   : > { %7894 = vmatpush3.bf16.msra.mxu1 %v8609_v24 }
 0x38f   : > { %7895 = vmatprep.subr.bf16.mxu1 %v8610_v25 }
 0x390   : > { %v7615_v29 = vpop.f32.mrb[8].mxu1 }
 0x391   : > { %v7616_v30 = vpop.f32.mrb[9].mxu1 }
 0x392   : > { %v7617_v31 = vadd.f32 %v7616_v30, %v7615_v29  ;;  %v7618_v32 = vpop.f32.mrb[10].mxu1  ;;  %7896 = vmatpush3.bf16.msra.mxu1 %v8611_v27 }
 0x393   : > { %v7619_v34 = vpop.f32.mrb[11].mxu1  ;;  %7897 = vmatprep.subr.bf16.mxu1 %v8612_v28 }
 0x394   : > { %v3874_v35 = vadd.f32 %v7617_v31, %v3834_v9 }
 0x396   : > { %7898 = vmatpush3.bf16.msra.mxu1 %v8613_v33 }
 0x397   : > { %v7747_v36 = vpop.f32.mrb[16].mxu0  ;;  %7899 = vmatprep.subr.bf16.mxu1 %v8614_v26 }
 0x398   : > { %v7748_v39 = vpop.f32.mrb[17].mxu0 }
 0x399   : > { %v7749_v42 = vadd.f32 %v7748_v39, %v7747_v36  ;;  %v7750_v45 = vpop.f32.mrb[18].mxu0 }
 0x39a   : > { %v7751_v47 = vpop.f32.mrb[19].mxu0  ;;  %7900 = vmatpush3.bf16.msra.mxu1 %v8615_v41 }
 0x39d   : > { %4392 = vmatmul.mubr.bf16.vlgmr.msra.gmra.mrb[36].mxu1 %v7050_v48 }
 0x3b0   : > { %v7637_v49 = vpop.f32.mrb[12].mxu1 }
 0x3b1   : > { %v7638_v40 = vpop.f32.mrb[13].mxu1 }
 0x3b2   : > { %v7639_v52 = vadd.f32 %v7638_v40, %v7637_v49  ;;  %v7640_v50 = vpop.f32.mrb[14].mxu1 }
 0x3b3   : > { %v7641_v53 = vpop.f32.mrb[15].mxu1 }
 0x3b4   : > { %v3914_v54 = vadd.f32 %v7639_v52, %v3874_v35 }
 0x3b6   : > { %v3954_v57 = vadd.f32 %v9730_v46, %v3914_v54 }
 0x3b7   : > { %v7791_v44 = vpop.f32.mrb[20].mxu0 }
 0x3b8   : > { %v7792_v56 = vpop.f32.mrb[21].mxu0 }
 0x3b9   : > { %v7793_v58 = vadd.f32 %v7792_v56, %v7791_v44  ;;  %v7794_v55 = vpop.f32.mrb[22].mxu0 }
 0x3ba   : > { %v7795_v37 = vpop.f32.mrb[23].mxu0 }
 0x3d0   : > { %v7681_v59 = vpop.f32.mrb[16].mxu1 }
 0x3d1   : > { %v7682_v60 = vpop.f32.mrb[17].mxu1 }
 0x3d2   : > { %v7683_v61 = vadd.f32 %v7682_v60, %v7681_v59  ;;  %v7684_v62 = vpop.f32.mrb[18].mxu1 }
 0x3d3   : > { %v7685_v63 = vpop.f32.mrb[19].mxu1 }
 0x3d4   : > { %v3994_v0 = vadd.f32 %v7683_v61, %v3954_v57 }
 0x3d6   : > { %v4034_v3 = vadd.f32 %v9735_v18, %v3994_v0 }
 0x3d7   : > { %v7835_v1 = vpop.f32.mrb[24].mxu0 }
 0x3d8   : > { %v7836_v2 = vpop.f32.mrb[25].mxu0 }
 0x3d9   : > { %v7837_v5 = vadd.f32 %v7836_v2, %v7835_v1  ;;  %v7838_v6 = vpop.f32.mrb[26].mxu0 }
 0x3da   : > { %v7839_v7 = vpop.f32.mrb[27].mxu0 }
 0x3f0   : > { %v7725_v8 = vpop.f32.mrb[20].mxu1 }
 0x3f1   : > { %v7726_v9 = vpop.f32.mrb[21].mxu1 }
 0x3f2   : > { %v7727_v12 = vadd.f32 %v7726_v9, %v7725_v8  ;;  %v7728_v46 = vpop.f32.mrb[22].mxu1 }
 0x3f3   : > { %v7729_v43 = vpop.f32.mrb[23].mxu1 }
 0x3f4   : > { %v4074_v10 = vadd.f32 %v7727_v12, %v4034_v3 }
 0x3f6   : > { %v4114_v14 = vadd.f32 %v7749_v42, %v4074_v10 }
 0x3f7   : > { %v7879_v13 = vpop.f32.mrb[28].mxu0 }
 0x3f8   : > { %v7880_v38 = vpop.f32.mrb[29].mxu0 }
 0x3f9   : > { %v7881_v15 = vadd.f32 %v7880_v38, %v7879_v13  ;;  %v7882_v51 = vpop.f32.mrb[30].mxu0 }
 0x3fa   : > { %v7883_v16 = vpop.f32.mrb[31].mxu0 }
 0x410   : > { %v7769_v11 = vpop.f32.mrb[24].mxu1 }
 0x411   : > { %v7770_v17 = vpop.f32.mrb[25].mxu1 }
 0x412   : > { %v7771_v19 = vadd.f32 %v7770_v17, %v7769_v11  ;;  %v7772_v4 = vpop.f32.mrb[26].mxu1 }
 0x413   : > { %v7773_v18 = vpop.f32.mrb[27].mxu1 }
 0x414   : > { %v4154_v22 = vadd.f32 %v7771_v19, %v4114_v14 }
 0x416   : > { %v4194_v23 = vadd.f32 %v7793_v58, %v4154_v22 }
 0x430   : > { %v7813_v21 = vpop.f32.mrb[28].mxu1 }
 0x431   : > { %v7814_v20 = vpop.f32.mrb[29].mxu1 }
 0x432   : > { %v7815_v24 = vadd.f32 %v7814_v20, %v7813_v21  ;;  %v7816_v25 = vpop.f32.mrb[30].mxu1 }
 0x433   : > { %v7817_v27 = vpop.f32.mrb[31].mxu1 }
 0x434   : > { %v4234_v28 = vadd.f32 %v7815_v24, %v4194_v23 }
 0x436   : > { %v4274_v29 = vadd.f32 %v7837_v5, %v4234_v28 }
 0x450   : > { %v7857_v30 = vpop.f32.mrb[32].mxu1 }
 0x451   : > { %v7858_v31 = vpop.f32.mrb[33].mxu1 }
 0x452   : > { %v7859_v32 = vadd.f32 %v7858_v31, %v7857_v30  ;;  %v7860_v33 = vpop.f32.mrb[34].mxu1 }
 0x453   : > { %v7861_v34 = vpop.f32.mrb[35].mxu1 }
 0x454   : > { %v4314_v26 = vadd.f32 %v7859_v32, %v4274_v29 }
 0x456   : > { %v4354_v35 = vadd.f32 %v7881_v15, %v4314_v26 }
 0x470   : > { %v7901_v36 = vpop.f32.mrb[36].mxu1 }
 0x471   : > { %v7902_v39 = vpop.f32.mrb[37].mxu1 }
 0x472   : > { %v7903_v41 = vadd.f32 %v7902_v39, %v7901_v36  ;;  %v7904_v42 = vpop.f32.mrb[38].mxu1 }
 0x473   : > { %v7905_v45 = vpop.f32.mrb[39].mxu1 }
 0x474   : > { %v4394_v47 = vadd.f32 %v7903_v41, %v4354_v35 }
 0x476   : > { %4399 = vst [vmem:[%s9449_s16] sm:$0xff] %v4394_v47 }
 0x477 PF: > { %p7308_p8 = scmp.ne.s32.totalorder %s9183_s22, 1 }
 0x478   : > { %v8616_v48 = vld [vmem:[#allocation11] sm:$0xff] (!%p7308_p8)   ;;  %v9078_v49 = vmov (!%p7308_p8), 0.0   ;;  %v8617_v40 = vld [vmem:[#allocation11 + $0x8] sm:$0xff] (!%p7308_p8)   ;;  %vm9079_vm5 = vmmov (!%p7308_p8), 0   ;;  %v8618_v52 = vld [vmem:[#allocation11 + $0x10] sm:$0xff] (!%p7308_p8)   ;;  %vm4526_vm6 = vcmask (!%p7308_p8), 130048   ;;  %v4571_v7 = vlaneseq (!%p7308_p8) }
 0x479   : > { %4403 = sbr.rel (%p7308_p8) target bundleno = 3227 (0xc9b), region = 124  ;;  %8017 = vmatprep.subr.bf16.mxu0 (!%p7308_p8), %v9078_v49  ;;  %8043 = vmatprep.subr.bf16.mxu1 (!%p7308_p8), %v9078_v49  ;;  %v8619_v50 = vld [vmem:[#allocation11 + $0x18] sm:$0xff] (!%p7308_p8)   ;;  %v8620_v53 = vld [vmem:[#allocation11 + $0x20] sm:$0xff] (!%p7308_p8)   ;;  %v8621_v54 = vld [vmem:[#allocation11 + $0x28] sm:$0xff] (!%p7308_p8)   ;;  %s9927_s27 = sld [smem:[#allocation32_spill]] (!%p7308_p8) }
 0x47a   : > { %8018 = vmatpush3.bf16.msra.mxu0 (!%p7308_p8), %v8616_v48  ;;  %8033 = vmatprep.mubr.msk.bf16.mxu0 (!%p7308_p8), %vm9079_vm5, %v9078_v49  ;;  %v8622_v44 = vld [vmem:[#allocation11 + $0x30] sm:$0xff] (!%p7308_p8)   ;;  %v8623_v56 = vld [vmem:[#allocation11 + $0x38] sm:$0xff] (!%p7308_p8)   ;;  %v8626_v58 = vld [vmem:[#allocation11 + $0x40] sm:$0xff] (!%p7308_p8)   ;;  %v9749_v8 = vshrl.u32 (!%p7308_p8), %v4571_v7, 7  ;;  %v9080_v48 = vmov (!%p7308_p8), 0   ;;  %s9928_s24 = sld [smem:[#allocation33_spill]] (!%p7308_p8) }
 0x47b   : > { %8019 = vmatprep.subr.bf16.mxu0 (!%p7308_p8), %v9078_v49  ;;  %8059 = vmatprep.mubr.msk.bf16.mxu1 (!%p7308_p8), %vm9079_vm5, %v9078_v49  ;;  %v8624_v57 = vld [vmem:[#allocation9] sm:$0xff] (!%p7308_p8)   ;;  %v8627_v55 = vld [vmem:[#allocation11 + $0x48] sm:$0xff] (!%p7308_p8)   ;;  %v8628_v37 = vld [vmem:[#allocation11 + $0x50] sm:$0xff] (!%p7308_p8)   ;;  %s9929_s18 = sld [smem:[#allocation34_spill]] (!%p7308_p8)  ;;  %s9930_s12 = sld [smem:[#allocation35_spill]] (!%p7308_p8) }
 0x47c   : > { %8044 = vmatpush3.bf16.msra.mxu1 (!%p7308_p8), %v8626_v58  ;;  %v8629_v59 = vld [vmem:[#allocation11 + $0x58] sm:$0xff] (!%p7308_p8)   ;;  %v8630_v60 = vld [vmem:[#allocation11 + $0x60] sm:$0xff] (!%p7308_p8)   ;;  %v8631_v3 = vld [vmem:[#allocation11 + $0x68] sm:$0xff] (!%p7308_p8)   ;;  %v9752_v9 = vsub.s32 (!%p7308_p8), 0, %v9749_v8  ;;  %v9755_v46 = vsub.s32 (!%p7308_p8), 1, %v9749_v8 }
 0x47d   : > { %8045 = vmatprep.subr.bf16.mxu1 (!%p7308_p8), %v9078_v49  ;;  %v8625_v2 = vld [vmem:[%s9866_s5] sm:$0xff] (!%p7308_p8)   ;;  %v8632_v5 = vld [vmem:[#allocation11 + $0x70] sm:$0xff] (!%p7308_p8)   ;;  %v4424_v12 = vld [vmem:[#allocation12] sm:$0x3] (!%p7308_p8) }
 0x47e   : > { %8020 = vmatpush3.bf16.msra.mxu0 (!%p7308_p8), %v8617_v40  ;;  %v8633_v6 = vld [vmem:[#allocation11 + $0x78] sm:$0xff] (!%p7308_p8)   ;;  %v4574_v43 = vrot.slane (!%p7308_p8), %v4424_v12, %v9752_v9  ;;  %v4580_v10 = vrot.slane (!%p7308_p8), %v4424_v12, %v9755_v46  ;;  %v8635_v22 = vld [vmem:[#allocation14] ss:$8 sps:$4 sm:$0xff] (!%p7308_p8)   ;;  %v8637_v23 = vld [vmem:[#allocation14 + $0x4] ss:$8 sps:$4 sm:$0xff] (!%p7308_p8)  }
 0x47f   : > { %8021 = vmatprep.subr.bf16.mxu0 (!%p7308_p8), %v9078_v49  ;;  %v8640_v21 = vld [vmem:[#allocation14 + $0x14] ss:$8 sps:$4 sm:$0xff] (!%p7308_p8)   ;;  %v8638_v20 = vld [vmem:[#allocation14 + $0x10] ss:$8 sps:$4 sm:$0xff] (!%p7308_p8)   ;;  %v8643_v24 = vld [vmem:[#allocation14 + $0x24] ss:$8 sps:$4 sm:$0xff] (!%p7308_p8)  }
 0x480   : > { %8046 = vmatpush3.bf16.msra.mxu1 %v8627_v55  ;;  %v8641_v25 = vld [vmem:[#allocation14 + $0x20] ss:$8 sps:$4 sm:$0xff]   ;;  %v8646_v27 = vld [vmem:[#allocation14 + $0x34] ss:$8 sps:$4 sm:$0xff]   ;;  %v8644_v28 = vld [vmem:[#allocation14 + $0x30] ss:$8 sps:$4 sm:$0xff]  }
 0x481   : > { %8047 = vmatprep.subr.bf16.mxu1 %v9078_v49  ;;  %v8649_v29 = vld [vmem:[#allocation14 + $0x44] ss:$8 sps:$4 sm:$0xff]   ;;  %v8647_v30 = vld [vmem:[#allocation14 + $0x40] ss:$8 sps:$4 sm:$0xff]   ;;  %v8652_v31 = vld [vmem:[#allocation14 + $0x54] ss:$8 sps:$4 sm:$0xff]  }
 0x482   : > { %8022 = vmatpush3.bf16.msra.mxu0 %v8618_v52  ;;  %v8650_v32 = vld [vmem:[#allocation14 + $0x50] ss:$8 sps:$4 sm:$0xff]   ;;  %v8634_v39 = vld [vmem:[%s9866_s5 + $0x8] sm:$0xff]   ;;  %v8655_v41 = vld [vmem:[#allocation14 + $0x64] ss:$8 sps:$4 sm:$0xff]  }
 0x483   : > { %8023 = vmatprep.subr.bf16.mxu0 %v9078_v49  ;;  %v8653_v42 = vld [vmem:[#allocation14 + $0x60] ss:$8 sps:$4 sm:$0xff]   ;;  %v8658_v45 = vld [vmem:[#allocation14 + $0x74] ss:$8 sps:$4 sm:$0xff]   ;;  %v8656_v47 = vld [vmem:[#allocation14 + $0x70] ss:$8 sps:$4 sm:$0xff]  }
 0x484   : > { %8048 = vmatpush3.bf16.msra.mxu1 %v8628_v37  ;;  %v5054_v12 = vld [vmem:[#allocation15 + $0x48] sm:$0xff] }
 0x485   : > { %8049 = vmatprep.subr.bf16.mxu1 %v9078_v49 }
 0x486   : > { %8024 = vmatpush3.bf16.msra.mxu0 %v8619_v50 }
 0x487   : > { %8025 = vmatprep.subr.bf16.mxu0 %v9078_v49 }
 0x488   : > { %8050 = vmatpush3.bf16.msra.mxu1 %v8629_v59 }
 0x489   : > { %8051 = vmatprep.subr.bf16.mxu1 %v9078_v49 }
 0x48a   : > { %8026 = vmatpush3.bf16.msra.mxu0 %v8620_v53 }
 0x48b   : > { %8027 = vmatprep.subr.bf16.mxu0 %v9078_v49 }
 0x48c   : > { %8052 = vmatpush3.bf16.msra.mxu1 %v8630_v60 }
 0x48d   : > { %8053 = vmatprep.subr.bf16.mxu1 %v9078_v49 }
 0x48e   : > { %8028 = vmatpush3.bf16.msra.mxu0 %v8621_v54 }
 0x48f   : > { %8029 = vmatprep.subr.bf16.mxu0 %v9078_v49 }
 0x490   : > { %8054 = vmatpush3.bf16.msra.mxu1 %v8631_v3  ;;  %v5046_v3 = vld [vmem:[#allocation15 + $0x8] sm:$0xff] }
 0x491   : > { %8055 = vmatprep.subr.bf16.mxu1 %v9078_v49 }
 0x492   : > { %8030 = vmatpush3.bf16.msra.mxu0 %v8622_v44 }
 0x493   : > { %8031 = vmatprep.subr.bf16.mxu0 %v9078_v49 }
 0x494   : > { %8056 = vmatpush3.bf16.msra.mxu1 %v8632_v5  ;;  %v5050_v5 = vld [vmem:[#allocation15 + $0x28] sm:$0xff] }
 0x495   : > { %8057 = vmatprep.subr.bf16.mxu1 %v9078_v49  ;;  %v7353_v7 = vcombine.high %v5046_v3, %v5050_v5 }
 0x496   : > { %8032 = vmatpush3.bf16.msra.mxu0 %v8623_v56 }
 0x497   : > { %8037 = vmatprep.subr.bf16.mxu0 %v9078_v49 }
 0x498   : > { %8058 = vmatpush3.bf16.msra.mxu1 %v8633_v6  ;;  %v7352_v6 = vcombine.low %v5046_v3, %v5050_v5  ;;  %v4954_v3 = vsub.s32 2, %v9749_v8  ;;  %v4976_v5 = vsub.s32 3, %v9749_v8 }
 0x499   : > { %8034 = vmatmul.mubr.bf16.vlgmr.msra.gmra.mrb[0].mxu0 %v8624_v57  ;;  %4859 = vmatprep.subr.bf16.mxu1 %v8637_v23 }
 0x49a   : > { %8039 = vmatprep.mubr.msk.bf16.mxu0 %vm9079_vm5, %v9078_v49 }
 0x56c   : > { %v4513_v61 = vpop.f32.mrb[0].mxu0 }
 0x56d   : > { %v8035_v62 = vpop.f32.mrb[1].mxu0 }
 0x56e   : > { %v4516_v63 = vpop.f32.mrb[2].mxu0 }
 0x56f   : > { %v4520_v0 = vpack.c.bf16 %v4516_v63, %v4513_v61  ;;  %v8036_v1 = vpop.f32.mrb[3].mxu0 }
 0x571   : > { %8038 = vmatpush3.bf16.msra.mxu0 %v4520_v0 }
 0x572   : > { %8063 = vmatprep.subr.bf16.mxu0 %v9078_v49 }
 0x574   : > { %8040 = vmatmul.mubr.msk.bf16.vlgmr.msra.gmra.mrb[4].mxu0 %vm4526_vm6, %v8625_v2 }
 0x575   : > { %8065 = vmatprep.mubr.msk.bf16.mxu0 %vm9079_vm5, %v9078_v49  ;;  %v4607_v49 = vld [vmem:[#allocation12 + $0x2] sm:$0x3] }
 0x576   : > { %v4750_v40 = vrot.slane %v4607_v49, %v9752_v9  ;;  %v4756_v52 = vrot.slane %v4607_v49, %v9755_v46  ;;  %v5130_v49 = vld [vmem:[#allocation15 + $0x2a8] sm:$0xff] }
 0x647   : > { %v4564_v13 = vpop.f32.mrb[4].mxu0 }
 0x648   : > { %v4575_v38 = vmul.f32 %v4574_v43, %v4564_v13  ;;  %v8041_v14 = vpop.f32.mrb[5].mxu0 }
 0x649   : > { %v4567_v15 = vpop.f32.mrb[6].mxu0  ;;  %v5066_v14 = vld [vmem:[#allocation15 + $0xa8] sm:$0xff] }
 0x64a   : > { %v4581_v51 = vadd.f32 %v4580_v10, %v4575_v38  ;;  %v4576_v16 = vmul.f32 %v4574_v43, %v4567_v15  ;;  %v8042_v11 = vpop.f32.mrb[7].mxu0  ;;  %v5058_v43 = vld [vmem:[#allocation15 + $0x68] sm:$0xff] }
 0x64b   : > { %v7360_v13 = vcombine.low %v5054_v12, %v5058_v43  ;;  %v5062_v38 = vld [vmem:[#allocation15 + $0x88] sm:$0xff] }
 0x64c   : > { %v4582_v17 = vadd.f32 %v4580_v10, %v4576_v16  ;;  %v4583_v19 = vmax.f32 %v4581_v51, 0.0  ;;  %v7361_v10 = vcombine.high %v5054_v12, %v5058_v43  ;;  %v7369_v15 = vcombine.high %v5062_v38, %v5066_v14  ;;  %v5070_v16 = vld [vmem:[#allocation15 + $0xc8] sm:$0xff] }
 0x64d   : > { %v7368_v51 = vcombine.low %v5062_v38, %v5066_v14  ;;  %v5074_v11 = vld [vmem:[#allocation15 + $0xe8] sm:$0xff] }
 0x64e   : > { %v4584_v4 = vmax.f32 %v4582_v17, 0.0  ;;  %v7377_v17 = vcombine.high %v5070_v16, %v5074_v11 }
 0x650   : > { %v4585_v18 = vpack.c.bf16 %v4584_v4, %v4583_v19  ;;  %v7376_v19 = vcombine.low %v5070_v16, %v5074_v11  ;;  %v5078_v4 = vld [vmem:[#allocation15 + $0x108] sm:$0xff] }
 0x652   : > { %8060 = vmatmul.mubr.bf16.vlgmr.msra.gmra.mrb[0].mxu1 %v4585_v18  ;;  %v5082_v18 = vld [vmem:[#allocation15 + $0x128] sm:$0xff] }
 0x653   : > { %4860 = vmatpush1.bf16.msra.mxu1 %v8635_v22  ;;  %4891 = vmatprep.mubr.bf16.mxu1 %v9080_v48  ;;  %v7385_v22 = vcombine.high %v5078_v4, %v5082_v18  ;;  %v7384_v23 = vcombine.low %v5078_v4, %v5082_v18 }
 0x654   : > { %4861 = vmatprep.subr.bf16.mxu1 %v8640_v21  ;;  %v5086_v21 = vld [vmem:[#allocation15 + $0x148] sm:$0xff] }
 0x657   : > { %4862 = vmatpush1.bf16.msra.mxu1 %v8638_v20  ;;  %v5090_v20 = vld [vmem:[#allocation15 + $0x168] sm:$0xff] }
 0x658   : > { %4863 = vmatprep.subr.bf16.mxu1 %v8643_v24  ;;  %v7393_v24 = vcombine.high %v5086_v21, %v5090_v20 }
 0x65b   : > { %4864 = vmatpush1.bf16.msra.mxu1 %v8641_v25  ;;  %v7392_v25 = vcombine.low %v5086_v21, %v5090_v20 }
 0x65c   : > { %4865 = vmatprep.subr.bf16.mxu1 %v8646_v27  ;;  %v5094_v27 = vld [vmem:[#allocation15 + $0x188] sm:$0xff] }
 0x65f   : > { %4866 = vmatpush1.bf16.msra.mxu1 %v8644_v28  ;;  %v5098_v28 = vld [vmem:[#allocation15 + $0x1a8] sm:$0xff] }
 0x660   : > { %4867 = vmatprep.subr.bf16.mxu1 %v8649_v29  ;;  %v7401_v29 = vcombine.high %v5094_v27, %v5098_v28 }
 0x663   : > { %4868 = vmatpush1.bf16.msra.mxu1 %v8647_v30  ;;  %v7400_v30 = vcombine.low %v5094_v27, %v5098_v28  ;;  %v5045_v27 = vld [vmem:[#allocation15] sm:$0xff] }
 0x664   : > { %4869 = vmatprep.subr.bf16.mxu1 %v8652_v31  ;;  %v5102_v31 = vld [vmem:[#allocation15 + $0x1c8] sm:$0xff]  ;;  %v5049_v28 = vld [vmem:[#allocation15 + $0x20] sm:$0xff] }
 0x667   : > { %4870 = vmatpush1.bf16.msra.mxu1 %v8650_v32  ;;  %v5106_v32 = vld [vmem:[#allocation15 + $0x1e8] sm:$0xff] }
 0x668   : > { %4871 = vmatprep.subr.bf16.mxu1 %v8655_v41  ;;  %v5118_v41 = vld [vmem:[#allocation15 + $0x248] sm:$0xff] }
 0x66b   : > { %4872 = vmatpush1.bf16.msra.mxu1 %v8653_v42  ;;  %v5122_v42 = vld [vmem:[#allocation15 + $0x268] sm:$0xff] }
 0x66c   : > { %4873 = vmatprep.subr.bf16.mxu1 %v8658_v45  ;;  %v7425_v45 = vcombine.high %v5118_v41, %v5122_v42 }
 0x66f   : > { %4874 = vmatpush1.bf16.msra.mxu1 %v8656_v47  ;;  %v7424_v47 = vcombine.low %v5118_v41, %v5122_v42  ;;  %v5061_v41 = vld [vmem:[#allocation15 + $0x80] sm:$0xff] }
 0x670   : > { %5896 = vmatprep.subr.bf16.mxu1 %v7353_v7  ;;  %v5065_v42 = vld [vmem:[#allocation15 + $0xa0] sm:$0xff] }
 0x725   : > { %v4690_v33 = vpop.f32.mrb[0].mxu1 }
 0x726   : > { %v8061_v34 = vpop.f32.mrb[1].mxu1 }
 0x727   : > { %v4693_v26 = vpop.f32.mrb[2].mxu1  ;;  %v7408_v34 = vcombine.low %v5102_v31, %v5106_v32 }
 0x728   : > { %v4697_v35 = vpack.c.bf16 %v4693_v26, %v4690_v33  ;;  %v8062_v36 = vpop.f32.mrb[3].mxu1  ;;  %v7409_v33 = vcombine.high %v5102_v31, %v5106_v32  ;;  %v5110_v26 = vld [vmem:[#allocation15 + $0x208] sm:$0xff] }
 0x72a   : > { %8064 = vmatpush3.bf16.msra.mxu0 %v4697_v35  ;;  %v5114_v35 = vld [vmem:[#allocation15 + $0x228] sm:$0xff] }
 0x72b   : > { %v7417_v36 = vcombine.high %v5110_v26, %v5114_v35 }
 0x72d   : > { %8066 = vmatmul.mubr.msk.bf16.vlgmr.msra.gmra.mrb[8].mxu0 %vm4526_vm6, %v8634_v39 }
 0x72e   : > { %4936 = vmatprep.mubr.bf16.mxu0 %v9080_v48 }
 0x800   : > { %v4740_v50 = vpop.f32.mrb[8].mxu0 }
 0x801   : > { %v4751_v53 = vmul.f32 %v4750_v40, %v4740_v50  ;;  %v8067_v54 = vpop.f32.mrb[9].mxu0  ;;  %v5134_v50 = vld [vmem:[#allocation15 + $0x2c8] sm:$0xff] }
 0x802   : > { %v4743_v44 = vpop.f32.mrb[10].mxu0 }
 0x803   : > { %v4757_v56 = vadd.f32 %v4756_v52, %v4751_v53  ;;  %v4752_v57 = vmul.f32 %v4750_v40, %v4743_v44  ;;  %v8068_v58 = vpop.f32.mrb[11].mxu0  ;;  %v5138_v53 = vld [vmem:[#allocation15 + $0x2e8] sm:$0xff] }
 0x804   : > { %v7441_v54 = vcombine.high %v5134_v50, %v5138_v53  ;;  %v7440_v44 = vcombine.low %v5134_v50, %v5138_v53  ;;  %v5077_v50 = vld [vmem:[#allocation15 + $0x100] sm:$0xff] }
 0x805   : > { %v4758_v55 = vadd.f32 %v4756_v52, %v4752_v57  ;;  %v4759_v37 = vmax.f32 %v4757_v56, 0.0  ;;  %v5142_v56 = vld [vmem:[#allocation15 + $0x308] sm:$0xff]  ;;  %v5081_v53 = vld [vmem:[#allocation15 + $0x120] sm:$0xff] }
 0x806   : > { %v5146_v57 = vld [vmem:[#allocation15 + $0x328] sm:$0xff] }
 0x807   : > { %v4760_v59 = vmax.f32 %v4758_v55, 0.0  ;;  %v7449_v58 = vcombine.high %v5142_v56, %v5146_v57  ;;  %v7448_v55 = vcombine.low %v5142_v56, %v5146_v57  ;;  %v5085_v56 = vld [vmem:[#allocation15 + $0x140] sm:$0xff] }
 0x808   : > { %v5089_v57 = vld [vmem:[#allocation15 + $0x160] sm:$0xff] }
 0x809   : > { %v4761_v60 = vpack.c.bf16 %v4760_v59, %v4759_v37  ;;  %v5150_v37 = vld [vmem:[#allocation15 + $0x348] sm:$0xff] }
 0x80a   : > { %v5154_v59 = vld [vmem:[#allocation15 + $0x368] sm:$0xff] }
 0x80b   : > { %4892 = vmatmul.mubr.bf16.vlgmr.msra.gmra.mrb[4].mxu1 %v4761_v60  ;;  %v7457_v60 = vcombine.high %v5150_v37, %v5154_v59 }
 0x80c   : > { %5897 = vmatpush1.bf16.msra.mxu1 %v7352_v6 }
 0x80d   : > { %5898 = vmatprep.subr.bf16.mxu1 %v7361_v10 }
 0x810   : > { %5899 = vmatpush1.bf16.msra.mxu1 %v7360_v13 }
 0x811   : > { %5900 = vmatprep.subr.bf16.mxu1 %v7369_v15 }
 0x814   : > { %5901 = vmatpush1.bf16.msra.mxu1 %v7368_v51 }
 0x815   : > { %5902 = vmatprep.subr.bf16.mxu1 %v7377_v17 }
 0x818   : > { %5903 = vmatpush1.bf16.msra.mxu1 %v7376_v19 }
 0x819   : > { %5904 = vmatprep.subr.bf16.mxu1 %v7385_v22 }
 0x81c   : > { %5905 = vmatpush1.bf16.msra.mxu1 %v7384_v23 }
 0x81d   : > { %5906 = vmatprep.subr.bf16.mxu1 %v7393_v24 }
 0x820   : > { %5907 = vmatpush1.bf16.msra.mxu1 %v7392_v25 }
 0x821   : > { %5908 = vmatprep.subr.bf16.mxu1 %v7401_v29 }
 0x824   : > { %5909 = vmatpush1.bf16.msra.mxu1 %v7400_v30 }
 0x825   : > { %5910 = vmatprep.subr.bf16.mxu1 %v7409_v33  ;;  %v7351_v33 = vcombine.high %v5045_v27, %v5049_v28 }
 0x828   : > { %5911 = vmatpush1.bf16.msra.mxu1 %v7408_v34  ;;  %v5053_v34 = vld [vmem:[#allocation15 + $0x40] sm:$0xff] }
 0x829   : > { %5912 = vmatprep.subr.bf16.mxu1 %v7417_v36  ;;  %v7350_v36 = vcombine.low %v5045_v27, %v5049_v28  ;;  %v5157_v28 = vld [vmem:[#allocation15 + $0x380] sm:$0xff] }
 0x8de   : > { %v4893_v61 = vpop.f32.mrb[4].mxu1 }
 0x8df   : > { %v4895_v62 = vpop.f32.mrb[5].mxu1 }
 0x8e0   : > { %v4897_v63 = vpop.f32.mrb[6].mxu1 }
 0x8e1   : > { %v4902_v0 = vpack.c.bf16 %v4897_v63, %v4893_v61  ;;  %v4899_v1 = vpop.f32.mrb[7].mxu1  ;;  %v7456_v61 = vcombine.low %v5150_v37, %v5154_v59  ;;  %v5162_v63 = vld [vmem:[#allocation15 + $0x3a8] sm:$0xff]  ;;  %v5093_v37 = vld [vmem:[#allocation15 + $0x180] sm:$0xff] }
 0x8e2   : > { %v4903_v2 = vpack.c.bf16 %v4899_v1, %v4895_v62  ;;  %v5158_v62 = vld [vmem:[#allocation15 + $0x388] sm:$0xff]  ;;  %v5097_v59 = vld [vmem:[#allocation15 + $0x1a0] sm:$0xff] }
 0x8e3   : > { %v7464_v1 = vcombine.low %v5158_v62, %v5162_v63 }
 0x8e4   : > { %4904 = vmatprep.subr.bf16.mxu0 %v4903_v2  ;;  %v4778_v2 = vld [vmem:[%s9927_s27] sm:$0xf] }
 0x8e5   : > { %4905 = vmatpush1.bf16.msra.mxu0 %v4902_v0  ;;  %v7465_v0 = vcombine.high %v5158_v62, %v5162_v63  ;;  %v4951_v6 = vrot.slane %v4778_v2, %v9752_v9  ;;  %v4955_v7 = vrot.slane %v4778_v2, %v4954_v3  ;;  %v4973_v12 = vrot.slane %v4778_v2, %v9755_v46  ;;  %v5101_v62 = vld [vmem:[#allocation15 + $0x1c0] sm:$0xff] }
 0x8e6   : > { %v4977_v43 = vrot.slane %v4778_v2, %v4976_v5  ;;  %v5105_v63 = vld [vmem:[#allocation15 + $0x1e0] sm:$0xff] }
 0x8e7   : > { %v4961_v10 = vrot.slane %v4951_v6, %v9752_v9  ;;  %v4965_v13 = vrot.slane %v4955_v7, %v9752_v9  ;;  %v4983_v38 = vrot.slane %v4973_v12, %v9755_v46  ;;  %v5109_v2 = vld [vmem:[#allocation15 + $0x200] sm:$0xff]  ;;  %v7406_v7 = vcombine.low %v5101_v62, %v5105_v63 }
 0x8e8   : > { %7348 = vmatmul.mubr.msk.bf16.vlgmr.msra.gmra.mrb[12].mxu0 %vm4526_vm6, %v8634_v39  ;;  %v7416_v39 = vcombine.low %v5110_v26, %v5114_v35  ;;  %v4987_v15 = vrot.slane %v4977_v43, %v9755_v46  ;;  %v5057_v26 = vld [vmem:[#allocation15 + $0x60] sm:$0xff]  ;;  %v4998_v35 = vld [vmem:[%s9928_s24] sm:$0xf] }
 0x8e9   : > { %5034 = vmatprep.mubr.bf16.mxu0 %v9080_v48  ;;  %v5126_v48 = vld [vmem:[#allocation15 + $0x288] sm:$0xff]  ;;  %v5113_v6 = vld [vmem:[#allocation15 + $0x220] sm:$0xff] }
 0x8ea   : > { %5913 = vmatpush1.bf16.msra.mxu1 %v7416_v39  ;;  %v7433_v40 = vcombine.high %v5126_v48, %v5130_v49  ;;  %v7432_v52 = vcombine.low %v5126_v48, %v5130_v49  ;;  %v7359_v39 = vcombine.high %v5053_v34, %v5057_v26  ;;  %v5069_v48 = vld [vmem:[#allocation15 + $0xc0] sm:$0xff]  ;;  %v7415_v12 = vcombine.high %v5109_v2, %v5113_v6 }
 0x8eb   : > { %5914 = vmatprep.subr.bf16.mxu1 %v7425_v45  ;;  %v7358_v45 = vcombine.low %v5053_v34, %v5057_v26  ;;  %v5073_v49 = vld [vmem:[#allocation15 + $0xe0] sm:$0xff]  ;;  %v5166_v26 = vld [vmem:[#allocation15 + $0x3c8] sm:$0xff] }
 0x8ec   : > { %v5117_v43 = vld [vmem:[#allocation15 + $0x240] sm:$0xff] }
 0x8ed   : > { %v5169_v34 = vld [vmem:[#allocation15 + $0x3e0] sm:$0xff] }
 0x8ee   : > { %5915 = vmatpush1.bf16.msra.mxu1 %v7424_v47  ;;  %v7367_v47 = vcombine.high %v5061_v41, %v5065_v42 }
 0x8ef   : > { %5916 = vmatprep.subr.bf16.mxu1 %v7433_v40  ;;  %v7366_v40 = vcombine.low %v5061_v41, %v5065_v42 }
 0x8f2   : > { %5917 = vmatpush1.bf16.msra.mxu1 %v7432_v52  ;;  %v7375_v52 = vcombine.high %v5069_v48, %v5073_v49 }
 0x8f3   : > { %5918 = vmatprep.subr.bf16.mxu1 %v7441_v54  ;;  %v7374_v54 = vcombine.low %v5069_v48, %v5073_v49  ;;  %v5048_v48 = vld [vmem:[#allocation15 + $0x18] sm:$0xff] }
 0x8f6   : > { %5919 = vmatpush1.bf16.msra.mxu1 %v7440_v44  ;;  %v7383_v44 = vcombine.high %v5077_v50, %v5081_v53 }
 0x8f7   : > { %5920 = vmatprep.subr.bf16.mxu1 %v7449_v58  ;;  %v7382_v58 = vcombine.low %v5077_v50, %v5081_v53 }
 0x8fa   : > { %5921 = vmatpush1.bf16.msra.mxu1 %v7448_v55  ;;  %v7391_v55 = vcombine.high %v5085_v56, %v5089_v57 }
 0x8fb   : > { %5922 = vmatprep.subr.bf16.mxu1 %v7457_v60  ;;  %v7390_v60 = vcombine.low %v5085_v56, %v5089_v57  ;;  %v5059_v56 = vld [vmem:[#allocation15 + $0x70] sm:$0xff] }
 0x8fe   : > { %5923 = vmatpush1.bf16.msra.mxu1 %v7456_v61  ;;  %v7399_v61 = vcombine.high %v5093_v37, %v5097_v59 }
 0x8ff   : > { %5924 = vmatprep.subr.bf16.mxu1 %v7465_v0  ;;  %v7398_v0 = vcombine.low %v5093_v37, %v5097_v59 }
 0x902   : > { %5925 = vmatpush1.bf16.msra.mxu1 %v7464_v1  ;;  %v7407_v1 = vcombine.high %v5101_v62, %v5105_v63  ;;  %v5063_v63 = vld [vmem:[#allocation15 + $0x90] sm:$0xff] }
 0x9bb   : > { %v4938_v14 = vpop.f32.mrb[12].mxu0 }
 0x9bc   : > { %v4966_v51 = vmul.f32 %v4961_v10, %v4938_v14  ;;  %v4940_v16 = vpop.f32.mrb[13].mxu0  ;;  %v5125_v14 = vld [vmem:[#allocation15 + $0x280] sm:$0xff] }
 0x9bd   : > { %v4967_v11 = vmul.f32 %v4965_v13, %v4940_v16  ;;  %v4942_v17 = vpop.f32.mrb[14].mxu0 }
 0x9be   : > { %v4988_v19 = vadd.f32 %v4983_v38, %v4966_v51  ;;  %v4968_v4 = vmul.f32 %v4961_v10, %v4942_v17  ;;  %v4944_v18 = vpop.f32.mrb[15].mxu0  ;;  %v5121_v10 = vld [vmem:[#allocation15 + $0x260] sm:$0xff] }
 0x9bf   : > { %v4989_v22 = vadd.f32 %v4987_v15, %v4967_v11  ;;  %v4969_v23 = vmul.f32 %v4965_v13, %v4944_v18  ;;  %v7414_v13 = vcombine.low %v5109_v2, %v5113_v6  ;;  %v7422_v51 = vcombine.low %v5117_v43, %v5121_v10  ;;  %v5133_v11 = vld [vmem:[#allocation15 + $0x2c0] sm:$0xff]  ;;  %v5064_v2 = vld [vmem:[#allocation15 + $0x98] sm:$0xff] }
 0x9c0   : > { %v4990_v21 = vadd.f32 %v4983_v38, %v4968_v4  ;;  %v4992_v24 = vmax.f32 %v4988_v19, 0.0  ;;  %v7423_v38 = vcombine.high %v5117_v43, %v5121_v10  ;;  %v5137_v17 = vld [vmem:[#allocation15 + $0x2e0] sm:$0xff]  ;;  %v5068_v6 = vld [vmem:[#allocation15 + $0xb8] sm:$0xff] }
 0x9c1   : > { %v4991_v20 = vadd.f32 %v4987_v15, %v4969_v23  ;;  %v4993_v29 = vmax.f32 %v4989_v22, 0.0  ;;  %v5129_v15 = vld [vmem:[#allocation15 + $0x2a0] sm:$0xff]  ;;  %v7439_v4 = vcombine.high %v5133_v11, %v5137_v17  ;;  %v7438_v23 = vcombine.low %v5133_v11, %v5137_v17 }
 0x9c2   : > { %v4994_v25 = vmax.f32 %v4990_v21, 0.0  ;;  %v7431_v16 = vcombine.high %v5125_v14, %v5129_v15  ;;  %v7430_v19 = vcombine.low %v5125_v14, %v5129_v15  ;;  %v5141_v18 = vld [vmem:[#allocation15 + $0x300] sm:$0xff]  ;;  %v7373_v10 = vcombine.high %v5064_v2, %v5068_v6  ;;  %v5072_v14 = vld [vmem:[#allocation15 + $0xd8] sm:$0xff] }
 0x9c3   : > { %v4995_v30 = vmax.f32 %v4991_v20, 0.0  ;;  %v5145_v22 = vld [vmem:[#allocation15 + $0x320] sm:$0xff]  ;;  %v5076_v15 = vld [vmem:[#allocation15 + $0xf8] sm:$0xff] }
 0x9c4   : > { %v4996_v31 = vpack.c.bf16 %v4994_v25, %v4992_v24  ;;  %v7447_v21 = vcombine.high %v5141_v18, %v5145_v22  ;;  %v5149_v20 = vld [vmem:[#allocation15 + $0x340] sm:$0xff]  ;;  %v7446_v25 = vcombine.low %v5141_v18, %v5145_v22  ;;  %v7381_v17 = vcombine.high %v5072_v14, %v5076_v15  ;;  %v5080_v18 = vld [vmem:[#allocation15 + $0x118] sm:$0xff] }
 0x9c5   : > { %v4997_v32 = vpack.c.bf16 %v4995_v30, %v4993_v29  ;;  %v5153_v24 = vld [vmem:[#allocation15 + $0x360] sm:$0xff]  ;;  %v5084_v22 = vld [vmem:[#allocation15 + $0x138] sm:$0xff] }
 0x9c6   : > { %v7455_v27 = vcombine.high %v5149_v20, %v5153_v24  ;;  %v5161_v29 = vld [vmem:[#allocation15 + $0x3a0] sm:$0xff]  ;;  %v7454_v30 = vcombine.low %v5149_v20, %v5153_v24  ;;  %v7389_v24 = vcombine.high %v5080_v18, %v5084_v22 }
 0x9c7   : > { %5002 = vmatprep.subr.bf16.mxu0 %v4997_v32  ;;  %v7462_v32 = vcombine.low %v5157_v28, %v5161_v29 }
 0x9c8   : > { %5003 = vmatpush1.bf16.msra.mxu0 %v4996_v31  ;;  %v7463_v31 = vcombine.high %v5157_v28, %v5161_v29  ;;  %v5088_v28 = vld [vmem:[#allocation15 + $0x158] sm:$0xff] }
 0x9c9   : > { %5855 = vmatprep.subr.bf16.mxu0 %v7351_v33  ;;  %v5165_v33 = vld [vmem:[#allocation15 + $0x3c0] sm:$0xff]  ;;  %v5092_v29 = vld [vmem:[#allocation15 + $0x178] sm:$0xff] }
 0x9cb   : > { %7349 = vmatmul.mubr.msk.bf16.vlgmr.msra.gmra.mrb[16].mxu0 %vm4526_vm6, %v4998_v35  ;;  %v7471_v35 = vcombine.high %v5165_v33, %v5169_v34 }
 0x9cc   : > { %5856 = vmatpush1.bf16.msra.mxu0 %v7350_v36  ;;  %v5170_v36 = vld [vmem:[#allocation15 + $0x3e8] sm:$0xff] }
 0x9cd   : > { %5857 = vmatprep.subr.bf16.mxu0 %v7359_v39  ;;  %v7470_v39 = vcombine.low %v5165_v33, %v5169_v34  ;;  %v7472_v41 = vcombine.low %v5166_v26, %v5170_v36  ;;  %v7473_v42 = vcombine.high %v5166_v26, %v5170_v36  ;;  %v7397_v33 = vcombine.high %v5088_v28, %v5092_v29  ;;  %v5095_v34 = vld [vmem:[#allocation15 + $0x190] sm:$0xff]  ;;  %v5100_v36 = vld [vmem:[#allocation15 + $0x1b8] sm:$0xff] }
 0x9ce   : > { %v5099_v26 = vld [vmem:[#allocation15 + $0x1b0] sm:$0xff] }
 0x9cf   : > { %5926 = vmatprep.subr.bf16.mxu1 %v7473_v42  ;;  %v7403_v42 = vcombine.high %v5095_v34, %v5099_v26 }
 0x9d0   : > { %5858 = vmatpush1.bf16.msra.mxu0 %v7358_v45  ;;  %v5047_v45 = vld [vmem:[#allocation15 + $0x10] sm:$0xff]  ;;  %5927 = vmatpush1.bf16.msra.mxu1 %v7472_v41  ;;  %v7396_v41 = vcombine.low %v5088_v28, %v5092_v29 }
 0x9d1   : > { %5859 = vmatprep.subr.bf16.mxu0 %v7367_v47  ;;  %v5051_v47 = vld [vmem:[#allocation15 + $0x30] sm:$0xff] }
 0x9d2   : > { %v7355_v49 = vcombine.high %v5047_v45, %v5051_v47 }
 0x9d4   : > { %5860 = vmatpush1.bf16.msra.mxu0 %v7366_v40  ;;  %v5052_v40 = vld [vmem:[#allocation15 + $0x38] sm:$0xff] }
 0x9d5   : > { %5861 = vmatprep.subr.bf16.mxu0 %v7375_v52  ;;  %v7354_v52 = vcombine.low %v5047_v45, %v5051_v47  ;;  %v7356_v50 = vcombine.low %v5048_v48, %v5052_v40  ;;  %v7357_v53 = vcombine.high %v5048_v48, %v5052_v40  ;;  %v5103_v47 = vld [vmem:[#allocation15 + $0x1d0] sm:$0xff]  ;;  %v5108_v40 = vld [vmem:[#allocation15 + $0x1f8] sm:$0xff] }
 0x9d6   : > { %v5107_v48 = vld [vmem:[#allocation15 + $0x1f0] sm:$0xff] }
 0x9d7   : > { %5978 = vmatprep.subr.bf16.mxu1 %v7357_v53  ;;  %v7411_v53 = vcombine.high %v5103_v47, %v5107_v48 }
 0x9d8   : > { %5862 = vmatpush1.bf16.msra.mxu0 %v7374_v54 }
 0x9d9   : > { %5863 = vmatprep.subr.bf16.mxu0 %v7383_v44  ;;  %v5055_v44 = vld [vmem:[#allocation15 + $0x50] sm:$0xff] }
 0x9da   : > { %v7363_v62 = vcombine.high %v5055_v44, %v5059_v56 }
 0x9dc   : > { %5864 = vmatpush1.bf16.msra.mxu0 %v7382_v58  ;;  %v5056_v58 = vld [vmem:[#allocation15 + $0x58] sm:$0xff] }
 0x9dd   : > { %5865 = vmatprep.subr.bf16.mxu0 %v7391_v55  ;;  %v5060_v55 = vld [vmem:[#allocation15 + $0x78] sm:$0xff] }
 0x9e0   : > { %5866 = vmatpush1.bf16.msra.mxu0 %v7390_v60 }
 0x9e1   : > { %5867 = vmatprep.subr.bf16.mxu0 %v7399_v61 }
 0x9e4   : > { %5868 = vmatpush1.bf16.msra.mxu0 %v7398_v0  ;;  %v7365_v0 = vcombine.high %v5056_v58, %v5060_v55 }
 0x9e5   : > { %5869 = vmatprep.subr.bf16.mxu0 %v7407_v1  ;;  %v5067_v1 = vld [vmem:[#allocation15 + $0xb0] sm:$0xff] }
 0x9e6   : > { %v7371_v43 = vcombine.high %v5063_v63, %v5067_v1 }
 0x9e8   : > { %5870 = vmatpush1.bf16.msra.mxu0 %v7406_v7  ;;  %v7362_v7 = vcombine.low %v5055_v44, %v5059_v56  ;;  %v5111_v44 = vld [vmem:[#allocation15 + $0x210] sm:$0xff] }
 0x9e9   : > { %5871 = vmatprep.subr.bf16.mxu0 %v7415_v12  ;;  %v7364_v12 = vcombine.low %v5056_v58, %v5060_v55  ;;  %v5115_v56 = vld [vmem:[#allocation15 + $0x230] sm:$0xff]  ;;  %v5116_v58 = vld [vmem:[#allocation15 + $0x238] sm:$0xff]  ;;  %v7410_v55 = vcombine.low %v5103_v47, %v5107_v48 }
 0x9ea   : > { %v5160_v47 = vld [vmem:[#allocation15 + $0x398] sm:$0xff] }
 0x9eb   : > { %v5164_v48 = vld [vmem:[#allocation15 + $0x3b8] sm:$0xff] }
 0x9ec   : > { %5872 = vmatpush1.bf16.msra.mxu0 %v7414_v13  ;;  %v5071_v13 = vld [vmem:[#allocation15 + $0xd0] sm:$0xff] }
 0x9ed   : > { %5873 = vmatprep.subr.bf16.mxu0 %v7423_v38  ;;  %v5075_v38 = vld [vmem:[#allocation15 + $0xf0] sm:$0xff] }
 0x9ee   : > { %v7379_v11 = vcombine.high %v5071_v13, %v5075_v38 }
 0x9f0   : > { %5874 = vmatpush1.bf16.msra.mxu0 %v7422_v51  ;;  %v7370_v51 = vcombine.low %v5063_v63, %v5067_v1  ;;  %v5123_v63 = vld [vmem:[#allocation15 + $0x270] sm:$0xff]  ;;  %v5124_v1 = vld [vmem:[#allocation15 + $0x278] sm:$0xff] }
 0x9f1   : > { %5875 = vmatprep.subr.bf16.mxu0 %v7431_v16  ;;  %v7372_v16 = vcombine.low %v5064_v2, %v5068_v6  ;;  %v7418_v2 = vcombine.low %v5111_v44, %v5115_v56 }
 0x9f4   : > { %5876 = vmatpush1.bf16.msra.mxu0 %v7430_v19  ;;  %v5079_v19 = vld [vmem:[#allocation15 + $0x110] sm:$0xff] }
 0x9f5   : > { %5877 = vmatprep.subr.bf16.mxu0 %v7439_v4  ;;  %v5083_v4 = vld [vmem:[#allocation15 + $0x130] sm:$0xff] }
 0x9f6   : > { %v7387_v20 = vcombine.high %v5079_v19, %v5083_v4 }
 0x9f8   : > { %5878 = vmatpush1.bf16.msra.mxu0 %v7438_v23  ;;  %v7378_v23 = vcombine.low %v5071_v13, %v5075_v38  ;;  %v5128_v13 = vld [vmem:[#allocation15 + $0x298] sm:$0xff] }
 0x9f9   : > { %5879 = vmatprep.subr.bf16.mxu0 %v7447_v21  ;;  %v7380_v21 = vcombine.low %v5072_v14, %v5076_v15  ;;  %v5132_v38 = vld [vmem:[#allocation15 + $0x2b8] sm:$0xff] }
 0x9fc   : > { %5880 = vmatpush1.bf16.msra.mxu0 %v7446_v25  ;;  %v5087_v25 = vld [vmem:[#allocation15 + $0x150] sm:$0xff] }
 0x9fd   : > { %5881 = vmatprep.subr.bf16.mxu0 %v7455_v27  ;;  %v5091_v27 = vld [vmem:[#allocation15 + $0x170] sm:$0xff] }
 0xa00   : > { %5882 = vmatpush1.bf16.msra.mxu0 %v7454_v30  ;;  %v7386_v30 = vcombine.low %v5079_v19, %v5083_v4  ;;  %v5136_v19 = vld [vmem:[#allocation15 + $0x2d8] sm:$0xff] }
 0xa01   : > { %5883 = vmatprep.subr.bf16.mxu0 %v7463_v31  ;;  %v7388_v31 = vcombine.low %v5080_v18, %v5084_v22  ;;  %v5140_v4 = vld [vmem:[#allocation15 + $0x2f8] sm:$0xff]  ;;  %v7436_v22 = vcombine.low %v5128_v13, %v5132_v38 }
 0xa02   : > { %v7444_v29 = vcombine.low %v5136_v19, %v5140_v4 }
 0xa04   : > { %5884 = vmatpush1.bf16.msra.mxu0 %v7462_v32  ;;  %v7395_v32 = vcombine.high %v5087_v25, %v5091_v27 }
 0xa05   : > { %5885 = vmatprep.subr.bf16.mxu0 %v7471_v35  ;;  %v5096_v35 = vld [vmem:[#allocation15 + $0x198] sm:$0xff] }
 0xa06   : > { %v7405_v45 = vcombine.high %v5096_v35, %v5100_v36 }
 0xa08   : > { %5886 = vmatpush1.bf16.msra.mxu0 %v7470_v39  ;;  %v7394_v39 = vcombine.low %v5087_v25, %v5091_v27  ;;  %v5144_v25 = vld [vmem:[#allocation15 + $0x318] sm:$0xff] }
 0xa09   : > { %5937 = vmatprep.subr.bf16.mxu0 %v7355_v49  ;;  %v5104_v49 = vld [vmem:[#allocation15 + $0x1d8] sm:$0xff] }
 0xa0a   : > { %v5148_v27 = vld [vmem:[#allocation15 + $0x338] sm:$0xff] }
 0xa9e   : > { %v5036_v54 = vpop.f32.mrb[16].mxu0 }
 0xa9f   : > { %v5038_v57 = vpop.f32.mrb[17].mxu0  ;;  %v9785_v60 = vpack.c.bf16 %v5036_v54, %v5036_v54  ;;  %v7413_v54 = vcombine.high %v5104_v49, %v5108_v40 }
 0xaa0   : > { %v5044_v37 = vpack.c.bf16 %v5038_v57, %v5038_v57  ;;  %v5040_v59 = vpop.f32.mrb[18].mxu0  ;;  %v5112_v57 = vld [vmem:[#allocation15 + $0x218] sm:$0xff] }
 0xaa1   : > { %v5041_v61 = vpop.f32.mrb[19].mxu0  ;;  %v7419_v59 = vcombine.high %v5111_v44, %v5115_v56  ;;  %v7420_v6 = vcombine.low %v5112_v57, %v5116_v58  ;;  %v5168_v44 = vld [vmem:[#allocation15 + $0x3d8] sm:$0xff] }
 0xaa2   : > { %5887 = vmatprep.mubr.bf16.mxu0 %v5044_v37  ;;  %5928 = vmatprep.mubr.bf16.mxu1 %v5044_v37  ;;  %v7421_v61 = vcombine.high %v5112_v57, %v5116_v58  ;;  %v5172_v56 = vld [vmem:[#allocation15 + $0x3f8] sm:$0xff]  ;;  %v7468_v58 = vcombine.low %v5160_v47, %v5164_v48 }
 0xaa3   : > { %5888 = vmatmul.mubr.bf16.vlgmr.msra.gmra.mrb[20].mxu0 %v9785_v60  ;;  %5929 = vmatmul.mubr.bf16.vlgmr.msra.gmra.mrb[8].mxu1 %v9785_v60 }
 0xaa4   : > { %5938 = vmatpush1.bf16.msra.mxu0 %v7354_v52  ;;  %5979 = vmatpush1.bf16.msra.mxu1 %v7356_v50  ;;  %v7402_v52 = vcombine.low %v5095_v34, %v5099_v26  ;;  %v7404_v50 = vcombine.low %v5096_v35, %v5100_v36  ;;  %v5152_v34 = vld [vmem:[#allocation15 + $0x358] sm:$0xff]  ;;  %v7452_v36 = vcombine.low %v5144_v25, %v5148_v27 }
 0xaa5   : > { %5939 = vmatprep.subr.bf16.mxu0 %v7363_v62  ;;  %5969 = vmatprep.mubr.bf16.mxu0 %v5044_v37  ;;  %v5119_v62 = vld [vmem:[#allocation15 + $0x250] sm:$0xff]  ;;  %v5156_v26 = vld [vmem:[#allocation15 + $0x378] sm:$0xff] }
 0xaa6   : > { %5980 = vmatprep.subr.bf16.mxu1 %v7365_v0  ;;  %6010 = vmatprep.mubr.bf16.mxu1 %v5044_v37  ;;  %v7412_v37 = vcombine.low %v5104_v49, %v5108_v40  ;;  %v5120_v0 = vld [vmem:[#allocation15 + $0x258] sm:$0xff]  ;;  %v7426_v14 = vcombine.low %v5119_v62, %v5123_v63  ;;  %v7460_v40 = vcombine.low %v5152_v34, %v5156_v26 }
 0xaa7   : > { %v7428_v15 = vcombine.low %v5120_v0, %v5124_v1 }
 0xaa8   : > { %5940 = vmatpush1.bf16.msra.mxu0 %v7362_v7  ;;  %5981 = vmatpush1.bf16.msra.mxu1 %v7364_v12  ;;  %v7427_v7 = vcombine.high %v5119_v62, %v5123_v63  ;;  %v7429_v12 = vcombine.high %v5120_v0, %v5124_v1  ;;  %v8659_v62 = vld [vmem:[#allocation17 + $0x40] sm:$0xff]  }
 0xaa9   : > { %5941 = vmatprep.subr.bf16.mxu0 %v7371_v43  ;;  %5982 = vmatprep.subr.bf16.mxu1 %v7373_v10  ;;  %v5127_v43 = vld [vmem:[#allocation15 + $0x290] sm:$0xff]  ;;  %v8660_v63 = vld [vmem:[#allocation17 + $0xc0] sm:$0xff]  }
 0xaaa   : > { %v5131_v10 = vld [vmem:[#allocation15 + $0x2b0] sm:$0xff]  ;;  %v8661_v0 = vld [vmem:[#allocation17] sm:$0xff]  }
 0xaab   : > { %v7434_v18 = vcombine.low %v5127_v43, %v5131_v10  ;;  %v8662_v1 = vld [vmem:[#allocation17 + $0x80] sm:$0xff]  }
 0xaac   : > { %5942 = vmatpush1.bf16.msra.mxu0 %v7370_v51  ;;  %5983 = vmatpush1.bf16.msra.mxu1 %v7372_v16  ;;  %v7435_v51 = vcombine.high %v5127_v43, %v5131_v10  ;;  %v7437_v16 = vcombine.high %v5128_v13, %v5132_v38  ;;  %v8667_v43 = vld [vmem:[#allocation17 + $0x50] sm:$0xff]  }
 0xaad   : > { %5943 = vmatprep.subr.bf16.mxu0 %v7379_v11  ;;  %5984 = vmatprep.subr.bf16.mxu1 %v7381_v17  ;;  %v5135_v11 = vld [vmem:[#allocation15 + $0x2d0] sm:$0xff] }
 0xaae   : > { %v5139_v17 = vld [vmem:[#allocation15 + $0x2f0] sm:$0xff] }
 0xaaf   : > { %v7442_v28 = vcombine.low %v5135_v11, %v5139_v17  ;;  %v8668_v10 = vld [vmem:[#allocation17 + $0xd0] sm:$0xff]  }
 0xab0   : > { %5944 = vmatpush1.bf16.msra.mxu0 %v7378_v23  ;;  %5985 = vmatpush1.bf16.msra.mxu1 %v7380_v21  ;;  %v7443_v23 = vcombine.high %v5135_v11, %v5139_v17  ;;  %v7445_v21 = vcombine.high %v5136_v19, %v5140_v4  ;;  %v8669_v13 = vld [vmem:[#allocation17 + $0x10] sm:$0xff]   ;;  %v8676_v11 = vld [vmem:[#allocation17 + $0xe0] sm:$0xff]   ;;  %v8679_v4 = vld [vmem:[#allocation17 + $0x68] sm:$0xff]  }
 0xab1   : > { %5945 = vmatprep.subr.bf16.mxu0 %v7387_v20  ;;  %5986 = vmatprep.subr.bf16.mxu1 %v7389_v24  ;;  %v5143_v20 = vld [vmem:[#allocation15 + $0x310] sm:$0xff]  ;;  %v8677_v17 = vld [vmem:[#allocation17 + $0x20] sm:$0xff]  }
 0xab2   : > { %v5147_v24 = vld [vmem:[#allocation15 + $0x330] sm:$0xff]  ;;  %v8678_v19 = vld [vmem:[#allocation17 + $0xa0] sm:$0xff]  }
 0xab3   : > { %v7450_v35 = vcombine.low %v5143_v20, %v5147_v24  ;;  %v8670_v38 = vld [vmem:[#allocation17 + $0x90] sm:$0xff]  }
 0xab4   : > { %5946 = vmatpush1.bf16.msra.mxu0 %v7386_v30  ;;  %5987 = vmatpush1.bf16.msra.mxu1 %v7388_v31  ;;  %v7451_v30 = vcombine.high %v5143_v20, %v5147_v24  ;;  %v7453_v31 = vcombine.high %v5144_v25, %v5148_v27  ;;  %v8684_v20 = vld [vmem:[#allocation17 + $0xf0] sm:$0xff]   ;;  %v8687_v27 = vld [vmem:[#allocation17 + $0x78] sm:$0xff]  }
 0xab5   : > { %5947 = vmatprep.subr.bf16.mxu0 %v7395_v32  ;;  %5988 = vmatprep.subr.bf16.mxu1 %v7397_v33  ;;  %v5151_v32 = vld [vmem:[#allocation15 + $0x350] sm:$0xff] }
 0xab6   : > { %v5155_v33 = vld [vmem:[#allocation15 + $0x370] sm:$0xff] }
 0xab7   : > { %v7458_v49 = vcombine.low %v5151_v32, %v5155_v33  ;;  %v8685_v24 = vld [vmem:[#allocation17 + $0x30] sm:$0xff]  }
 0xab8   : > { %5948 = vmatpush1.bf16.msra.mxu0 %v7394_v39  ;;  %5989 = vmatpush1.bf16.msra.mxu1 %v7396_v41  ;;  %v7459_v39 = vcombine.high %v5151_v32, %v5155_v33  ;;  %v7461_v41 = vcombine.high %v5152_v34, %v5156_v26  ;;  %v8686_v25 = vld [vmem:[#allocation17 + $0xb0] sm:$0xff]   ;;  %v8692_v32 = vld [vmem:[#allocation17 + $0x1c0] sm:$0xff]  }
 0xab9   : > { %5949 = vmatprep.subr.bf16.mxu0 %v7403_v42  ;;  %5990 = vmatprep.subr.bf16.mxu1 %v7405_v45  ;;  %v5159_v42 = vld [vmem:[#allocation15 + $0x390] sm:$0xff] }
 0xaba   : > { %v5163_v45 = vld [vmem:[#allocation15 + $0x3b0] sm:$0xff] }
 0xabb   : > { %v7466_v57 = vcombine.low %v5159_v42, %v5163_v45  ;;  %v9794_v33 = vld [vmem:[%s9929_s18] sm:$0xff] }
 0xabc   : > { %5950 = vmatpush1.bf16.msra.mxu0 %v7402_v52  ;;  %5991 = vmatpush1.bf16.msra.mxu1 %v7404_v50  ;;  %v7467_v52 = vcombine.high %v5159_v42, %v5163_v45  ;;  %v7469_v50 = vcombine.high %v5160_v47, %v5164_v48  ;;  %v5178_v34 = vrot.slane %v9794_v33, %v9752_v9 }
 0xabd   : > { %5951 = vmatprep.subr.bf16.mxu0 %v7411_v53  ;;  %5992 = vmatprep.subr.bf16.mxu1 %v7413_v54  ;;  %v5167_v53 = vld [vmem:[#allocation15 + $0x3d0] sm:$0xff]  ;;  %v5186_v26 = vrot.slane %v9794_v33, %v4954_v3 }
 0xabe   : > { %v5171_v54 = vld [vmem:[#allocation15 + $0x3f0] sm:$0xff] }
 0xac0   : > { %5952 = vmatpush1.bf16.msra.mxu0 %v7410_v55  ;;  %5993 = vmatpush1.bf16.msra.mxu1 %v7412_v37  ;;  %v7475_v55 = vcombine.high %v5167_v53, %v5171_v54  ;;  %v7477_v37 = vcombine.high %v5168_v44, %v5172_v56 }
 0xac1   : > { %5953 = vmatprep.subr.bf16.mxu0 %v7419_v59  ;;  %5994 = vmatprep.subr.bf16.mxu1 %v7421_v61  ;;  %v7474_v59 = vcombine.low %v5167_v53, %v5171_v54  ;;  %v7476_v61 = vcombine.low %v5168_v44, %v5172_v56 }
 0xac4   : > { %5954 = vmatpush1.bf16.msra.mxu0 %v7418_v2  ;;  %5995 = vmatpush1.bf16.msra.mxu1 %v7420_v6  ;;  %v8663_v2 = vld [vmem:[#allocation17 + $0x48] sm:$0xff]  }
 0xac5   : > { %5955 = vmatprep.subr.bf16.mxu0 %v7427_v7  ;;  %5996 = vmatprep.subr.bf16.mxu1 %v7429_v12  ;;  %v8664_v6 = vld [vmem:[#allocation17 + $0xc8] sm:$0xff]  }
 0xac6   : > { %v8665_v7 = vld [vmem:[#allocation17 + $0x8] sm:$0xff]  }
 0xac7   : > { %v8666_v12 = vld [vmem:[#allocation17 + $0x88] sm:$0xff]  }
 0xac8   : > { %5956 = vmatpush1.bf16.msra.mxu0 %v7426_v14  ;;  %5997 = vmatpush1.bf16.msra.mxu1 %v7428_v15  ;;  %v8671_v14 = vld [vmem:[#allocation17 + $0x58] sm:$0xff]  }
 0xac9   : > { %5957 = vmatprep.subr.bf16.mxu0 %v7435_v51  ;;  %5998 = vmatprep.subr.bf16.mxu1 %v7437_v16  ;;  %v8672_v15 = vld [vmem:[#allocation17 + $0xd8] sm:$0xff]   ;;  %v8675_v16 = vld [vmem:[#allocation17 + $0x60] sm:$0xff]  }
 0xaca   : > { %v8673_v51 = vld [vmem:[#allocation17 + $0x18] sm:$0xff]  }
 0xacc   : > { %5958 = vmatpush1.bf16.msra.mxu0 %v7434_v18  ;;  %5999 = vmatpush1.bf16.msra.mxu1 %v7436_v22  ;;  %v8680_v18 = vld [vmem:[#allocation17 + $0xe8] sm:$0xff]  }
 0xacd   : > { %5959 = vmatprep.subr.bf16.mxu0 %v7443_v23  ;;  %6000 = vmatprep.subr.bf16.mxu1 %v7445_v21  ;;  %v8681_v22 = vld [vmem:[#allocation17 + $0x28] sm:$0xff]   ;;  %v8683_v21 = vld [vmem:[#allocation17 + $0x70] sm:$0xff]  }
 0xace   : > { %v8682_v23 = vld [vmem:[#allocation17 + $0xa8] sm:$0xff]  }
 0xad0   : > { %5960 = vmatpush1.bf16.msra.mxu0 %v7442_v28  ;;  %6001 = vmatpush1.bf16.msra.mxu1 %v7444_v29  ;;  %v8688_v28 = vld [vmem:[#allocation17 + $0xf8] sm:$0xff]  }
 0xad1   : > { %5961 = vmatprep.subr.bf16.mxu0 %v7451_v30  ;;  %6002 = vmatprep.subr.bf16.mxu1 %v7453_v31  ;;  %v8689_v29 = vld [vmem:[#allocation17 + $0x38] sm:$0xff]   ;;  %v8691_v31 = vld [vmem:[#allocation17 + $0x140] sm:$0xff]  }
 0xad2   : > { %v8690_v30 = vld [vmem:[#allocation17 + $0xb8] sm:$0xff]  }
 0xad4   : > { %5962 = vmatpush1.bf16.msra.mxu0 %v7450_v35  ;;  %6003 = vmatpush1.bf16.msra.mxu1 %v7452_v36  ;;  %v5182_v35 = vrot.slane %v9794_v33, %v9755_v46  ;;  %v5190_v36 = vrot.slane %v9794_v33, %v4976_v5  ;;  %v8694_v5 = vld [vmem:[#allocation17 + $0x180] sm:$0xff]  }
 0xad5   : > { %5963 = vmatprep.subr.bf16.mxu0 %v7459_v39  ;;  %6004 = vmatprep.subr.bf16.mxu1 %v7461_v41 }
 0xad8   : > { %5964 = vmatpush1.bf16.msra.mxu0 %v7458_v49  ;;  %6005 = vmatpush1.bf16.msra.mxu1 %v7460_v40 }
 0xad9   : > { %5965 = vmatprep.subr.bf16.mxu0 %v7467_v52  ;;  %6006 = vmatprep.subr.bf16.mxu1 %v7469_v50 }
 0xadc   : > { %5966 = vmatpush1.bf16.msra.mxu0 %v7466_v57  ;;  %6007 = vmatpush1.bf16.msra.mxu1 %v7468_v58  ;;  %v8693_v58 = vld [vmem:[#allocation17 + $0x100] sm:$0xff]  }
 0xadd   : > { %5967 = vmatprep.subr.bf16.mxu0 %v7475_v55  ;;  %6008 = vmatprep.subr.bf16.mxu1 %v7477_v37 }
 0xae0   : > { %5968 = vmatpush1.bf16.msra.mxu0 %v7474_v59  ;;  %6009 = vmatpush1.bf16.msra.mxu1 %v7476_v61  ;;  %v8695_v59 = vld [vmem:[#allocation17 + $0x148] sm:$0xff]  }
 0xae1   : > { %7929 = vmatprep.subr.bf16.mxu0 %v8659_v62  ;;  %7951 = vmatprep.subr.bf16.mxu1 %v8660_v63  ;;  %v8696_v61 = vld [vmem:[#allocation17 + $0x1c8] sm:$0xff]  }
 0xae2   : > { %v8697_v62 = vld [vmem:[#allocation17 + $0x108] sm:$0xff]  }
 0xae3   : > { %5970 = vmatmul.mubr.bf16.vlgmr.msra.gmra.mrb[24].mxu0 %v9785_v60  ;;  %6011 = vmatmul.mubr.bf16.vlgmr.msra.gmra.mrb[12].mxu1 %v9785_v60  ;;  %v8674_v60 = vld [vmem:[#allocation17 + $0x98] sm:$0xff]   ;;  %v8698_v63 = vld [vmem:[#allocation17 + $0x188] sm:$0xff]  }
 0xae4   : > { %7930 = vmatpush3.bf16.msra.mxu0 %v8661_v0  ;;  %7952 = vmatpush3.bf16.msra.mxu1 %v8662_v1  ;;  %v8699_v0 = vld [vmem:[#allocation17 + $0x150] sm:$0xff]  }
 0xae5   : > { %7931 = vmatprep.subr.bf16.mxu0 %v8663_v2  ;;  %7953 = vmatprep.subr.bf16.mxu1 %v8664_v6  ;;  %v8700_v1 = vld [vmem:[#allocation17 + $0x1d0] sm:$0xff]  }
 0xae6   : > { %v8701_v2 = vld [vmem:[#allocation17 + $0x110] sm:$0xff]  }
 0xae7   : > { %v8702_v6 = vld [vmem:[#allocation17 + $0x190] sm:$0xff]  }
 0xae8   : > { %7932 = vmatpush3.bf16.msra.mxu0 %v8665_v7  ;;  %7954 = vmatpush3.bf16.msra.mxu1 %v8666_v12  ;;  %v8703_v7 = vld [vmem:[#allocation17 + $0x158] sm:$0xff]  }
 0xae9   : > { %7933 = vmatprep.subr.bf16.mxu0 %v8667_v43  ;;  %7955 = vmatprep.subr.bf16.mxu1 %v8668_v10  ;;  %v8704_v12 = vld [vmem:[#allocation17 + $0x1d8] sm:$0xff]  }
 0xaea   : > { %v8705_v43 = vld [vmem:[#allocation17 + $0x118] sm:$0xff]  }
 0xaeb   : > { %v8706_v10 = vld [vmem:[#allocation17 + $0x198] sm:$0xff]  }
 0xaec   : > { %7934 = vmatpush3.bf16.msra.mxu0 %v8669_v13  ;;  %7956 = vmatpush3.bf16.msra.mxu1 %v8670_v38  ;;  %v8707_v13 = vld [vmem:[#allocation17 + $0x160] sm:$0xff]  }
 0xaed   : > { %7935 = vmatprep.subr.bf16.mxu0 %v8671_v14  ;;  %7957 = vmatprep.subr.bf16.mxu1 %v8672_v15  ;;  %v8708_v38 = vld [vmem:[#allocation17 + $0x1e0] sm:$0xff]  }
 0xaee   : > { %v8709_v14 = vld [vmem:[#allocation17 + $0x120] sm:$0xff]  }
 0xaef   : > { %v8710_v15 = vld [vmem:[#allocation17 + $0x1a0] sm:$0xff]  }
 0xaf0   : > { %7936 = vmatpush3.bf16.msra.mxu0 %v8673_v51  ;;  %7958 = vmatpush3.bf16.msra.mxu1 %v8674_v60  ;;  %v8711_v51 = vld [vmem:[#allocation17 + $0x168] sm:$0xff]  }
 0xaf1   : > { %7937 = vmatprep.subr.bf16.mxu0 %v8675_v16  ;;  %7959 = vmatprep.subr.bf16.mxu1 %v8676_v11  ;;  %v8712_v60 = vld [vmem:[#allocation17 + $0x1e8] sm:$0xff]  }
 0xaf2   : > { %v8713_v16 = vld [vmem:[#allocation17 + $0x128] sm:$0xff]  }
 0xaf3   : > { %v8714_v11 = vld [vmem:[#allocation17 + $0x1a8] sm:$0xff]  }
 0xaf4   : > { %7938 = vmatpush3.bf16.msra.mxu0 %v8677_v17  ;;  %7960 = vmatpush3.bf16.msra.mxu1 %v8678_v19  ;;  %v8715_v17 = vld [vmem:[#allocation17 + $0x170] sm:$0xff]  }
 0xaf5   : > { %7939 = vmatprep.subr.bf16.mxu0 %v8679_v4  ;;  %7961 = vmatprep.subr.bf16.mxu1 %v8680_v18  ;;  %v8716_v19 = vld [vmem:[#allocation17 + $0x1f0] sm:$0xff]  }
 0xaf6   : > { %v8717_v4 = vld [vmem:[#allocation17 + $0x130] sm:$0xff]  }
 0xaf7   : > { %v8718_v18 = vld [vmem:[#allocation17 + $0x1b0] sm:$0xff]  }
 0xaf8   : > { %7940 = vmatpush3.bf16.msra.mxu0 %v8681_v22  ;;  %7962 = vmatpush3.bf16.msra.mxu1 %v8682_v23  ;;  %v8719_v22 = vld [vmem:[#allocation17 + $0x178] sm:$0xff]  }
 0xaf9   : > { %7941 = vmatprep.subr.bf16.mxu0 %v8683_v21  ;;  %7963 = vmatprep.subr.bf16.mxu1 %v8684_v20  ;;  %v8720_v23 = vld [vmem:[#allocation17 + $0x1f8] sm:$0xff]  }
 0xafa   : > { %v8721_v21 = vld [vmem:[#allocation17 + $0x138] sm:$0xff]  }
 0xafb   : > { %v8722_v20 = vld [vmem:[#allocation17 + $0x1b8] sm:$0xff]  }
 0xafc   : > { %7942 = vmatpush3.bf16.msra.mxu0 %v8685_v24  ;;  %7964 = vmatpush3.bf16.msra.mxu1 %v8686_v25  ;;  %v5193_v24 = vsub.s32 4, %v9749_v8  ;;  %v5201_v25 = vsub.s32 6, %v9749_v8 }
 0xafd   : > { %7943 = vmatprep.subr.bf16.mxu0 %v8687_v27  ;;  %7965 = vmatprep.subr.bf16.mxu1 %v8688_v28  ;;  %v5197_v27 = vsub.s32 5, %v9749_v8  ;;  %v5205_v28 = vsub.s32 7, %v9749_v8 }
 0xb00   : > { %7944 = vmatpush3.bf16.msra.mxu0 %v8689_v29  ;;  %7966 = vmatpush3.bf16.msra.mxu1 %v8690_v30  ;;  %v5194_v29 = vrot.slane %v9794_v33, %v5193_v24  ;;  %v5202_v30 = vrot.slane %v9794_v33, %v5201_v25 }
 0xb01   : > { %7973 = vmatprep.subr.bf16.mxu0 %v8691_v31  ;;  %7995 = vmatprep.subr.bf16.mxu1 %v8692_v32  ;;  %v5198_v31 = vrot.slane %v9794_v33, %v5197_v27  ;;  %v5206_v32 = vrot.slane %v9794_v33, %v5205_v28 }
 0xb76   : > { %v5889_v39 = vpop.f32.mrb[20].mxu0  ;;  %v5930_v41 = vpop.f32.mrb[8].mxu1 }
 0xb77   : > { %v5890_v42 = vadd.f32 %v5889_v39, %v5178_v34  ;;  %v5931_v45 = vadd.f32 %v5930_v41, %v5186_v26  ;;  %v5891_v47 = vpop.f32.mrb[21].mxu0  ;;  %v5932_v48 = vpop.f32.mrb[9].mxu1 }
 0xb78   : > { %v5892_v49 = vadd.f32 %v5891_v47, %v5182_v35  ;;  %v5933_v40 = vadd.f32 %v5932_v48, %v5190_v36  ;;  %v5893_v9 = vpop.f32.mrb[22].mxu0  ;;  %v5934_v52 = vpop.f32.mrb[10].mxu1 }
 0xb79   : > { %v6019_v50 = vmax.f32 %v5890_v42, 0.0  ;;  %v6021_v53 = vmax.f32 %v5931_v45, 0.0  ;;  %v5894_v3 = vpop.f32.mrb[23].mxu0  ;;  %v5935_v54 = vpop.f32.mrb[11].mxu1 }
 0xb7a   : > { %v6020_v44 = vmax.f32 %v5892_v49, 0.0  ;;  %v6022_v46 = vmax.f32 %v5933_v40, 0.0 }
 0xb7b   : > { %v6027_v55 = vpack.c.bf16 %v6019_v50, %v6019_v50  ;;  %v6029_v37 = vpack.c.bf16 %v6021_v53, %v6021_v53 }
 0xb7c   : > { %v6028_v56 = vpack.c.bf16 %v6020_v44, %v6020_v44  ;;  %v6030_v57 = vpack.c.bf16 %v6022_v46, %v6022_v46 }
 0xb7e   : > { %6586 = vmatprep.mubr.bf16.mxu0 %v6028_v56  ;;  %6626 = vmatprep.mubr.bf16.mxu1 %v6030_v57  ;;  %v7478_v56 = vld [vmem:[%s9930_s12] ss:$0 sm:$0xff] }
 0xb7f   : > { %6587 = vmatmul.mubr.bf16.vlgmr.msra.gmra.mrb[28].mxu0 %v6027_v55  ;;  %6627 = vmatmul.mubr.bf16.vlgmr.msra.gmra.mrb[16].mxu1 %v6029_v37 }
 0xb80   : > { %7974 = vmatpush3.bf16.msra.mxu0 %v8693_v58  ;;  %7996 = vmatpush3.bf16.msra.mxu1 %v8694_v5 }
 0xb81   : > { %7975 = vmatprep.subr.bf16.mxu0 %v8695_v59  ;;  %7997 = vmatprep.subr.bf16.mxu1 %v8696_v61 }
 0xb84   : > { %7976 = vmatpush3.bf16.msra.mxu0 %v8697_v62  ;;  %7998 = vmatpush3.bf16.msra.mxu1 %v8698_v63 }
 0xb85   : > { %7977 = vmatprep.subr.bf16.mxu0 %v8699_v0  ;;  %7999 = vmatprep.subr.bf16.mxu1 %v8700_v1 }
 0xb88   : > { %7978 = vmatpush3.bf16.msra.mxu0 %v8701_v2  ;;  %8000 = vmatpush3.bf16.msra.mxu1 %v8702_v6 }
 0xb89   : > { %7979 = vmatprep.subr.bf16.mxu0 %v8703_v7  ;;  %8001 = vmatprep.subr.bf16.mxu1 %v8704_v12 }
 0xb8c   : > { %7980 = vmatpush3.bf16.msra.mxu0 %v8705_v43  ;;  %8002 = vmatpush3.bf16.msra.mxu1 %v8706_v10 }
 0xb8d   : > { %7981 = vmatprep.subr.bf16.mxu0 %v8707_v13  ;;  %8003 = vmatprep.subr.bf16.mxu1 %v8708_v38 }
 0xb90   : > { %7982 = vmatpush3.bf16.msra.mxu0 %v8709_v14  ;;  %8004 = vmatpush3.bf16.msra.mxu1 %v8710_v15 }
 0xb91   : > { %7983 = vmatprep.subr.bf16.mxu0 %v8711_v51  ;;  %8005 = vmatprep.subr.bf16.mxu1 %v8712_v60 }
 0xb94   : > { %7984 = vmatpush3.bf16.msra.mxu0 %v8713_v16  ;;  %8006 = vmatpush3.bf16.msra.mxu1 %v8714_v11 }
 0xb95   : > { %7985 = vmatprep.subr.bf16.mxu0 %v8715_v17  ;;  %8007 = vmatprep.subr.bf16.mxu1 %v8716_v19 }
 0xb98   : > { %7986 = vmatpush3.bf16.msra.mxu0 %v8717_v4  ;;  %8008 = vmatpush3.bf16.msra.mxu1 %v8718_v18 }
 0xb99   : > { %7987 = vmatprep.subr.bf16.mxu0 %v8719_v22  ;;  %8009 = vmatprep.subr.bf16.mxu1 %v8720_v23 }
 0xb9c   : > { %7988 = vmatpush3.bf16.msra.mxu0 %v8721_v21  ;;  %8010 = vmatpush3.bf16.msra.mxu1 %v8722_v20 }
 0xbb6   : > { %v5971_v34 = vpop.f32.mrb[24].mxu0  ;;  %v6012_v26 = vpop.f32.mrb[12].mxu1 }
 0xbb7   : > { %v5972_v35 = vadd.f32 %v5971_v34, %v5194_v29  ;;  %v6013_v36 = vadd.f32 %v6012_v26, %v5202_v30  ;;  %v5973_v39 = vpop.f32.mrb[25].mxu0  ;;  %v6014_v41 = vpop.f32.mrb[13].mxu1 }
 0xbb8   : > { %v5974_v42 = vadd.f32 %v5973_v39, %v5198_v31  ;;  %v6015_v45 = vadd.f32 %v6014_v41, %v5206_v32  ;;  %v5975_v47 = vpop.f32.mrb[26].mxu0  ;;  %v6016_v48 = vpop.f32.mrb[14].mxu1 }
 0xbb9   : > { %v6023_v49 = vmax.f32 %v5972_v35, 0.0  ;;  %v6025_v8 = vmax.f32 %v6013_v36, 0.0  ;;  %v5976_v40 = vpop.f32.mrb[27].mxu0  ;;  %v6017_v9 = vpop.f32.mrb[15].mxu1 }
 0xbba   : > { %v6024_v52 = vmax.f32 %v5974_v42, 0.0  ;;  %v6026_v50 = vmax.f32 %v6015_v45, 0.0 }
 0xbbb   : > { %v6031_v54 = vpack.c.bf16 %v6023_v49, %v6023_v49  ;;  %v6033_v33 = vpack.c.bf16 %v6025_v8, %v6025_v8 }
 0xbbc   : > { %v6032_v53 = vpack.c.bf16 %v6024_v52, %v6024_v52  ;;  %v6034_v3 = vpack.c.bf16 %v6026_v50, %v6026_v50 }
 0xbbe   : > { %6666 = vmatprep.mubr.bf16.mxu0 %v6032_v53  ;;  %6706 = vmatprep.mubr.bf16.mxu1 %v6034_v3 }
 0xbbf   : > { %6667 = vmatmul.mubr.bf16.vlgmr.msra.gmra.mrb[32].mxu0 %v6031_v54  ;;  %6707 = vmatmul.mubr.bf16.vlgmr.msra.gmra.mrb[20].mxu1 %v6033_v33 }
 0xc52   : > { %v7945_v44 = vpop.f32.mrb[28].mxu0  ;;  %v7967_v46 = vpop.f32.mrb[16].mxu1 }
 0xc53   : > { %v7946_v57 = vpop.f32.mrb[29].mxu0  ;;  %v7968_v58 = vpop.f32.mrb[17].mxu1 }
 0xc54   : > { %v7947_v5 = vadd.f32 %v7946_v57, %v7945_v44  ;;  %v7969_v55 = vadd.f32 %v7968_v58, %v7967_v46  ;;  %v7948_v37 = vpop.f32.mrb[30].mxu0  ;;  %v7970_v59 = vpop.f32.mrb[18].mxu1 }
 0xc55   : > { %v7949_v61 = vpop.f32.mrb[31].mxu0  ;;  %v7971_v62 = vpop.f32.mrb[19].mxu1 }
 0xc56   : > { %v6589_v63 = vadd.f32 %v7947_v5, %v7478_v56 }
 0xc58   : > { %v6629_v0 = vadd.f32 %v7969_v55, %v6589_v63 }
 0xc92   : > { %v7989_v1 = vpop.f32.mrb[32].mxu0  ;;  %v8011_v2 = vpop.f32.mrb[20].mxu1 }
 0xc93   : > { %v7990_v6 = vpop.f32.mrb[33].mxu0  ;;  %v8012_v7 = vpop.f32.mrb[21].mxu1 }
 0xc94   : > { %v7991_v12 = vadd.f32 %v7990_v6, %v7989_v1  ;;  %v8013_v43 = vadd.f32 %v8012_v7, %v8011_v2  ;;  %v7992_v10 = vpop.f32.mrb[34].mxu0  ;;  %v8014_v13 = vpop.f32.mrb[22].mxu1 }
 0xc95   : > { %v7993_v38 = vpop.f32.mrb[35].mxu0  ;;  %v8015_v14 = vpop.f32.mrb[23].mxu1 }
 0xc96   : > { %v6669_v15 = vadd.f32 %v7991_v12, %v6629_v0 }
 0xc98   : > { %v6709_v51 = vadd.f32 %v8013_v43, %v6669_v15 }
 0xc9a   : > { %6714 = vst [vmem:[%s9449_s16] sm:$0xff] %v6709_v51 }
 0xc9b PF: > { %s9931_s26 = sld [smem:[#allocation30_spill]]  ;;  %s7544_s25 = sshll.u32 %s9183_s22, 7 }
 0xc9c   : > { %s9932_s14 = sld [smem:[#allocation36_spill]]  ;;  %s6729_s27 = sshll.u32 %s9449_s16, 4  ;;  %s6730_s27 = int_to_ptr.vmem [resolvable:$true] %s6729_s27 }
 0xc9d   : > { %s6716_s15 = scalar_lea.sflag [#allocation5], %s601_s30  ;;  %s8975_s21 = scalar_lea.vmem %s6730_s27, 128 }
 0xc9e   : > { %p8976_p12 = scmp.ne.s32.totalorder %s6730_s27, %s8975_s21  ;;  %s9081_s24 = smov [#allocation18]  }
 0xc9f   : > { %s8979_s17 = sshll.u32 %s9081_s24, 4  ;;  %s8980_s17 = int_to_ptr.vmem [resolvable:$false] %s8979_s17 }
 0xca0   : > { %s8981_s20 = scalar_lea.vmem %s8980_s17, 256  ;;  %p8982_p9 = scmp.lt.s32.totalorder %s6730_s27, %s8980_s17 }
 0xca1   : > { %p9933_p5 = scmp.ne.s32.totalorder %s9931_s26, 0  ;;  %p8983_p10 = scmp.lt.s32.totalorder %s8981_s20, %s8975_s21 }
 0xca2   : > { %s9822_s10 = scalar_lea.hbm %s9932_s14, %s7544_s25 }
 0xca3   : > { %p8977_p1 = pnand %p8976_p12, %p9933_p5  ;;  %p8984_p11 = por %p8983_p10, %p8982_p9 }
 0xca5   : > { %p8978_p6 = pneg %p8977_p1 }
 0xca7   : > { %p8985_p13 = pnand %p8984_p11, %p8978_p6 }
 0xca9   : > { %8988 = shalt.err (!%p8985_p13)
}
 0xcaa   : > { %s8989_s22 = scalar_lea.hbm %s9822_s10, 128  ;;  %s8993_s18 = scalar_lea.hbm %s9932_s14, 256 }
 0xcab   : > { %p8990_p0 = scmp.ne.s32.totalorder %s9822_s10, %s8989_s22  ;;  %p8994_p4 = scmp.lt.u32.totalorder %s9822_s10, %s9932_s14 }
 0xcac   : > { %p8995_p7 = scmp.lt.u32.totalorder %s8993_s18, %s8989_s22  ;;  %p8997_p12 = scmp.lt.u32.totalorder %s8989_s22, %s9822_s10 }
 0xcad   : > { %p8991_p2 = pnand %p8990_p0, %p9933_p5 }
 0xcae   : > { %p8996_p8 = por %p8995_p7, %p8994_p4 }
 0xcaf   : > { %p8992_p3 = pneg %p8991_p2 }
 0xcb0   : > { %p8998_p1 = por %p8997_p12, %p8996_p8 }
 0xcb2   : > { %p8999_p6 = pnand %p8998_p1, %p8992_p3 }
 0xcb4   : > { %9002 = shalt.err (!%p8999_p6)
}
 0xcb5   : > { %8113 = dma.vmem_to_hbm [thread:$0]  (%p9933_p5), %s6730_s27, 128, %s9822_s10, %s6716_s15  }
 0xcb6 PF: > { %s9934_s12 = sld [smem:[#allocation27_spill]]  ;;  %s9935_s25 = sld [smem:[#allocation25_spill]] }
 0xcb7   : > { %s9936_s29 = sld [smem:[#allocation31_spill]] }
 0xcbc   : > { %p8165_p9 = scmp.ge.s32.totalorder %s9934_s12, 2  ;;  %s6741_s9 = sand.u32 1, %s9935_s25  }
 0xcbd   : > { %p9937_p10 = scmp.ne.s32.totalorder %s9936_s29, 0  ;;  %s6742_s21 = scalar_lea.sflag [#allocation5], %s6741_s9 }
 0xcbf   : > { %p8144_p11 = pnand %p8165_p9, %p9937_p10 }
 0xcc1   : > { %9040 = dma.done.wait (!%p8144_p11), %s6742_s21, 128  }
 0xcc2   : > { %9042 = vsyncadd (!%p8144_p11), %s6742_s21, 4294967168  ;;  %s9938_s21 = sld [smem:[#allocation28_spill]]  ;;  %s9939_s24 = sld [smem:[#allocation26_spill]] }
 0xcc3   : > { %s9940_s20 = sld [smem:[#allocation29_spill]]  ;;  %s9941_s18 = smov %s9049_s19 }
 0xcc8   : > { %p30_p13 = scmp.ge.s32.totalorder %s9938_s21, 4   ;;  %s9942_s19 = smov %s9939_s24 }
 0xcca   :  { %32 = sbr.rel (!%p30_p13) target bundleno = 14 (0xe), region = 160 }
 0xcd1   :  { %6747 = vsyncpa [#allocation4], 1 }
 0xcd2   :  { %6749 = vsyncpa [#allocation4 + $0x1], 1 }
 0xcd3   :  { %6750 = vsyncpa [#allocation7], 1 }
 0xcd4   :  { %6751 = vsyncpa [#allocation10], 1 }
 0xcd5   :  { %6752 = vsyncpa [#allocation13], 1 }
 0xcd6   :  { %6753 = vsyncpa [#allocation16], 1 }
 0xcd7   :  { %6754 = vsyncpa [#allocation5], 1 }
 0xcd8   :  { %6756 = vsyncpa [#allocation5 + $0x1], 1 }

</bundles_post_ra>
